<compile_context>
chip_gen: v6e
topology: v6e:2x2x1
jax: 0.10.0
libtpu: 0.0.40
codegen_flags: <defaults>
</compile_context>

<pallas_src>
import functools

import jax
import jax.numpy as jnp
from jax import lax
from jax.experimental import pallas as pl
from jax.experimental.pallas import tpu as pltpu

PAD = 0  # Constants.PAD

CFG = dict(
    num_layers=1,
    bidirectional=True,
    rnn_hidden_size=32,
    word_emb_size=32,
    src_vocab_size=50,
    trg_vocab_size=50,
    dropout=0.0,      # dropout is identity here (eval semantics / p=0)
    input_feed=True,
)

_VMEM = pl.BlockSpec(memory_space=pltpu.MemorySpace.VMEM)


# ---------------------------------------------------------------------------
# In-kernel helpers
# ---------------------------------------------------------------------------
def _cell(gates, c):
    """LSTM cell update with kernel gate column order (i, f, o, g), equal-width groups."""
    q = gates.shape[1] // 4
    sa = jax.nn.sigmoid(gates)                 # one EUP pass over all sigmoid gates
    i = sa[:, 0 * q:1 * q]
    f = sa[:, 1 * q:2 * q]
    o = sa[:, 2 * q:3 * q]
    g = jnp.tanh(gates[:, 3 * q:4 * q])        # one tanh pass for the candidate gate
    c_new = f * c + i * g
    h_new = o * jnp.tanh(c_new)
    return h_new, c_new


def _onehot(ids, vocab, dtype):
    """ids: (N, 1) int32 -> (N, vocab) one-hot (embedding lookup becomes an MXU matmul)."""
    n = ids.shape[0]
    iota = lax.broadcasted_iota(jnp.int32, (n, vocab), 1)
    return (iota == ids).astype(dtype)


# ---------------------------------------------------------------------------
# The fused forward kernel
# ---------------------------------------------------------------------------
def seq2seq_kernel(src_ids_ref, trg_ids_ref,
                   a_enc_ref, b_enc_ref, wh_enc_ref,
                   a_dec_ref, b_dec_ref, wfeed_ref, whh_dec_ref,
                   win_ref, wout_c_ref, wout_h_ref,
                   out_ref, *, ts, tt, b, hd, h):
    f32 = jnp.float32
    bf16 = jnp.bfloat16

    # ------------------------- encoder (bi-LSTM, fused directions) -------------------------
    v_src = a_enc_ref.shape[0]
    oh_src = _onehot(src_ids_ref[...], v_src, bf16)                       # (Ts*B, Vs)
    # Embedding lookup fused with the x-projection for BOTH directions in one matmul.
    gx = jnp.dot(oh_src, a_enc_ref[...], preferred_element_type=f32)      # (Ts*B, 16*Hd)
    gx_f = gx[:, :8 * hd] + b_enc_ref[...]                                # bias added once, not per step
    gx_b = gx[:, 8 * hd:]

    wh_enc = wh_enc_ref[...]                                              # (2Hd, 8Hd) bf16
    h_enc = jnp.zeros((b, 2 * hd), f32)                                   # [fwd | bwd] on lanes
    c_enc = jnp.zeros((b, 2 * hd), f32)
    hf_list, hb_list = [], []
    for t in range(ts):                                                   # static unroll (T small)
        gates = (gx_f[t * b:(t + 1) * b]                                  # fwd reads source pos t
                 + gx_b[(ts - 1 - t) * b:(ts - t) * b]                    # bwd reads source pos T-1-t
                 + jnp.dot(h_enc.astype(bf16), wh_enc,
                           preferred_element_type=f32))                   # (B, 8Hd) = 128 lanes
        h_enc, c_enc = _cell(gates, c_enc)
        hf_list.append(h_enc[:, :hd])                                     # fwd output @ source pos t
        hb_list.append(h_enc[:, hd:])                                     # bwd output @ source pos T-1-t

    # context.t(): (B, S, H) assembled fully in-register, bwd half reversed via the Python list.
    ctx = jnp.concatenate([jnp.stack(hf_list, axis=1),
                           jnp.stack(hb_list[::-1], axis=1)], axis=-1).astype(bf16)   # (B, S, 2Hd)

    # fix_enc_hidden: [h_fwd_final | h_bwd_final] is exactly the final fused state.
    h_dec = h_enc
    c_dec = c_enc
    out_prev = jnp.zeros((b, h), f32)                                     # init_dec_output

    # ------------------------- decoder (input-feed LSTMCell + GlobalAttention) -------------------------
    v_trg = a_dec_ref.shape[0]
    oh_trg = _onehot(trg_ids_ref[...], v_trg, bf16)                       # (Tt*B, Vt)
    gxd = (jnp.dot(oh_trg, a_dec_ref[...], preferred_element_type=f32)
           + b_dec_ref[...])                                              # (Tt*B, 4H), bias hoisted

    wfeed = wfeed_ref[...]
    whh_d = whh_dec_ref[...]
    win = win_ref[...]
    wout_c = wout_c_ref[...]
    wout_h = wout_h_ref[...]

    outs = []
    for t in range(tt):                                                   # static unroll
        # LSTMCell with input feed; concat([emb_t, out], 1) replaced by split weights.
        gates = (gxd[t * b:(t + 1) * b]
                 + jnp.dot(out_prev.astype(bf16), wfeed, preferred_element_type=f32)
                 + jnp.dot(h_dec.astype(bf16), whh_d, preferred_element_type=f32))    # (B, 4H)
        h_dec, c_dec = _cell(gates, c_dec)

        # GlobalAttention: batched MXU contractions (flash-attention pattern, q-length 1).
        h_bf = h_dec.astype(bf16)
        target = jnp.dot(h_bf, win, preferred_element_type=f32)           # linear_in: (B, H)
        tq = target.astype(bf16)[:, None, :]                              # (B, 1, H)
        scores = jnp.einsum('bqh,bsh->bqs', tq, ctx,
                            preferred_element_type=f32)                   # (B, 1, S)
        m = jnp.max(scores, axis=-1, keepdims=True)
        p = jnp.exp(scores - m)
        attn = p * pl.reciprocal(jnp.sum(p, axis=-1, keepdims=True), approx=True)
        weighted = jnp.einsum('bqs,bsh->bqh', attn.astype(bf16), ctx,
                              preferred_element_type=f32)[:, 0, :]        # (B, H)
        # linear_out(cat([weighted, h])) with split weight halves, then tanh. dropout(p=0) = id.
        out_prev = jnp.tanh(
            jnp.dot(weighted.astype(bf16), wout_c, preferred_element_type=f32)
            + jnp.dot(h_bf, wout_h, preferred_element_type=f32))          # (B, H)
        outs.append(out_prev)

    out_ref[...] = jnp.stack(outs, axis=0)                                # (Tt, B, H), single store


# ---------------------------------------------------------------------------
# Wrapper: one pallas_call for the whole forward
# ---------------------------------------------------------------------------
def seq2seq_forward(kp, src_input, trg_input, *, cfg):
    Ts, B = src_input.shape
    Tt, _ = trg_input.shape
    H = cfg["rnn_hidden_size"]
    Hd = H // (2 if cfg["bidirectional"] else 1)

    kernel = functools.partial(seq2seq_kernel, ts=Ts, tt=Tt, b=B, hd=Hd, h=H)
    return pl.pallas_call(
        kernel,
        in_specs=[_VMEM] * 12,
        out_specs=_VMEM,
        out_shape=jax.ShapeDtypeStruct((Tt, B, H), jnp.float32),
    )(src_input.reshape(Ts * B, 1).astype(jnp.int32),
      trg_input.reshape(Tt * B, 1).astype(jnp.int32),
      kp["a_enc"], kp["b_enc"], kp["wh_enc"],
      kp["a_dec"], kp["b_dec"], kp["wfeed"], kp["whh_dec"],
      kp["win"], kp["wout_c"], kp["wout_h"])


# ---------------------------------------------------------------------------
# Parameters: PyTorch-layout init + packing into the kernel layout
# ---------------------------------------------------------------------------
def init_torch_params(key, cfg):
    """Parameters with the same shapes/layout as the PyTorch module (gate order i, f, g, o)."""
    E = cfg["word_emb_size"]
    H = cfg["rnn_hidden_size"]
    Hd = H // (2 if cfg["bidirectional"] else 1)
    Vs, Vt = cfg["src_vocab_size"], cfg["trg_vocab_size"]
    ks = iter(jax.random.split(key, 24))

    def w(shape, scale=0.1):
        return (scale * jax.random.normal(next(ks), shape)).astype(jnp.float32)

    p = {}
    p["emb_src"] = w((Vs, E)).at[PAD].set(0.0)                   # padding_idx row = 0
    p["emb_trg"] = w((Vt, E)).at[PAD].set(0.0)
    for d in ("f", "b"):                                         # nn.LSTM, bidirectional, 1 layer
        p[f"enc_w_ih_{d}"] = w((4 * Hd, E))
        p[f"enc_w_hh_{d}"] = w((4 * Hd, Hd))
        p[f"enc_b_ih_{d}"] = w((4 * Hd,))
        p[f"enc_b_hh_{d}"] = w((4 * Hd,))
    p["dec_w_ih"] = w((4 * H, E + H))                            # nn.LSTMCell(E + H, H) (input feed)
    p["dec_w_hh"] = w((4 * H, H))
    p["dec_b_ih"] = w((4 * H,))
    p["dec_b_hh"] = w((4 * H,))
    p["attn_w_in"] = w((H, H))                                   # GlobalAttention.linear_in.weight
    p["attn_w_out"] = w((H, 2 * H))                              # GlobalAttention.linear_out.weight
    p["gen_w"] = w((Vt, H))                                      # generator (unused by forward)
    p["gen_b"] = w((Vt,))
    return p


def pack_params(p, cfg):
    """Pack PyTorch-layout params into the fused-kernel layout (done once, outside the kernel)."""
    E = cfg["word_emb_size"]
    H = cfg["rnn_hidden_size"]
    Hd = H // (2 if cfg["bidirectional"] else 1)
    bf16 = jnp.bfloat16

    def reorder_ifog(w_t, q):
        # (in, 4q) columns in torch gate order (i, f, g, o) -> kernel order (i, f, o, g)
        i, f, g, o = (w_t[:, 0:q], w_t[:, q:2 * q], w_t[:, 2 * q:3 * q], w_t[:, 3 * q:4 * q])
        return jnp.concatenate([i, f, o, g], axis=1)

    def scatter_dir(w, d):
        # (in, 4*Hd) kernel gate order -> (in, 8*Hd): this direction's gate g lands at column
        # block (2g + d)*Hd, zeros in the other direction's blocks.
        inp = w.shape[0]
        w4 = w.reshape(inp, 4, 1, Hd)
        z = jnp.zeros_like(w4)
        pair = jnp.concatenate([w4, z] if d == 0 else [z, w4], axis=2)
        return pair.reshape(inp, 8 * Hd)

    kp = {}

    # encoder: fold the source embedding table into the (direction-stacked) gate input projection
    wx_f = reorder_ifog(p["enc_w_ih_f"].T, Hd)                              # (E, 4Hd)
    wx_b = reorder_ifog(p["enc_w_ih_b"].T, Hd)
    a_f = scatter_dir(p["emb_src"] @ wx_f, 0)                               # (Vs, 8Hd)
    a_b = scatter_dir(p["emb_src"] @ wx_b, 1)
    kp["a_enc"] = jnp.concatenate([a_f, a_b], axis=1).astype(bf16)          # (Vs, 16Hd)

    wh_f = scatter_dir(reorder_ifog(p["enc_w_hh_f"].T, Hd), 0)              # (Hd, 8Hd)
    wh_b = scatter_dir(reorder_ifog(p["enc_w_hh_b"].T, Hd), 1)
    kp["wh_enc"] = jnp.concatenate([wh_f, wh_b], axis=0).astype(bf16)       # (2Hd, 8Hd)

    be_f = scatter_dir(reorder_ifog((p["enc_b_ih_f"] + p["enc_b_hh_f"])[None, :], Hd), 0)
    be_b = scatter_dir(reorder_ifog((p["enc_b_ih_b"] + p["enc_b_hh_b"])[None, :], Hd), 1)
    kp["b_enc"] = (be_f + be_b).astype(jnp.float32)                         # (1, 8Hd)

    # decoder LSTMCell: split W_ih into embedding part and input-feed part (no in-loop concat)
    w_ih = p["dec_w_ih"]                                                    # (4H, E + H)
    wx_d = reorder_ifog(w_ih[:, :E].T, H)                                   # (E, 4H)
    kp["a_dec"] = (p["emb_trg"] @ wx_d).astype(bf16)                        # (Vt, 4H)
    kp["wfeed"] = reorder_ifog(w_ih[:, E:].T, H).astype(bf16)               # (H, 4H)
    kp["whh_dec"] = reorder_ifog(p["dec_w_hh"].T, H).astype(bf16)           # (H, 4H)
    kp["b_dec"] = reorder_ifog((p["dec_b_ih"] + p["dec_b_hh"])[None, :], H).astype(jnp.float32)

    # GlobalAttention (bias-free): linear_out split into [weighted_context | hidden] halves
    kp["win"] = p["attn_w_in"].T.astype(bf16)                               # (H, H)
    kp["wout_c"] = p["attn_w_out"][:, :H].T.astype(bf16)                    # (H, H)
    kp["wout_h"] = p["attn_w_out"][:, H:].T.astype(bf16)                    # (H, H)
    return kp


if __name__ == "__main__":
    key = jax.random.PRNGKey(0)
    pkey, skey, tkey = jax.random.split(key, 3)

    torch_params = init_torch_params(pkey, CFG)
    kparams = pack_params(torch_params, CFG)

    src_len, trg_len, batch = 8, 8, 4
    src_input = jax.random.randint(skey, (src_len, batch), 1, CFG["src_vocab_size"], dtype=jnp.int32)
    trg_input = jax.random.randint(tkey, (trg_len, batch), 1, CFG["trg_vocab_size"], dtype=jnp.int32)

    fwd = jax.jit(functools.partial(seq2seq_forward, cfg=CFG))
    dec_output = fwd(kparams, src_input, trg_input)
    jax.block_until_ready(dec_output)

    assert dec_output.shape == (trg_len, batch, CFG["rnn_hidden_size"])
    assert bool(jnp.all(jnp.isfinite(dec_output)))
    print("KERNEL_OK")
</pallas_src>

<mosaic_0001>
module attributes {stable_mosaic.version = 11 : i64} {
  func.func @seq2seq_kernel(%arg0: memref<32x1xi32, #tpu.memory_space<vmem>>, %arg1: memref<32x1xi32, #tpu.memory_space<vmem>>, %arg2: memref<50x256xbf16, #tpu.memory_space<vmem>>, %arg3: memref<1x128xf32, #tpu.memory_space<vmem>>, %arg4: memref<32x128xbf16, #tpu.memory_space<vmem>>, %arg5: memref<50x128xbf16, #tpu.memory_space<vmem>>, %arg6: memref<1x128xf32, #tpu.memory_space<vmem>>, %arg7: memref<32x128xbf16, #tpu.memory_space<vmem>>, %arg8: memref<32x128xbf16, #tpu.memory_space<vmem>>, %arg9: memref<32x32xbf16, #tpu.memory_space<vmem>>, %arg10: memref<32x32xbf16, #tpu.memory_space<vmem>>, %arg11: memref<32x32xbf16, #tpu.memory_space<vmem>>, %arg12: memref<8x4x32xf32, #tpu.memory_space<vmem>>) attributes {dimension_semantics = [], scalar_prefetch = 0 : i64, scratch_operands = 0 : i64, tpu.core_type = #tpu.core_type<tc>} {
    %c0 = arith.constant 0 : index
    %c0_0 = arith.constant 0 : index
    %0 = vector.load %arg0[%c0, %c0_0] : memref<32x1xi32, #tpu.memory_space<vmem>>, vector<32x1xi32>
    %1 = tpu.iota {dimensions = array<i32: 1>} : vector<32x50xi32>
    %2 = vector.broadcast %0 : vector<32x1xi32> to vector<32x50xi32>
    %3 = arith.cmpi eq, %1, %2 : vector<32x50xi32>
    %4 = arith.extui %3 : vector<32x50xi1> to vector<32x50xi32>
    %5 = arith.sitofp %4 : vector<32x50xi32> to vector<32x50xf32>
    %6 = arith.truncf %5 : vector<32x50xf32> to vector<32x50xbf16>
    %c0_1 = arith.constant 0 : index
    %c0_2 = arith.constant 0 : index
    %7 = vector.load %arg2[%c0_1, %c0_2] : memref<50x256xbf16, #tpu.memory_space<vmem>>, vector<50x256xbf16>
    %cst = arith.constant dense<0.000000e+00> : vector<32x256xf32>
    %8 = tpu.matmul %6, %7, %cst {dimension_numbers = #tpu.dot_dimension_numbers<[1], [0], [0], [1], [0, 0, 1, 1], [], []>} : vector<32x50xbf16>, vector<50x256xbf16>, vector<32x256xf32> -> vector<32x256xf32>
    %9 = vector.extract_strided_slice %8 {offsets = [0, 0], sizes = [32, 128], strides = [1, 1]} : vector<32x256xf32> to vector<32x128xf32>
    %c0_3 = arith.constant 0 : index
    %c0_4 = arith.constant 0 : index
    %10 = vector.load %arg3[%c0_3, %c0_4] : memref<1x128xf32, #tpu.memory_space<vmem>>, vector<1x128xf32>
    %11 = vector.broadcast %10 : vector<1x128xf32> to vector<32x128xf32>
    %12 = arith.addf %9, %11 : vector<32x128xf32>
    %13 = vector.extract_strided_slice %8 {offsets = [0, 128], sizes = [32, 128], strides = [1, 1]} : vector<32x256xf32> to vector<32x128xf32>
    %c0_5 = arith.constant 0 : index
    %c0_6 = arith.constant 0 : index
    %14 = vector.load %arg4[%c0_5, %c0_6] : memref<32x128xbf16, #tpu.memory_space<vmem>>, vector<32x128xbf16>
    %cst_7 = arith.constant 0.000000e+00 : f32
    %15 = vector.broadcast %cst_7 : f32 to vector<4x32xf32>
    %cst_8 = arith.constant 0.000000e+00 : f32
    %16 = vector.broadcast %cst_8 : f32 to vector<4x32xf32>
    %17 = vector.extract_strided_slice %12 {offsets = [0, 0], sizes = [4, 128], strides = [1, 1]} : vector<32x128xf32> to vector<4x128xf32>
    %18 = vector.extract_strided_slice %13 {offsets = [28, 0], sizes = [4, 128], strides = [1, 1]} : vector<32x128xf32> to vector<4x128xf32>
    %19 = arith.addf %17, %18 : vector<4x128xf32>
    %20 = arith.truncf %15 : vector<4x32xf32> to vector<4x32xbf16>
    %cst_9 = arith.constant dense<0.000000e+00> : vector<4x128xf32>
    %21 = tpu.matmul %20, %14, %cst_9 {dimension_numbers = #tpu.dot_dimension_numbers<[1], [0], [0], [1], [0, 0, 1, 1], [], []>} : vector<4x32xbf16>, vector<32x128xbf16>, vector<4x128xf32> -> vector<4x128xf32>
    %22 = arith.addf %19, %21 : vector<4x128xf32>
    %23 = arith.negf %22 : vector<4x128xf32>
    %24 = math.exp %23 : vector<4x128xf32>
    %cst_10 = arith.constant 1.000000e+00 : f32
    %25 = vector.broadcast %cst_10 : f32 to vector<4x128xf32>
    %26 = arith.addf %25, %24 : vector<4x128xf32>
    %27 = arith.divf %25, %26 : vector<4x128xf32>
    %28 = vector.extract_strided_slice %27 {offsets = [0, 0], sizes = [4, 32], strides = [1, 1]} : vector<4x128xf32> to vector<4x32xf32>
    %29 = vector.extract_strided_slice %27 {offsets = [0, 32], sizes = [4, 32], strides = [1, 1]} : vector<4x128xf32> to vector<4x32xf32>
    %30 = vector.extract_strided_slice %27 {offsets = [0, 64], sizes = [4, 32], strides = [1, 1]} : vector<4x128xf32> to vector<4x32xf32>
    %31 = vector.extract_strided_slice %22 {offsets = [0, 96], sizes = [4, 32], strides = [1, 1]} : vector<4x128xf32> to vector<4x32xf32>
    %32 = math.tanh %31 : vector<4x32xf32>
    %33 = arith.mulf %29, %16 : vector<4x32xf32>
    %34 = arith.mulf %28, %32 : vector<4x32xf32>
    %35 = arith.addf %33, %34 : vector<4x32xf32>
    %36 = math.tanh %35 : vector<4x32xf32>
    %37 = arith.mulf %30, %36 : vector<4x32xf32>
    %38 = vector.extract_strided_slice %37 {offsets = [0, 0], sizes = [4, 16], strides = [1, 1]} : vector<4x32xf32> to vector<4x16xf32>
    %39 = vector.extract_strided_slice %37 {offsets = [0, 16], sizes = [4, 16], strides = [1, 1]} : vector<4x32xf32> to vector<4x16xf32>
    %40 = vector.extract_strided_slice %12 {offsets = [4, 0], sizes = [4, 128], strides = [1, 1]} : vector<32x128xf32> to vector<4x128xf32>
    %41 = vector.extract_strided_slice %13 {offsets = [24, 0], sizes = [4, 128], strides = [1, 1]} : vector<32x128xf32> to vector<4x128xf32>
    %42 = arith.addf %40, %41 : vector<4x128xf32>
    %43 = arith.truncf %37 : vector<4x32xf32> to vector<4x32xbf16>
    %cst_11 = arith.constant dense<0.000000e+00> : vector<4x128xf32>
    %44 = tpu.matmul %43, %14, %cst_11 {dimension_numbers = #tpu.dot_dimension_numbers<[1], [0], [0], [1], [0, 0, 1, 1], [], []>} : vector<4x32xbf16>, vector<32x128xbf16>, vector<4x128xf32> -> vector<4x128xf32>
    %45 = arith.addf %42, %44 : vector<4x128xf32>
    %46 = arith.negf %45 : vector<4x128xf32>
    %47 = math.exp %46 : vector<4x128xf32>
    %cst_12 = arith.constant 1.000000e+00 : f32
    %48 = vector.broadcast %cst_12 : f32 to vector<4x128xf32>
    %49 = arith.addf %48, %47 : vector<4x128xf32>
    %50 = arith.divf %48, %49 : vector<4x128xf32>
    %51 = vector.extract_strided_slice %50 {offsets = [0, 0], sizes = [4, 32], strides = [1, 1]} : vector<4x128xf32> to vector<4x32xf32>
    %52 = vector.extract_strided_slice %50 {offsets = [0, 32], sizes = [4, 32], strides = [1, 1]} : vector<4x128xf32> to vector<4x32xf32>
    %53 = vector.extract_strided_slice %50 {offsets = [0, 64], sizes = [4, 32], strides = [1, 1]} : vector<4x128xf32> to vector<4x32xf32>
    %54 = vector.extract_strided_slice %45 {offsets = [0, 96], sizes = [4, 32], strides = [1, 1]} : vector<4x128xf32> to vector<4x32xf32>
    %55 = math.tanh %54 : vector<4x32xf32>
    %56 = arith.mulf %52, %35 : vector<4x32xf32>
    %57 = arith.mulf %51, %55 : vector<4x32xf32>
    %58 = arith.addf %56, %57 : vector<4x32xf32>
    %59 = math.tanh %58 : vector<4x32xf32>
    %60 = arith.mulf %53, %59 : vector<4x32xf32>
    %61 = vector.extract_strided_slice %60 {offsets = [0, 0], sizes = [4, 16], strides = [1, 1]} : vector<4x32xf32> to vector<4x16xf32>
    %62 = vector.extract_strided_slice %60 {offsets = [0, 16], sizes = [4, 16], strides = [1, 1]} : vector<4x32xf32> to vector<4x16xf32>
    %63 = vector.extract_strided_slice %12 {offsets = [8, 0], sizes = [4, 128], strides = [1, 1]} : vector<32x128xf32> to vector<4x128xf32>
    %64 = vector.extract_strided_slice %13 {offsets = [20, 0], sizes = [4, 128], strides = [1, 1]} : vector<32x128xf32> to vector<4x128xf32>
    %65 = arith.addf %63, %64 : vector<4x128xf32>
    %66 = arith.truncf %60 : vector<4x32xf32> to vector<4x32xbf16>
    %cst_13 = arith.constant dense<0.000000e+00> : vector<4x128xf32>
    %67 = tpu.matmul %66, %14, %cst_13 {dimension_numbers = #tpu.dot_dimension_numbers<[1], [0], [0], [1], [0, 0, 1, 1], [], []>} : vector<4x32xbf16>, vector<32x128xbf16>, vector<4x128xf32> -> vector<4x128xf32>
    %68 = arith.addf %65, %67 : vector<4x128xf32>
    %69 = arith.negf %68 : vector<4x128xf32>
    %70 = math.exp %69 : vector<4x128xf32>
    %cst_14 = arith.constant 1.000000e+00 : f32
    %71 = vector.broadcast %cst_14 : f32 to vector<4x128xf32>
    %72 = arith.addf %71, %70 : vector<4x128xf32>
    %73 = arith.divf %71, %72 : vector<4x128xf32>
    %74 = vector.extract_strided_slice %73 {offsets = [0, 0], sizes = [4, 32], strides = [1, 1]} : vector<4x128xf32> to vector<4x32xf32>
    %75 = vector.extract_strided_slice %73 {offsets = [0, 32], sizes = [4, 32], strides = [1, 1]} : vector<4x128xf32> to vector<4x32xf32>
    %76 = vector.extract_strided_slice %73 {offsets = [0, 64], sizes = [4, 32], strides = [1, 1]} : vector<4x128xf32> to vector<4x32xf32>
    %77 = vector.extract_strided_slice %68 {offsets = [0, 96], sizes = [4, 32], strides = [1, 1]} : vector<4x128xf32> to vector<4x32xf32>
    %78 = math.tanh %77 : vector<4x32xf32>
    %79 = arith.mulf %75, %58 : vector<4x32xf32>
    %80 = arith.mulf %74, %78 : vector<4x32xf32>
    %81 = arith.addf %79, %80 : vector<4x32xf32>
    %82 = math.tanh %81 : vector<4x32xf32>
    %83 = arith.mulf %76, %82 : vector<4x32xf32>
    %84 = vector.extract_strided_slice %83 {offsets = [0, 0], sizes = [4, 16], strides = [1, 1]} : vector<4x32xf32> to vector<4x16xf32>
    %85 = vector.extract_strided_slice %83 {offsets = [0, 16], sizes = [4, 16], strides = [1, 1]} : vector<4x32xf32> to vector<4x16xf32>
    %86 = vector.extract_strided_slice %12 {offsets = [12, 0], sizes = [4, 128], strides = [1, 1]} : vector<32x128xf32> to vector<4x128xf32>
    %87 = vector.extract_strided_slice %13 {offsets = [16, 0], sizes = [4, 128], strides = [1, 1]} : vector<32x128xf32> to vector<4x128xf32>
    %88 = arith.addf %86, %87 : vector<4x128xf32>
    %89 = arith.truncf %83 : vector<4x32xf32> to vector<4x32xbf16>
    %cst_15 = arith.constant dense<0.000000e+00> : vector<4x128xf32>
    %90 = tpu.matmul %89, %14, %cst_15 {dimension_numbers = #tpu.dot_dimension_numbers<[1], [0], [0], [1], [0, 0, 1, 1], [], []>} : vector<4x32xbf16>, vector<32x128xbf16>, vector<4x128xf32> -> vector<4x128xf32>
    %91 = arith.addf %88, %90 : vector<4x128xf32>
    %92 = arith.negf %91 : vector<4x128xf32>
    %93 = math.exp %92 : vector<4x128xf32>
    %cst_16 = arith.constant 1.000000e+00 : f32
    %94 = vector.broadcast %cst_16 : f32 to vector<4x128xf32>
    %95 = arith.addf %94, %93 : vector<4x128xf32>
    %96 = arith.divf %94, %95 : vector<4x128xf32>
    %97 = vector.extract_strided_slice %96 {offsets = [0, 0], sizes = [4, 32], strides = [1, 1]} : vector<4x128xf32> to vector<4x32xf32>
    %98 = vector.extract_strided_slice %96 {offsets = [0, 32], sizes = [4, 32], strides = [1, 1]} : vector<4x128xf32> to vector<4x32xf32>
    %99 = vector.extract_strided_slice %96 {offsets = [0, 64], sizes = [4, 32], strides = [1, 1]} : vector<4x128xf32> to vector<4x32xf32>
    %100 = vector.extract_strided_slice %91 {offsets = [0, 96], sizes = [4, 32], strides = [1, 1]} : vector<4x128xf32> to vector<4x32xf32>
    %101 = math.tanh %100 : vector<4x32xf32>
    %102 = arith.mulf %98, %81 : vector<4x32xf32>
    %103 = arith.mulf %97, %101 : vector<4x32xf32>
    %104 = arith.addf %102, %103 : vector<4x32xf32>
    %105 = math.tanh %104 : vector<4x32xf32>
    %106 = arith.mulf %99, %105 : vector<4x32xf32>
    %107 = vector.extract_strided_slice %106 {offsets = [0, 0], sizes = [4, 16], strides = [1, 1]} : vector<4x32xf32> to vector<4x16xf32>
    %108 = vector.extract_strided_slice %106 {offsets = [0, 16], sizes = [4, 16], strides = [1, 1]} : vector<4x32xf32> to vector<4x16xf32>
    %109 = vector.extract_strided_slice %12 {offsets = [16, 0], sizes = [4, 128], strides = [1, 1]} : vector<32x128xf32> to vector<4x128xf32>
    %110 = vector.extract_strided_slice %13 {offsets = [12, 0], sizes = [4, 128], strides = [1, 1]} : vector<32x128xf32> to vector<4x128xf32>
    %111 = arith.addf %109, %110 : vector<4x128xf32>
    %112 = arith.truncf %106 : vector<4x32xf32> to vector<4x32xbf16>
    %cst_17 = arith.constant dense<0.000000e+00> : vector<4x128xf32>
    %113 = tpu.matmul %112, %14, %cst_17 {dimension_numbers = #tpu.dot_dimension_numbers<[1], [0], [0], [1], [0, 0, 1, 1], [], []>} : vector<4x32xbf16>, vector<32x128xbf16>, vector<4x128xf32> -> vector<4x128xf32>
    %114 = arith.addf %111, %113 : vector<4x128xf32>
    %115 = arith.negf %114 : vector<4x128xf32>
    %116 = math.exp %115 : vector<4x128xf32>
    %cst_18 = arith.constant 1.000000e+00 : f32
    %117 = vector.broadcast %cst_18 : f32 to vector<4x128xf32>
    %118 = arith.addf %117, %116 : vector<4x128xf32>
    %119 = arith.divf %117, %118 : vector<4x128xf32>
    %120 = vector.extract_strided_slice %119 {offsets = [0, 0], sizes = [4, 32], strides = [1, 1]} : vector<4x128xf32> to vector<4x32xf32>
    %121 = vector.extract_strided_slice %119 {offsets = [0, 32], sizes = [4, 32], strides = [1, 1]} : vector<4x128xf32> to vector<4x32xf32>
    %122 = vector.extract_strided_slice %119 {offsets = [0, 64], sizes = [4, 32], strides = [1, 1]} : vector<4x128xf32> to vector<4x32xf32>
    %123 = vector.extract_strided_slice %114 {offsets = [0, 96], sizes = [4, 32], strides = [1, 1]} : vector<4x128xf32> to vector<4x32xf32>
    %124 = math.tanh %123 : vector<4x32xf32>
    %125 = arith.mulf %121, %104 : vector<4x32xf32>
    %126 = arith.mulf %120, %124 : vector<4x32xf32>
    %127 = arith.addf %125, %126 : vector<4x32xf32>
    %128 = math.tanh %127 : vector<4x32xf32>
    %129 = arith.mulf %122, %128 : vector<4x32xf32>
    %130 = vector.extract_strided_slice %129 {offsets = [0, 0], sizes = [4, 16], strides = [1, 1]} : vector<4x32xf32> to vector<4x16xf32>
    %131 = vector.extract_strided_slice %129 {offsets = [0, 16], sizes = [4, 16], strides = [1, 1]} : vector<4x32xf32> to vector<4x16xf32>
    %132 = vector.extract_strided_slice %12 {offsets = [20, 0], sizes = [4, 128], strides = [1, 1]} : vector<32x128xf32> to vector<4x128xf32>
    %133 = vector.extract_strided_slice %13 {offsets = [8, 0], sizes = [4, 128], strides = [1, 1]} : vector<32x128xf32> to vector<4x128xf32>
    %134 = arith.addf %132, %133 : vector<4x128xf32>
    %135 = arith.truncf %129 : vector<4x32xf32> to vector<4x32xbf16>
    %cst_19 = arith.constant dense<0.000000e+00> : vector<4x128xf32>
    %136 = tpu.matmul %135, %14, %cst_19 {dimension_numbers = #tpu.dot_dimension_numbers<[1], [0], [0], [1], [0, 0, 1, 1], [], []>} : vector<4x32xbf16>, vector<32x128xbf16>, vector<4x128xf32> -> vector<4x128xf32>
    %137 = arith.addf %134, %136 : vector<4x128xf32>
    %138 = arith.negf %137 : vector<4x128xf32>
    %139 = math.exp %138 : vector<4x128xf32>
    %cst_20 = arith.constant 1.000000e+00 : f32
    %140 = vector.broadcast %cst_20 : f32 to vector<4x128xf32>
    %141 = arith.addf %140, %139 : vector<4x128xf32>
    %142 = arith.divf %140, %141 : vector<4x128xf32>
    %143 = vector.extract_strided_slice %142 {offsets = [0, 0], sizes = [4, 32], strides = [1, 1]} : vector<4x128xf32> to vector<4x32xf32>
    %144 = vector.extract_strided_slice %142 {offsets = [0, 32], sizes = [4, 32], strides = [1, 1]} : vector<4x128xf32> to vector<4x32xf32>
    %145 = vector.extract_strided_slice %142 {offsets = [0, 64], sizes = [4, 32], strides = [1, 1]} : vector<4x128xf32> to vector<4x32xf32>
    %146 = vector.extract_strided_slice %137 {offsets = [0, 96], sizes = [4, 32], strides = [1, 1]} : vector<4x128xf32> to vector<4x32xf32>
    %147 = math.tanh %146 : vector<4x32xf32>
    %148 = arith.mulf %144, %127 : vector<4x32xf32>
    %149 = arith.mulf %143, %147 : vector<4x32xf32>
    %150 = arith.addf %148, %149 : vector<4x32xf32>
    %151 = math.tanh %150 : vector<4x32xf32>
    %152 = arith.mulf %145, %151 : vector<4x32xf32>
    %153 = vector.extract_strided_slice %152 {offsets = [0, 0], sizes = [4, 16], strides = [1, 1]} : vector<4x32xf32> to vector<4x16xf32>
    %154 = vector.extract_strided_slice %152 {offsets = [0, 16], sizes = [4, 16], strides = [1, 1]} : vector<4x32xf32> to vector<4x16xf32>
    %155 = vector.extract_strided_slice %12 {offsets = [24, 0], sizes = [4, 128], strides = [1, 1]} : vector<32x128xf32> to vector<4x128xf32>
    %156 = vector.extract_strided_slice %13 {offsets = [4, 0], sizes = [4, 128], strides = [1, 1]} : vector<32x128xf32> to vector<4x128xf32>
    %157 = arith.addf %155, %156 : vector<4x128xf32>
    %158 = arith.truncf %152 : vector<4x32xf32> to vector<4x32xbf16>
    %cst_21 = arith.constant dense<0.000000e+00> : vector<4x128xf32>
    %159 = tpu.matmul %158, %14, %cst_21 {dimension_numbers = #tpu.dot_dimension_numbers<[1], [0], [0], [1], [0, 0, 1, 1], [], []>} : vector<4x32xbf16>, vector<32x128xbf16>, vector<4x128xf32> -> vector<4x128xf32>
    %160 = arith.addf %157, %159 : vector<4x128xf32>
    %161 = arith.negf %160 : vector<4x128xf32>
    %162 = math.exp %161 : vector<4x128xf32>
    %cst_22 = arith.constant 1.000000e+00 : f32
    %163 = vector.broadcast %cst_22 : f32 to vector<4x128xf32>
    %164 = arith.addf %163, %162 : vector<4x128xf32>
    %165 = arith.divf %163, %164 : vector<4x128xf32>
    %166 = vector.extract_strided_slice %165 {offsets = [0, 0], sizes = [4, 32], strides = [1, 1]} : vector<4x128xf32> to vector<4x32xf32>
    %167 = vector.extract_strided_slice %165 {offsets = [0, 32], sizes = [4, 32], strides = [1, 1]} : vector<4x128xf32> to vector<4x32xf32>
    %168 = vector.extract_strided_slice %165 {offsets = [0, 64], sizes = [4, 32], strides = [1, 1]} : vector<4x128xf32> to vector<4x32xf32>
    %169 = vector.extract_strided_slice %160 {offsets = [0, 96], sizes = [4, 32], strides = [1, 1]} : vector<4x128xf32> to vector<4x32xf32>
    %170 = math.tanh %169 : vector<4x32xf32>
    %171 = arith.mulf %167, %150 : vector<4x32xf32>
    %172 = arith.mulf %166, %170 : vector<4x32xf32>
    %173 = arith.addf %171, %172 : vector<4x32xf32>
    %174 = math.tanh %173 : vector<4x32xf32>
    %175 = arith.mulf %168, %174 : vector<4x32xf32>
    %176 = vector.extract_strided_slice %175 {offsets = [0, 0], sizes = [4, 16], strides = [1, 1]} : vector<4x32xf32> to vector<4x16xf32>
    %177 = vector.extract_strided_slice %175 {offsets = [0, 16], sizes = [4, 16], strides = [1, 1]} : vector<4x32xf32> to vector<4x16xf32>
    %178 = vector.extract_strided_slice %12 {offsets = [28, 0], sizes = [4, 128], strides = [1, 1]} : vector<32x128xf32> to vector<4x128xf32>
    %179 = vector.extract_strided_slice %13 {offsets = [0, 0], sizes = [4, 128], strides = [1, 1]} : vector<32x128xf32> to vector<4x128xf32>
    %180 = arith.addf %178, %179 : vector<4x128xf32>
    %181 = arith.truncf %175 : vector<4x32xf32> to vector<4x32xbf16>
    %cst_23 = arith.constant dense<0.000000e+00> : vector<4x128xf32>
    %182 = tpu.matmul %181, %14, %cst_23 {dimension_numbers = #tpu.dot_dimension_numbers<[1], [0], [0], [1], [0, 0, 1, 1], [], []>} : vector<4x32xbf16>, vector<32x128xbf16>, vector<4x128xf32> -> vector<4x128xf32>
    %183 = arith.addf %180, %182 : vector<4x128xf32>
    %184 = arith.negf %183 : vector<4x128xf32>
    %185 = math.exp %184 : vector<4x128xf32>
    %cst_24 = arith.constant 1.000000e+00 : f32
    %186 = vector.broadcast %cst_24 : f32 to vector<4x128xf32>
    %187 = arith.addf %186, %185 : vector<4x128xf32>
    %188 = arith.divf %186, %187 : vector<4x128xf32>
    %189 = vector.extract_strided_slice %188 {offsets = [0, 0], sizes = [4, 32], strides = [1, 1]} : vector<4x128xf32> to vector<4x32xf32>
    %190 = vector.extract_strided_slice %188 {offsets = [0, 32], sizes = [4, 32], strides = [1, 1]} : vector<4x128xf32> to vector<4x32xf32>
    %191 = vector.extract_strided_slice %188 {offsets = [0, 64], sizes = [4, 32], strides = [1, 1]} : vector<4x128xf32> to vector<4x32xf32>
    %192 = vector.extract_strided_slice %183 {offsets = [0, 96], sizes = [4, 32], strides = [1, 1]} : vector<4x128xf32> to vector<4x32xf32>
    %193 = math.tanh %192 : vector<4x32xf32>
    %194 = arith.mulf %190, %173 : vector<4x32xf32>
    %195 = arith.mulf %189, %193 : vector<4x32xf32>
    %196 = arith.addf %194, %195 : vector<4x32xf32>
    %197 = math.tanh %196 : vector<4x32xf32>
    %198 = arith.mulf %191, %197 : vector<4x32xf32>
    %199 = vector.extract_strided_slice %198 {offsets = [0, 0], sizes = [4, 16], strides = [1, 1]} : vector<4x32xf32> to vector<4x16xf32>
    %200 = vector.extract_strided_slice %198 {offsets = [0, 16], sizes = [4, 16], strides = [1, 1]} : vector<4x32xf32> to vector<4x16xf32>
    %201 = vector.shape_cast %38 : vector<4x16xf32> to vector<4x1x16xf32>
    %202 = vector.shape_cast %61 : vector<4x16xf32> to vector<4x1x16xf32>
    %203 = vector.shape_cast %84 : vector<4x16xf32> to vector<4x1x16xf32>
    %204 = vector.shape_cast %107 : vector<4x16xf32> to vector<4x1x16xf32>
    %205 = vector.shape_cast %130 : vector<4x16xf32> to vector<4x1x16xf32>
    %206 = vector.shape_cast %153 : vector<4x16xf32> to vector<4x1x16xf32>
    %207 = vector.shape_cast %176 : vector<4x16xf32> to vector<4x1x16xf32>
    %208 = vector.shape_cast %199 : vector<4x16xf32> to vector<4x1x16xf32>
    %209 = tpu.concatenate %201, %202, %203, %204, %205, %206, %207, %208 in 1 : vector<4x1x16xf32>, vector<4x1x16xf32>, vector<4x1x16xf32>, vector<4x1x16xf32>, vector<4x1x16xf32>, vector<4x1x16xf32>, vector<4x1x16xf32>, vector<4x1x16xf32> -> vector<4x8x16xf32>
    %210 = vector.shape_cast %200 : vector<4x16xf32> to vector<4x1x16xf32>
    %211 = vector.shape_cast %177 : vector<4x16xf32> to vector<4x1x16xf32>
    %212 = vector.shape_cast %154 : vector<4x16xf32> to vector<4x1x16xf32>
    %213 = vector.shape_cast %131 : vector<4x16xf32> to vector<4x1x16xf32>
    %214 = vector.shape_cast %108 : vector<4x16xf32> to vector<4x1x16xf32>
    %215 = vector.shape_cast %85 : vector<4x16xf32> to vector<4x1x16xf32>
    %216 = vector.shape_cast %62 : vector<4x16xf32> to vector<4x1x16xf32>
    %217 = vector.shape_cast %39 : vector<4x16xf32> to vector<4x1x16xf32>
    %218 = tpu.concatenate %210, %211, %212, %213, %214, %215, %216, %217 in 1 : vector<4x1x16xf32>, vector<4x1x16xf32>, vector<4x1x16xf32>, vector<4x1x16xf32>, vector<4x1x16xf32>, vector<4x1x16xf32>, vector<4x1x16xf32>, vector<4x1x16xf32> -> vector<4x8x16xf32>
    %219 = tpu.concatenate %209, %218 in 2 : vector<4x8x16xf32>, vector<4x8x16xf32> -> vector<4x8x32xf32>
    %220 = arith.truncf %219 : vector<4x8x32xf32> to vector<4x8x32xbf16>
    %cst_25 = arith.constant 0.000000e+00 : f32
    %221 = vector.broadcast %cst_25 : f32 to vector<4x32xf32>
    %c0_26 = arith.constant 0 : index
    %c0_27 = arith.constant 0 : index
    %222 = vector.load %arg1[%c0_26, %c0_27] : memref<32x1xi32, #tpu.memory_space<vmem>>, vector<32x1xi32>
    %223 = tpu.iota {dimensions = array<i32: 1>} : vector<32x50xi32>
    %224 = vector.broadcast %222 : vector<32x1xi32> to vector<32x50xi32>
    %225 = arith.cmpi eq, %223, %224 : vector<32x50xi32>
    %226 = arith.extui %225 : vector<32x50xi1> to vector<32x50xi32>
    %227 = arith.sitofp %226 : vector<32x50xi32> to vector<32x50xf32>
    %228 = arith.truncf %227 : vector<32x50xf32> to vector<32x50xbf16>
    %c0_28 = arith.constant 0 : index
    %c0_29 = arith.constant 0 : index
    %229 = vector.load %arg5[%c0_28, %c0_29] : memref<50x128xbf16, #tpu.memory_space<vmem>>, vector<50x128xbf16>
    %cst_30 = arith.constant dense<0.000000e+00> : vector<32x128xf32>
    %230 = tpu.matmul %228, %229, %cst_30 {dimension_numbers = #tpu.dot_dimension_numbers<[1], [0], [0], [1], [0, 0, 1, 1], [], []>} : vector<32x50xbf16>, vector<50x128xbf16>, vector<32x128xf32> -> vector<32x128xf32>
    %c0_31 = arith.constant 0 : index
    %c0_32 = arith.constant 0 : index
    %231 = vector.load %arg6[%c0_31, %c0_32] : memref<1x128xf32, #tpu.memory_space<vmem>>, vector<1x128xf32>
    %232 = vector.broadcast %231 : vector<1x128xf32> to vector<32x128xf32>
    %233 = arith.addf %230, %232 : vector<32x128xf32>
    %c0_33 = arith.constant 0 : index
    %c0_34 = arith.constant 0 : index
    %234 = vector.load %arg7[%c0_33, %c0_34] : memref<32x128xbf16, #tpu.memory_space<vmem>>, vector<32x128xbf16>
    %c0_35 = arith.constant 0 : index
    %c0_36 = arith.constant 0 : index
    %235 = vector.load %arg8[%c0_35, %c0_36] : memref<32x128xbf16, #tpu.memory_space<vmem>>, vector<32x128xbf16>
    %c0_37 = arith.constant 0 : index
    %c0_38 = arith.constant 0 : index
    %236 = vector.load %arg9[%c0_37, %c0_38] : memref<32x32xbf16, #tpu.memory_space<vmem>>, vector<32x32xbf16>
    %c0_39 = arith.constant 0 : index
    %c0_40 = arith.constant 0 : index
    %237 = vector.load %arg10[%c0_39, %c0_40] : memref<32x32xbf16, #tpu.memory_space<vmem>>, vector<32x32xbf16>
    %c0_41 = arith.constant 0 : index
    %c0_42 = arith.constant 0 : index
    %238 = vector.load %arg11[%c0_41, %c0_42] : memref<32x32xbf16, #tpu.memory_space<vmem>>, vector<32x32xbf16>
    %239 = vector.extract_strided_slice %233 {offsets = [0, 0], sizes = [4, 128], strides = [1, 1]} : vector<32x128xf32> to vector<4x128xf32>
    %240 = arith.truncf %221 : vector<4x32xf32> to vector<4x32xbf16>
    %cst_43 = arith.constant dense<0.000000e+00> : vector<4x128xf32>
    %241 = tpu.matmul %240, %234, %cst_43 {dimension_numbers = #tpu.dot_dimension_numbers<[1], [0], [0], [1], [0, 0, 1, 1], [], []>} : vector<4x32xbf16>, vector<32x128xbf16>, vector<4x128xf32> -> vector<4x128xf32>
    %242 = arith.addf %239, %241 : vector<4x128xf32>
    %243 = arith.truncf %198 : vector<4x32xf32> to vector<4x32xbf16>
    %cst_44 = arith.constant dense<0.000000e+00> : vector<4x128xf32>
    %244 = tpu.matmul %243, %235, %cst_44 {dimension_numbers = #tpu.dot_dimension_numbers<[1], [0], [0], [1], [0, 0, 1, 1], [], []>} : vector<4x32xbf16>, vector<32x128xbf16>, vector<4x128xf32> -> vector<4x128xf32>
    %245 = arith.addf %242, %244 : vector<4x128xf32>
    %246 = arith.negf %245 : vector<4x128xf32>
    %247 = math.exp %246 : vector<4x128xf32>
    %cst_45 = arith.constant 1.000000e+00 : f32
    %248 = vector.broadcast %cst_45 : f32 to vector<4x128xf32>
    %249 = arith.addf %248, %247 : vector<4x128xf32>
    %250 = arith.divf %248, %249 : vector<4x128xf32>
    %251 = vector.extract_strided_slice %250 {offsets = [0, 0], sizes = [4, 32], strides = [1, 1]} : vector<4x128xf32> to vector<4x32xf32>
    %252 = vector.extract_strided_slice %250 {offsets = [0, 32], sizes = [4, 32], strides = [1, 1]} : vector<4x128xf32> to vector<4x32xf32>
    %253 = vector.extract_strided_slice %250 {offsets = [0, 64], sizes = [4, 32], strides = [1, 1]} : vector<4x128xf32> to vector<4x32xf32>
    %254 = vector.extract_strided_slice %245 {offsets = [0, 96], sizes = [4, 32], strides = [1, 1]} : vector<4x128xf32> to vector<4x32xf32>
    %255 = math.tanh %254 : vector<4x32xf32>
    %256 = arith.mulf %252, %196 : vector<4x32xf32>
    %257 = arith.mulf %251, %255 : vector<4x32xf32>
    %258 = arith.addf %256, %257 : vector<4x32xf32>
    %259 = math.tanh %258 : vector<4x32xf32>
    %260 = arith.mulf %253, %259 : vector<4x32xf32>
    %261 = arith.truncf %260 : vector<4x32xf32> to vector<4x32xbf16>
    %cst_46 = arith.constant dense<0.000000e+00> : vector<4x32xf32>
    %262 = tpu.matmul %261, %236, %cst_46 {dimension_numbers = #tpu.dot_dimension_numbers<[1], [0], [0], [1], [0, 0, 1, 1], [], []>} : vector<4x32xbf16>, vector<32x32xbf16>, vector<4x32xf32> -> vector<4x32xf32>
    %263 = arith.truncf %262 : vector<4x32xf32> to vector<4x32xbf16>
    %264 = vector.shape_cast %263 : vector<4x32xbf16> to vector<4x1x32xbf16>
    "tpu.trace_start"() <{level = 10 : i32, message = "bqh,bsh->bqs"}> : () -> ()
    %cst_47 = arith.constant dense<0.000000e+00> : vector<4x1x8xf32>
    %265 = tpu.matmul %264, %220, %cst_47 {dimension_numbers = #tpu.dot_dimension_numbers<[2], [2], [1], [1], [0, 0, 0, 1, 1, 1], [0], [0]>} : vector<4x1x32xbf16>, vector<4x8x32xbf16>, vector<4x1x8xf32> -> vector<4x1x8xf32>
    "tpu.trace_stop"() : () -> ()
    %cst_48 = arith.constant dense<0xFF800000> : vector<4x1xf32>
    %266 = vector.multi_reduction <maximumf>, %265, %cst_48 [2] : vector<4x1x8xf32> to vector<4x1xf32>
    %267 = vector.shape_cast %266 : vector<4x1xf32> to vector<4x1x1xf32>
    %268 = vector.broadcast %267 : vector<4x1x1xf32> to vector<4x1x8xf32>
    %269 = arith.subf %265, %268 : vector<4x1x8xf32>
    %270 = math.exp %269 : vector<4x1x8xf32>
    %cst_49 = arith.constant dense<0.000000e+00> : vector<4x1xf32>
    %271 = vector.multi_reduction <add>, %270, %cst_49 [2] : vector<4x1x8xf32> to vector<4x1xf32>
    %272 = vector.shape_cast %271 : vector<4x1xf32> to vector<4x1x1xf32>
    %273 = tpu.reciprocal %272 {approx = true} : vector<4x1x1xf32> -> vector<4x1x1xf32>
    %274 = vector.broadcast %273 : vector<4x1x1xf32> to vector<4x1x8xf32>
    %275 = arith.mulf %270, %274 : vector<4x1x8xf32>
    %276 = arith.truncf %275 : vector<4x1x8xf32> to vector<4x1x8xbf16>
    "tpu.trace_start"() <{level = 10 : i32, message = "bqs,bsh->bqh"}> : () -> ()
    %cst_50 = arith.constant dense<0.000000e+00> : vector<4x1x32xf32>
    %277 = tpu.matmul %276, %220, %cst_50 {dimension_numbers = #tpu.dot_dimension_numbers<[2], [1], [1], [2], [0, 0, 0, 1, 1, 2], [0], [0]>} : vector<4x1x8xbf16>, vector<4x8x32xbf16>, vector<4x1x32xf32> -> vector<4x1x32xf32>
    "tpu.trace_stop"() : () -> ()
    %278 = vector.shape_cast %277 : vector<4x1x32xf32> to vector<4x32xf32>
    %279 = arith.truncf %278 : vector<4x32xf32> to vector<4x32xbf16>
    %cst_51 = arith.constant dense<0.000000e+00> : vector<4x32xf32>
    %280 = tpu.matmul %279, %237, %cst_51 {dimension_numbers = #tpu.dot_dimension_numbers<[1], [0], [0], [1], [0, 0, 1, 1], [], []>} : vector<4x32xbf16>, vector<32x32xbf16>, vector<4x32xf32> -> vector<4x32xf32>
    %cst_52 = arith.constant dense<0.000000e+00> : vector<4x32xf32>
    %281 = tpu.matmul %261, %238, %cst_52 {dimension_numbers = #tpu.dot_dimension_numbers<[1], [0], [0], [1], [0, 0, 1, 1], [], []>} : vector<4x32xbf16>, vector<32x32xbf16>, vector<4x32xf32> -> vector<4x32xf32>
    %282 = arith.addf %280, %281 : vector<4x32xf32>
    %283 = math.tanh %282 : vector<4x32xf32>
    %284 = vector.extract_strided_slice %233 {offsets = [4, 0], sizes = [4, 128], strides = [1, 1]} : vector<32x128xf32> to vector<4x128xf32>
    %285 = arith.truncf %283 : vector<4x32xf32> to vector<4x32xbf16>
    %cst_53 = arith.constant dense<0.000000e+00> : vector<4x128xf32>
    %286 = tpu.matmul %285, %234, %cst_53 {dimension_numbers = #tpu.dot_dimension_numbers<[1], [0], [0], [1], [0, 0, 1, 1], [], []>} : vector<4x32xbf16>, vector<32x128xbf16>, vector<4x128xf32> -> vector<4x128xf32>
    %287 = arith.addf %284, %286 : vector<4x128xf32>
    %288 = arith.truncf %260 : vector<4x32xf32> to vector<4x32xbf16>
    %cst_54 = arith.constant dense<0.000000e+00> : vector<4x128xf32>
    %289 = tpu.matmul %288, %235, %cst_54 {dimension_numbers = #tpu.dot_dimension_numbers<[1], [0], [0], [1], [0, 0, 1, 1], [], []>} : vector<4x32xbf16>, vector<32x128xbf16>, vector<4x128xf32> -> vector<4x128xf32>
    %290 = arith.addf %287, %289 : vector<4x128xf32>
    %291 = arith.negf %290 : vector<4x128xf32>
    %292 = math.exp %291 : vector<4x128xf32>
    %cst_55 = arith.constant 1.000000e+00 : f32
    %293 = vector.broadcast %cst_55 : f32 to vector<4x128xf32>
    %294 = arith.addf %293, %292 : vector<4x128xf32>
    %295 = arith.divf %293, %294 : vector<4x128xf32>
    %296 = vector.extract_strided_slice %295 {offsets = [0, 0], sizes = [4, 32], strides = [1, 1]} : vector<4x128xf32> to vector<4x32xf32>
    %297 = vector.extract_strided_slice %295 {offsets = [0, 32], sizes = [4, 32], strides = [1, 1]} : vector<4x128xf32> to vector<4x32xf32>
    %298 = vector.extract_strided_slice %295 {offsets = [0, 64], sizes = [4, 32], strides = [1, 1]} : vector<4x128xf32> to vector<4x32xf32>
    %299 = vector.extract_strided_slice %290 {offsets = [0, 96], sizes = [4, 32], strides = [1, 1]} : vector<4x128xf32> to vector<4x32xf32>
    %300 = math.tanh %299 : vector<4x32xf32>
    %301 = arith.mulf %297, %258 : vector<4x32xf32>
    %302 = arith.mulf %296, %300 : vector<4x32xf32>
    %303 = arith.addf %301, %302 : vector<4x32xf32>
    %304 = math.tanh %303 : vector<4x32xf32>
    %305 = arith.mulf %298, %304 : vector<4x32xf32>
    %306 = arith.truncf %305 : vector<4x32xf32> to vector<4x32xbf16>
    %cst_56 = arith.constant dense<0.000000e+00> : vector<4x32xf32>
    %307 = tpu.matmul %306, %236, %cst_56 {dimension_numbers = #tpu.dot_dimension_numbers<[1], [0], [0], [1], [0, 0, 1, 1], [], []>} : vector<4x32xbf16>, vector<32x32xbf16>, vector<4x32xf32> -> vector<4x32xf32>
    %308 = arith.truncf %307 : vector<4x32xf32> to vector<4x32xbf16>
    %309 = vector.shape_cast %308 : vector<4x32xbf16> to vector<4x1x32xbf16>
    "tpu.trace_start"() <{level = 10 : i32, message = "bqh,bsh->bqs"}> : () -> ()
    %cst_57 = arith.constant dense<0.000000e+00> : vector<4x1x8xf32>
    %310 = tpu.matmul %309, %220, %cst_57 {dimension_numbers = #tpu.dot_dimension_numbers<[2], [2], [1], [1], [0, 0, 0, 1, 1, 1], [0], [0]>} : vector<4x1x32xbf16>, vector<4x8x32xbf16>, vector<4x1x8xf32> -> vector<4x1x8xf32>
    "tpu.trace_stop"() : () -> ()
    %cst_58 = arith.constant dense<0xFF800000> : vector<4x1xf32>
    %311 = vector.multi_reduction <maximumf>, %310, %cst_58 [2] : vector<4x1x8xf32> to vector<4x1xf32>
    %312 = vector.shape_cast %311 : vector<4x1xf32> to vector<4x1x1xf32>
    %313 = vector.broadcast %312 : vector<4x1x1xf32> to vector<4x1x8xf32>
    %314 = arith.subf %310, %313 : vector<4x1x8xf32>
    %315 = math.exp %314 : vector<4x1x8xf32>
    %cst_59 = arith.constant dense<0.000000e+00> : vector<4x1xf32>
    %316 = vector.multi_reduction <add>, %315, %cst_59 [2] : vector<4x1x8xf32> to vector<4x1xf32>
    %317 = vector.shape_cast %316 : vector<4x1xf32> to vector<4x1x1xf32>
    %318 = tpu.reciprocal %317 {approx = true} : vector<4x1x1xf32> -> vector<4x1x1xf32>
    %319 = vector.broadcast %318 : vector<4x1x1xf32> to vector<4x1x8xf32>
    %320 = arith.mulf %315, %319 : vector<4x1x8xf32>
    %321 = arith.truncf %320 : vector<4x1x8xf32> to vector<4x1x8xbf16>
    "tpu.trace_start"() <{level = 10 : i32, message = "bqs,bsh->bqh"}> : () -> ()
    %cst_60 = arith.constant dense<0.000000e+00> : vector<4x1x32xf32>
    %322 = tpu.matmul %321, %220, %cst_60 {dimension_numbers = #tpu.dot_dimension_numbers<[2], [1], [1], [2], [0, 0, 0, 1, 1, 2], [0], [0]>} : vector<4x1x8xbf16>, vector<4x8x32xbf16>, vector<4x1x32xf32> -> vector<4x1x32xf32>
    "tpu.trace_stop"() : () -> ()
    %323 = vector.shape_cast %322 : vector<4x1x32xf32> to vector<4x32xf32>
    %324 = arith.truncf %323 : vector<4x32xf32> to vector<4x32xbf16>
    %cst_61 = arith.constant dense<0.000000e+00> : vector<4x32xf32>
    %325 = tpu.matmul %324, %237, %cst_61 {dimension_numbers = #tpu.dot_dimension_numbers<[1], [0], [0], [1], [0, 0, 1, 1], [], []>} : vector<4x32xbf16>, vector<32x32xbf16>, vector<4x32xf32> -> vector<4x32xf32>
    %cst_62 = arith.constant dense<0.000000e+00> : vector<4x32xf32>
    %326 = tpu.matmul %306, %238, %cst_62 {dimension_numbers = #tpu.dot_dimension_numbers<[1], [0], [0], [1], [0, 0, 1, 1], [], []>} : vector<4x32xbf16>, vector<32x32xbf16>, vector<4x32xf32> -> vector<4x32xf32>
    %327 = arith.addf %325, %326 : vector<4x32xf32>
    %328 = math.tanh %327 : vector<4x32xf32>
    %329 = vector.extract_strided_slice %233 {offsets = [8, 0], sizes = [4, 128], strides = [1, 1]} : vector<32x128xf32> to vector<4x128xf32>
    %330 = arith.truncf %328 : vector<4x32xf32> to vector<4x32xbf16>
    %cst_63 = arith.constant dense<0.000000e+00> : vector<4x128xf32>
    %331 = tpu.matmul %330, %234, %cst_63 {dimension_numbers = #tpu.dot_dimension_numbers<[1], [0], [0], [1], [0, 0, 1, 1], [], []>} : vector<4x32xbf16>, vector<32x128xbf16>, vector<4x128xf32> -> vector<4x128xf32>
    %332 = arith.addf %329, %331 : vector<4x128xf32>
    %333 = arith.truncf %305 : vector<4x32xf32> to vector<4x32xbf16>
    %cst_64 = arith.constant dense<0.000000e+00> : vector<4x128xf32>
    %334 = tpu.matmul %333, %235, %cst_64 {dimension_numbers = #tpu.dot_dimension_numbers<[1], [0], [0], [1], [0, 0, 1, 1], [], []>} : vector<4x32xbf16>, vector<32x128xbf16>, vector<4x128xf32> -> vector<4x128xf32>
    %335 = arith.addf %332, %334 : vector<4x128xf32>
    %336 = arith.negf %335 : vector<4x128xf32>
    %337 = math.exp %336 : vector<4x128xf32>
    %cst_65 = arith.constant 1.000000e+00 : f32
    %338 = vector.broadcast %cst_65 : f32 to vector<4x128xf32>
    %339 = arith.addf %338, %337 : vector<4x128xf32>
    %340 = arith.divf %338, %339 : vector<4x128xf32>
    %341 = vector.extract_strided_slice %340 {offsets = [0, 0], sizes = [4, 32], strides = [1, 1]} : vector<4x128xf32> to vector<4x32xf32>
    %342 = vector.extract_strided_slice %340 {offsets = [0, 32], sizes = [4, 32], strides = [1, 1]} : vector<4x128xf32> to vector<4x32xf32>
    %343 = vector.extract_strided_slice %340 {offsets = [0, 64], sizes = [4, 32], strides = [1, 1]} : vector<4x128xf32> to vector<4x32xf32>
    %344 = vector.extract_strided_slice %335 {offsets = [0, 96], sizes = [4, 32], strides = [1, 1]} : vector<4x128xf32> to vector<4x32xf32>
    %345 = math.tanh %344 : vector<4x32xf32>
    %346 = arith.mulf %342, %303 : vector<4x32xf32>
    %347 = arith.mulf %341, %345 : vector<4x32xf32>
    %348 = arith.addf %346, %347 : vector<4x32xf32>
    %349 = math.tanh %348 : vector<4x32xf32>
    %350 = arith.mulf %343, %349 : vector<4x32xf32>
    %351 = arith.truncf %350 : vector<4x32xf32> to vector<4x32xbf16>
    %cst_66 = arith.constant dense<0.000000e+00> : vector<4x32xf32>
    %352 = tpu.matmul %351, %236, %cst_66 {dimension_numbers = #tpu.dot_dimension_numbers<[1], [0], [0], [1], [0, 0, 1, 1], [], []>} : vector<4x32xbf16>, vector<32x32xbf16>, vector<4x32xf32> -> vector<4x32xf32>
    %353 = arith.truncf %352 : vector<4x32xf32> to vector<4x32xbf16>
    %354 = vector.shape_cast %353 : vector<4x32xbf16> to vector<4x1x32xbf16>
    "tpu.trace_start"() <{level = 10 : i32, message = "bqh,bsh->bqs"}> : () -> ()
    %cst_67 = arith.constant dense<0.000000e+00> : vector<4x1x8xf32>
    %355 = tpu.matmul %354, %220, %cst_67 {dimension_numbers = #tpu.dot_dimension_numbers<[2], [2], [1], [1], [0, 0, 0, 1, 1, 1], [0], [0]>} : vector<4x1x32xbf16>, vector<4x8x32xbf16>, vector<4x1x8xf32> -> vector<4x1x8xf32>
    "tpu.trace_stop"() : () -> ()
    %cst_68 = arith.constant dense<0xFF800000> : vector<4x1xf32>
    %356 = vector.multi_reduction <maximumf>, %355, %cst_68 [2] : vector<4x1x8xf32> to vector<4x1xf32>
    %357 = vector.shape_cast %356 : vector<4x1xf32> to vector<4x1x1xf32>
    %358 = vector.broadcast %357 : vector<4x1x1xf32> to vector<4x1x8xf32>
    %359 = arith.subf %355, %358 : vector<4x1x8xf32>
    %360 = math.exp %359 : vector<4x1x8xf32>
    %cst_69 = arith.constant dense<0.000000e+00> : vector<4x1xf32>
    %361 = vector.multi_reduction <add>, %360, %cst_69 [2] : vector<4x1x8xf32> to vector<4x1xf32>
    %362 = vector.shape_cast %361 : vector<4x1xf32> to vector<4x1x1xf32>
    %363 = tpu.reciprocal %362 {approx = true} : vector<4x1x1xf32> -> vector<4x1x1xf32>
    %364 = vector.broadcast %363 : vector<4x1x1xf32> to vector<4x1x8xf32>
    %365 = arith.mulf %360, %364 : vector<4x1x8xf32>
    %366 = arith.truncf %365 : vector<4x1x8xf32> to vector<4x1x8xbf16>
    "tpu.trace_start"() <{level = 10 : i32, message = "bqs,bsh->bqh"}> : () -> ()
    %cst_70 = arith.constant dense<0.000000e+00> : vector<4x1x32xf32>
    %367 = tpu.matmul %366, %220, %cst_70 {dimension_numbers = #tpu.dot_dimension_numbers<[2], [1], [1], [2], [0, 0, 0, 1, 1, 2], [0], [0]>} : vector<4x1x8xbf16>, vector<4x8x32xbf16>, vector<4x1x32xf32> -> vector<4x1x32xf32>
    "tpu.trace_stop"() : () -> ()
    %368 = vector.shape_cast %367 : vector<4x1x32xf32> to vector<4x32xf32>
    %369 = arith.truncf %368 : vector<4x32xf32> to vector<4x32xbf16>
    %cst_71 = arith.constant dense<0.000000e+00> : vector<4x32xf32>
    %370 = tpu.matmul %369, %237, %cst_71 {dimension_numbers = #tpu.dot_dimension_numbers<[1], [0], [0], [1], [0, 0, 1, 1], [], []>} : vector<4x32xbf16>, vector<32x32xbf16>, vector<4x32xf32> -> vector<4x32xf32>
    %cst_72 = arith.constant dense<0.000000e+00> : vector<4x32xf32>
    %371 = tpu.matmul %351, %238, %cst_72 {dimension_numbers = #tpu.dot_dimension_numbers<[1], [0], [0], [1], [0, 0, 1, 1], [], []>} : vector<4x32xbf16>, vector<32x32xbf16>, vector<4x32xf32> -> vector<4x32xf32>
    %372 = arith.addf %370, %371 : vector<4x32xf32>
    %373 = math.tanh %372 : vector<4x32xf32>
    %374 = vector.extract_strided_slice %233 {offsets = [12, 0], sizes = [4, 128], strides = [1, 1]} : vector<32x128xf32> to vector<4x128xf32>
    %375 = arith.truncf %373 : vector<4x32xf32> to vector<4x32xbf16>
    %cst_73 = arith.constant dense<0.000000e+00> : vector<4x128xf32>
    %376 = tpu.matmul %375, %234, %cst_73 {dimension_numbers = #tpu.dot_dimension_numbers<[1], [0], [0], [1], [0, 0, 1, 1], [], []>} : vector<4x32xbf16>, vector<32x128xbf16>, vector<4x128xf32> -> vector<4x128xf32>
    %377 = arith.addf %374, %376 : vector<4x128xf32>
    %378 = arith.truncf %350 : vector<4x32xf32> to vector<4x32xbf16>
    %cst_74 = arith.constant dense<0.000000e+00> : vector<4x128xf32>
    %379 = tpu.matmul %378, %235, %cst_74 {dimension_numbers = #tpu.dot_dimension_numbers<[1], [0], [0], [1], [0, 0, 1, 1], [], []>} : vector<4x32xbf16>, vector<32x128xbf16>, vector<4x128xf32> -> vector<4x128xf32>
    %380 = arith.addf %377, %379 : vector<4x128xf32>
    %381 = arith.negf %380 : vector<4x128xf32>
    %382 = math.exp %381 : vector<4x128xf32>
    %cst_75 = arith.constant 1.000000e+00 : f32
    %383 = vector.broadcast %cst_75 : f32 to vector<4x128xf32>
    %384 = arith.addf %383, %382 : vector<4x128xf32>
    %385 = arith.divf %383, %384 : vector<4x128xf32>
    %386 = vector.extract_strided_slice %385 {offsets = [0, 0], sizes = [4, 32], strides = [1, 1]} : vector<4x128xf32> to vector<4x32xf32>
    %387 = vector.extract_strided_slice %385 {offsets = [0, 32], sizes = [4, 32], strides = [1, 1]} : vector<4x128xf32> to vector<4x32xf32>
    %388 = vector.extract_strided_slice %385 {offsets = [0, 64], sizes = [4, 32], strides = [1, 1]} : vector<4x128xf32> to vector<4x32xf32>
    %389 = vector.extract_strided_slice %380 {offsets = [0, 96], sizes = [4, 32], strides = [1, 1]} : vector<4x128xf32> to vector<4x32xf32>
    %390 = math.tanh %389 : vector<4x32xf32>
    %391 = arith.mulf %387, %348 : vector<4x32xf32>
    %392 = arith.mulf %386, %390 : vector<4x32xf32>
    %393 = arith.addf %391, %392 : vector<4x32xf32>
    %394 = math.tanh %393 : vector<4x32xf32>
    %395 = arith.mulf %388, %394 : vector<4x32xf32>
    %396 = arith.truncf %395 : vector<4x32xf32> to vector<4x32xbf16>
    %cst_76 = arith.constant dense<0.000000e+00> : vector<4x32xf32>
    %397 = tpu.matmul %396, %236, %cst_76 {dimension_numbers = #tpu.dot_dimension_numbers<[1], [0], [0], [1], [0, 0, 1, 1], [], []>} : vector<4x32xbf16>, vector<32x32xbf16>, vector<4x32xf32> -> vector<4x32xf32>
    %398 = arith.truncf %397 : vector<4x32xf32> to vector<4x32xbf16>
    %399 = vector.shape_cast %398 : vector<4x32xbf16> to vector<4x1x32xbf16>
    "tpu.trace_start"() <{level = 10 : i32, message = "bqh,bsh->bqs"}> : () -> ()
    %cst_77 = arith.constant dense<0.000000e+00> : vector<4x1x8xf32>
    %400 = tpu.matmul %399, %220, %cst_77 {dimension_numbers = #tpu.dot_dimension_numbers<[2], [2], [1], [1], [0, 0, 0, 1, 1, 1], [0], [0]>} : vector<4x1x32xbf16>, vector<4x8x32xbf16>, vector<4x1x8xf32> -> vector<4x1x8xf32>
    "tpu.trace_stop"() : () -> ()
    %cst_78 = arith.constant dense<0xFF800000> : vector<4x1xf32>
    %401 = vector.multi_reduction <maximumf>, %400, %cst_78 [2] : vector<4x1x8xf32> to vector<4x1xf32>
    %402 = vector.shape_cast %401 : vector<4x1xf32> to vector<4x1x1xf32>
    %403 = vector.broadcast %402 : vector<4x1x1xf32> to vector<4x1x8xf32>
    %404 = arith.subf %400, %403 : vector<4x1x8xf32>
    %405 = math.exp %404 : vector<4x1x8xf32>
    %cst_79 = arith.constant dense<0.000000e+00> : vector<4x1xf32>
    %406 = vector.multi_reduction <add>, %405, %cst_79 [2] : vector<4x1x8xf32> to vector<4x1xf32>
    %407 = vector.shape_cast %406 : vector<4x1xf32> to vector<4x1x1xf32>
    %408 = tpu.reciprocal %407 {approx = true} : vector<4x1x1xf32> -> vector<4x1x1xf32>
    %409 = vector.broadcast %408 : vector<4x1x1xf32> to vector<4x1x8xf32>
    %410 = arith.mulf %405, %409 : vector<4x1x8xf32>
    %411 = arith.truncf %410 : vector<4x1x8xf32> to vector<4x1x8xbf16>
    "tpu.trace_start"() <{level = 10 : i32, message = "bqs,bsh->bqh"}> : () -> ()
    %cst_80 = arith.constant dense<0.000000e+00> : vector<4x1x32xf32>
    %412 = tpu.matmul %411, %220, %cst_80 {dimension_numbers = #tpu.dot_dimension_numbers<[2], [1], [1], [2], [0, 0, 0, 1, 1, 2], [0], [0]>} : vector<4x1x8xbf16>, vector<4x8x32xbf16>, vector<4x1x32xf32> -> vector<4x1x32xf32>
    "tpu.trace_stop"() : () -> ()
    %413 = vector.shape_cast %412 : vector<4x1x32xf32> to vector<4x32xf32>
    %414 = arith.truncf %413 : vector<4x32xf32> to vector<4x32xbf16>
    %cst_81 = arith.constant dense<0.000000e+00> : vector<4x32xf32>
    %415 = tpu.matmul %414, %237, %cst_81 {dimension_numbers = #tpu.dot_dimension_numbers<[1], [0], [0], [1], [0, 0, 1, 1], [], []>} : vector<4x32xbf16>, vector<32x32xbf16>, vector<4x32xf32> -> vector<4x32xf32>
    %cst_82 = arith.constant dense<0.000000e+00> : vector<4x32xf32>
    %416 = tpu.matmul %396, %238, %cst_82 {dimension_numbers = #tpu.dot_dimension_numbers<[1], [0], [0], [1], [0, 0, 1, 1], [], []>} : vector<4x32xbf16>, vector<32x32xbf16>, vector<4x32xf32> -> vector<4x32xf32>
    %417 = arith.addf %415, %416 : vector<4x32xf32>
    %418 = math.tanh %417 : vector<4x32xf32>
    %419 = vector.extract_strided_slice %233 {offsets = [16, 0], sizes = [4, 128], strides = [1, 1]} : vector<32x128xf32> to vector<4x128xf32>
    %420 = arith.truncf %418 : vector<4x32xf32> to vector<4x32xbf16>
    %cst_83 = arith.constant dense<0.000000e+00> : vector<4x128xf32>
    %421 = tpu.matmul %420, %234, %cst_83 {dimension_numbers = #tpu.dot_dimension_numbers<[1], [0], [0], [1], [0, 0, 1, 1], [], []>} : vector<4x32xbf16>, vector<32x128xbf16>, vector<4x128xf32> -> vector<4x128xf32>
    %422 = arith.addf %419, %421 : vector<4x128xf32>
    %423 = arith.truncf %395 : vector<4x32xf32> to vector<4x32xbf16>
    %cst_84 = arith.constant dense<0.000000e+00> : vector<4x128xf32>
    %424 = tpu.matmul %423, %235, %cst_84 {dimension_numbers = #tpu.dot_dimension_numbers<[1], [0], [0], [1], [0, 0, 1, 1], [], []>} : vector<4x32xbf16>, vector<32x128xbf16>, vector<4x128xf32> -> vector<4x128xf32>
    %425 = arith.addf %422, %424 : vector<4x128xf32>
    %426 = arith.negf %425 : vector<4x128xf32>
    %427 = math.exp %426 : vector<4x128xf32>
    %cst_85 = arith.constant 1.000000e+00 : f32
    %428 = vector.broadcast %cst_85 : f32 to vector<4x128xf32>
    %429 = arith.addf %428, %427 : vector<4x128xf32>
    %430 = arith.divf %428, %429 : vector<4x128xf32>
    %431 = vector.extract_strided_slice %430 {offsets = [0, 0], sizes = [4, 32], strides = [1, 1]} : vector<4x128xf32> to vector<4x32xf32>
    %432 = vector.extract_strided_slice %430 {offsets = [0, 32], sizes = [4, 32], strides = [1, 1]} : vector<4x128xf32> to vector<4x32xf32>
    %433 = vector.extract_strided_slice %430 {offsets = [0, 64], sizes = [4, 32], strides = [1, 1]} : vector<4x128xf32> to vector<4x32xf32>
    %434 = vector.extract_strided_slice %425 {offsets = [0, 96], sizes = [4, 32], strides = [1, 1]} : vector<4x128xf32> to vector<4x32xf32>
    %435 = math.tanh %434 : vector<4x32xf32>
    %436 = arith.mulf %432, %393 : vector<4x32xf32>
    %437 = arith.mulf %431, %435 : vector<4x32xf32>
    %438 = arith.addf %436, %437 : vector<4x32xf32>
    %439 = math.tanh %438 : vector<4x32xf32>
    %440 = arith.mulf %433, %439 : vector<4x32xf32>
    %441 = arith.truncf %440 : vector<4x32xf32> to vector<4x32xbf16>
    %cst_86 = arith.constant dense<0.000000e+00> : vector<4x32xf32>
    %442 = tpu.matmul %441, %236, %cst_86 {dimension_numbers = #tpu.dot_dimension_numbers<[1], [0], [0], [1], [0, 0, 1, 1], [], []>} : vector<4x32xbf16>, vector<32x32xbf16>, vector<4x32xf32> -> vector<4x32xf32>
    %443 = arith.truncf %442 : vector<4x32xf32> to vector<4x32xbf16>
    %444 = vector.shape_cast %443 : vector<4x32xbf16> to vector<4x1x32xbf16>
    "tpu.trace_start"() <{level = 10 : i32, message = "bqh,bsh->bqs"}> : () -> ()
    %cst_87 = arith.constant dense<0.000000e+00> : vector<4x1x8xf32>
    %445 = tpu.matmul %444, %220, %cst_87 {dimension_numbers = #tpu.dot_dimension_numbers<[2], [2], [1], [1], [0, 0, 0, 1, 1, 1], [0], [0]>} : vector<4x1x32xbf16>, vector<4x8x32xbf16>, vector<4x1x8xf32> -> vector<4x1x8xf32>
    "tpu.trace_stop"() : () -> ()
    %cst_88 = arith.constant dense<0xFF800000> : vector<4x1xf32>
    %446 = vector.multi_reduction <maximumf>, %445, %cst_88 [2] : vector<4x1x8xf32> to vector<4x1xf32>
    %447 = vector.shape_cast %446 : vector<4x1xf32> to vector<4x1x1xf32>
    %448 = vector.broadcast %447 : vector<4x1x1xf32> to vector<4x1x8xf32>
    %449 = arith.subf %445, %448 : vector<4x1x8xf32>
    %450 = math.exp %449 : vector<4x1x8xf32>
    %cst_89 = arith.constant dense<0.000000e+00> : vector<4x1xf32>
    %451 = vector.multi_reduction <add>, %450, %cst_89 [2] : vector<4x1x8xf32> to vector<4x1xf32>
    %452 = vector.shape_cast %451 : vector<4x1xf32> to vector<4x1x1xf32>
    %453 = tpu.reciprocal %452 {approx = true} : vector<4x1x1xf32> -> vector<4x1x1xf32>
    %454 = vector.broadcast %453 : vector<4x1x1xf32> to vector<4x1x8xf32>
    %455 = arith.mulf %450, %454 : vector<4x1x8xf32>
    %456 = arith.truncf %455 : vector<4x1x8xf32> to vector<4x1x8xbf16>
    "tpu.trace_start"() <{level = 10 : i32, message = "bqs,bsh->bqh"}> : () -> ()
    %cst_90 = arith.constant dense<0.000000e+00> : vector<4x1x32xf32>
    %457 = tpu.matmul %456, %220, %cst_90 {dimension_numbers = #tpu.dot_dimension_numbers<[2], [1], [1], [2], [0, 0, 0, 1, 1, 2], [0], [0]>} : vector<4x1x8xbf16>, vector<4x8x32xbf16>, vector<4x1x32xf32> -> vector<4x1x32xf32>
    "tpu.trace_stop"() : () -> ()
    %458 = vector.shape_cast %457 : vector<4x1x32xf32> to vector<4x32xf32>
    %459 = arith.truncf %458 : vector<4x32xf32> to vector<4x32xbf16>
    %cst_91 = arith.constant dense<0.000000e+00> : vector<4x32xf32>
    %460 = tpu.matmul %459, %237, %cst_91 {dimension_numbers = #tpu.dot_dimension_numbers<[1], [0], [0], [1], [0, 0, 1, 1], [], []>} : vector<4x32xbf16>, vector<32x32xbf16>, vector<4x32xf32> -> vector<4x32xf32>
    %cst_92 = arith.constant dense<0.000000e+00> : vector<4x32xf32>
    %461 = tpu.matmul %441, %238, %cst_92 {dimension_numbers = #tpu.dot_dimension_numbers<[1], [0], [0], [1], [0, 0, 1, 1], [], []>} : vector<4x32xbf16>, vector<32x32xbf16>, vector<4x32xf32> -> vector<4x32xf32>
    %462 = arith.addf %460, %461 : vector<4x32xf32>
    %463 = math.tanh %462 : vector<4x32xf32>
    %464 = vector.extract_strided_slice %233 {offsets = [20, 0], sizes = [4, 128], strides = [1, 1]} : vector<32x128xf32> to vector<4x128xf32>
    %465 = arith.truncf %463 : vector<4x32xf32> to vector<4x32xbf16>
    %cst_93 = arith.constant dense<0.000000e+00> : vector<4x128xf32>
    %466 = tpu.matmul %465, %234, %cst_93 {dimension_numbers = #tpu.dot_dimension_numbers<[1], [0], [0], [1], [0, 0, 1, 1], [], []>} : vector<4x32xbf16>, vector<32x128xbf16>, vector<4x128xf32> -> vector<4x128xf32>
    %467 = arith.addf %464, %466 : vector<4x128xf32>
    %468 = arith.truncf %440 : vector<4x32xf32> to vector<4x32xbf16>
    %cst_94 = arith.constant dense<0.000000e+00> : vector<4x128xf32>
    %469 = tpu.matmul %468, %235, %cst_94 {dimension_numbers = #tpu.dot_dimension_numbers<[1], [0], [0], [1], [0, 0, 1, 1], [], []>} : vector<4x32xbf16>, vector<32x128xbf16>, vector<4x128xf32> -> vector<4x128xf32>
    %470 = arith.addf %467, %469 : vector<4x128xf32>
    %471 = arith.negf %470 : vector<4x128xf32>
    %472 = math.exp %471 : vector<4x128xf32>
    %cst_95 = arith.constant 1.000000e+00 : f32
    %473 = vector.broadcast %cst_95 : f32 to vector<4x128xf32>
    %474 = arith.addf %473, %472 : vector<4x128xf32>
    %475 = arith.divf %473, %474 : vector<4x128xf32>
    %476 = vector.extract_strided_slice %475 {offsets = [0, 0], sizes = [4, 32], strides = [1, 1]} : vector<4x128xf32> to vector<4x32xf32>
    %477 = vector.extract_strided_slice %475 {offsets = [0, 32], sizes = [4, 32], strides = [1, 1]} : vector<4x128xf32> to vector<4x32xf32>
    %478 = vector.extract_strided_slice %475 {offsets = [0, 64], sizes = [4, 32], strides = [1, 1]} : vector<4x128xf32> to vector<4x32xf32>
    %479 = vector.extract_strided_slice %470 {offsets = [0, 96], sizes = [4, 32], strides = [1, 1]} : vector<4x128xf32> to vector<4x32xf32>
    %480 = math.tanh %479 : vector<4x32xf32>
    %481 = arith.mulf %477, %438 : vector<4x32xf32>
    %482 = arith.mulf %476, %480 : vector<4x32xf32>
    %483 = arith.addf %481, %482 : vector<4x32xf32>
    %484 = math.tanh %483 : vector<4x32xf32>
    %485 = arith.mulf %478, %484 : vector<4x32xf32>
    %486 = arith.truncf %485 : vector<4x32xf32> to vector<4x32xbf16>
    %cst_96 = arith.constant dense<0.000000e+00> : vector<4x32xf32>
    %487 = tpu.matmul %486, %236, %cst_96 {dimension_numbers = #tpu.dot_dimension_numbers<[1], [0], [0], [1], [0, 0, 1, 1], [], []>} : vector<4x32xbf16>, vector<32x32xbf16>, vector<4x32xf32> -> vector<4x32xf32>
    %488 = arith.truncf %487 : vector<4x32xf32> to vector<4x32xbf16>
    %489 = vector.shape_cast %488 : vector<4x32xbf16> to vector<4x1x32xbf16>
    "tpu.trace_start"() <{level = 10 : i32, message = "bqh,bsh->bqs"}> : () -> ()
    %cst_97 = arith.constant dense<0.000000e+00> : vector<4x1x8xf32>
    %490 = tpu.matmul %489, %220, %cst_97 {dimension_numbers = #tpu.dot_dimension_numbers<[2], [2], [1], [1], [0, 0, 0, 1, 1, 1], [0], [0]>} : vector<4x1x32xbf16>, vector<4x8x32xbf16>, vector<4x1x8xf32> -> vector<4x1x8xf32>
    "tpu.trace_stop"() : () -> ()
    %cst_98 = arith.constant dense<0xFF800000> : vector<4x1xf32>
    %491 = vector.multi_reduction <maximumf>, %490, %cst_98 [2] : vector<4x1x8xf32> to vector<4x1xf32>
    %492 = vector.shape_cast %491 : vector<4x1xf32> to vector<4x1x1xf32>
    %493 = vector.broadcast %492 : vector<4x1x1xf32> to vector<4x1x8xf32>
    %494 = arith.subf %490, %493 : vector<4x1x8xf32>
    %495 = math.exp %494 : vector<4x1x8xf32>
    %cst_99 = arith.constant dense<0.000000e+00> : vector<4x1xf32>
    %496 = vector.multi_reduction <add>, %495, %cst_99 [2] : vector<4x1x8xf32> to vector<4x1xf32>
    %497 = vector.shape_cast %496 : vector<4x1xf32> to vector<4x1x1xf32>
    %498 = tpu.reciprocal %497 {approx = true} : vector<4x1x1xf32> -> vector<4x1x1xf32>
    %499 = vector.broadcast %498 : vector<4x1x1xf32> to vector<4x1x8xf32>
    %500 = arith.mulf %495, %499 : vector<4x1x8xf32>
    %501 = arith.truncf %500 : vector<4x1x8xf32> to vector<4x1x8xbf16>
    "tpu.trace_start"() <{level = 10 : i32, message = "bqs,bsh->bqh"}> : () -> ()
    %cst_100 = arith.constant dense<0.000000e+00> : vector<4x1x32xf32>
    %502 = tpu.matmul %501, %220, %cst_100 {dimension_numbers = #tpu.dot_dimension_numbers<[2], [1], [1], [2], [0, 0, 0, 1, 1, 2], [0], [0]>} : vector<4x1x8xbf16>, vector<4x8x32xbf16>, vector<4x1x32xf32> -> vector<4x1x32xf32>
    "tpu.trace_stop"() : () -> ()
    %503 = vector.shape_cast %502 : vector<4x1x32xf32> to vector<4x32xf32>
    %504 = arith.truncf %503 : vector<4x32xf32> to vector<4x32xbf16>
    %cst_101 = arith.constant dense<0.000000e+00> : vector<4x32xf32>
    %505 = tpu.matmul %504, %237, %cst_101 {dimension_numbers = #tpu.dot_dimension_numbers<[1], [0], [0], [1], [0, 0, 1, 1], [], []>} : vector<4x32xbf16>, vector<32x32xbf16>, vector<4x32xf32> -> vector<4x32xf32>
    %cst_102 = arith.constant dense<0.000000e+00> : vector<4x32xf32>
    %506 = tpu.matmul %486, %238, %cst_102 {dimension_numbers = #tpu.dot_dimension_numbers<[1], [0], [0], [1], [0, 0, 1, 1], [], []>} : vector<4x32xbf16>, vector<32x32xbf16>, vector<4x32xf32> -> vector<4x32xf32>
    %507 = arith.addf %505, %506 : vector<4x32xf32>
    %508 = math.tanh %507 : vector<4x32xf32>
    %509 = vector.extract_strided_slice %233 {offsets = [24, 0], sizes = [4, 128], strides = [1, 1]} : vector<32x128xf32> to vector<4x128xf32>
    %510 = arith.truncf %508 : vector<4x32xf32> to vector<4x32xbf16>
    %cst_103 = arith.constant dense<0.000000e+00> : vector<4x128xf32>
    %511 = tpu.matmul %510, %234, %cst_103 {dimension_numbers = #tpu.dot_dimension_numbers<[1], [0], [0], [1], [0, 0, 1, 1], [], []>} : vector<4x32xbf16>, vector<32x128xbf16>, vector<4x128xf32> -> vector<4x128xf32>
    %512 = arith.addf %509, %511 : vector<4x128xf32>
    %513 = arith.truncf %485 : vector<4x32xf32> to vector<4x32xbf16>
    %cst_104 = arith.constant dense<0.000000e+00> : vector<4x128xf32>
    %514 = tpu.matmul %513, %235, %cst_104 {dimension_numbers = #tpu.dot_dimension_numbers<[1], [0], [0], [1], [0, 0, 1, 1], [], []>} : vector<4x32xbf16>, vector<32x128xbf16>, vector<4x128xf32> -> vector<4x128xf32>
    %515 = arith.addf %512, %514 : vector<4x128xf32>
    %516 = arith.negf %515 : vector<4x128xf32>
    %517 = math.exp %516 : vector<4x128xf32>
    %cst_105 = arith.constant 1.000000e+00 : f32
    %518 = vector.broadcast %cst_105 : f32 to vector<4x128xf32>
    %519 = arith.addf %518, %517 : vector<4x128xf32>
    %520 = arith.divf %518, %519 : vector<4x128xf32>
    %521 = vector.extract_strided_slice %520 {offsets = [0, 0], sizes = [4, 32], strides = [1, 1]} : vector<4x128xf32> to vector<4x32xf32>
    %522 = vector.extract_strided_slice %520 {offsets = [0, 32], sizes = [4, 32], strides = [1, 1]} : vector<4x128xf32> to vector<4x32xf32>
    %523 = vector.extract_strided_slice %520 {offsets = [0, 64], sizes = [4, 32], strides = [1, 1]} : vector<4x128xf32> to vector<4x32xf32>
    %524 = vector.extract_strided_slice %515 {offsets = [0, 96], sizes = [4, 32], strides = [1, 1]} : vector<4x128xf32> to vector<4x32xf32>
    %525 = math.tanh %524 : vector<4x32xf32>
    %526 = arith.mulf %522, %483 : vector<4x32xf32>
    %527 = arith.mulf %521, %525 : vector<4x32xf32>
    %528 = arith.addf %526, %527 : vector<4x32xf32>
    %529 = math.tanh %528 : vector<4x32xf32>
    %530 = arith.mulf %523, %529 : vector<4x32xf32>
    %531 = arith.truncf %530 : vector<4x32xf32> to vector<4x32xbf16>
    %cst_106 = arith.constant dense<0.000000e+00> : vector<4x32xf32>
    %532 = tpu.matmul %531, %236, %cst_106 {dimension_numbers = #tpu.dot_dimension_numbers<[1], [0], [0], [1], [0, 0, 1, 1], [], []>} : vector<4x32xbf16>, vector<32x32xbf16>, vector<4x32xf32> -> vector<4x32xf32>
    %533 = arith.truncf %532 : vector<4x32xf32> to vector<4x32xbf16>
    %534 = vector.shape_cast %533 : vector<4x32xbf16> to vector<4x1x32xbf16>
    "tpu.trace_start"() <{level = 10 : i32, message = "bqh,bsh->bqs"}> : () -> ()
    %cst_107 = arith.constant dense<0.000000e+00> : vector<4x1x8xf32>
    %535 = tpu.matmul %534, %220, %cst_107 {dimension_numbers = #tpu.dot_dimension_numbers<[2], [2], [1], [1], [0, 0, 0, 1, 1, 1], [0], [0]>} : vector<4x1x32xbf16>, vector<4x8x32xbf16>, vector<4x1x8xf32> -> vector<4x1x8xf32>
    "tpu.trace_stop"() : () -> ()
    %cst_108 = arith.constant dense<0xFF800000> : vector<4x1xf32>
    %536 = vector.multi_reduction <maximumf>, %535, %cst_108 [2] : vector<4x1x8xf32> to vector<4x1xf32>
    %537 = vector.shape_cast %536 : vector<4x1xf32> to vector<4x1x1xf32>
    %538 = vector.broadcast %537 : vector<4x1x1xf32> to vector<4x1x8xf32>
    %539 = arith.subf %535, %538 : vector<4x1x8xf32>
    %540 = math.exp %539 : vector<4x1x8xf32>
    %cst_109 = arith.constant dense<0.000000e+00> : vector<4x1xf32>
    %541 = vector.multi_reduction <add>, %540, %cst_109 [2] : vector<4x1x8xf32> to vector<4x1xf32>
    %542 = vector.shape_cast %541 : vector<4x1xf32> to vector<4x1x1xf32>
    %543 = tpu.reciprocal %542 {approx = true} : vector<4x1x1xf32> -> vector<4x1x1xf32>
    %544 = vector.broadcast %543 : vector<4x1x1xf32> to vector<4x1x8xf32>
    %545 = arith.mulf %540, %544 : vector<4x1x8xf32>
    %546 = arith.truncf %545 : vector<4x1x8xf32> to vector<4x1x8xbf16>
    "tpu.trace_start"() <{level = 10 : i32, message = "bqs,bsh->bqh"}> : () -> ()
    %cst_110 = arith.constant dense<0.000000e+00> : vector<4x1x32xf32>
    %547 = tpu.matmul %546, %220, %cst_110 {dimension_numbers = #tpu.dot_dimension_numbers<[2], [1], [1], [2], [0, 0, 0, 1, 1, 2], [0], [0]>} : vector<4x1x8xbf16>, vector<4x8x32xbf16>, vector<4x1x32xf32> -> vector<4x1x32xf32>
    "tpu.trace_stop"() : () -> ()
    %548 = vector.shape_cast %547 : vector<4x1x32xf32> to vector<4x32xf32>
    %549 = arith.truncf %548 : vector<4x32xf32> to vector<4x32xbf16>
    %cst_111 = arith.constant dense<0.000000e+00> : vector<4x32xf32>
    %550 = tpu.matmul %549, %237, %cst_111 {dimension_numbers = #tpu.dot_dimension_numbers<[1], [0], [0], [1], [0, 0, 1, 1], [], []>} : vector<4x32xbf16>, vector<32x32xbf16>, vector<4x32xf32> -> vector<4x32xf32>
    %cst_112 = arith.constant dense<0.000000e+00> : vector<4x32xf32>
    %551 = tpu.matmul %531, %238, %cst_112 {dimension_numbers = #tpu.dot_dimension_numbers<[1], [0], [0], [1], [0, 0, 1, 1], [], []>} : vector<4x32xbf16>, vector<32x32xbf16>, vector<4x32xf32> -> vector<4x32xf32>
    %552 = arith.addf %550, %551 : vector<4x32xf32>
    %553 = math.tanh %552 : vector<4x32xf32>
    %554 = vector.extract_strided_slice %233 {offsets = [28, 0], sizes = [4, 128], strides = [1, 1]} : vector<32x128xf32> to vector<4x128xf32>
    %555 = arith.truncf %553 : vector<4x32xf32> to vector<4x32xbf16>
    %cst_113 = arith.constant dense<0.000000e+00> : vector<4x128xf32>
    %556 = tpu.matmul %555, %234, %cst_113 {dimension_numbers = #tpu.dot_dimension_numbers<[1], [0], [0], [1], [0, 0, 1, 1], [], []>} : vector<4x32xbf16>, vector<32x128xbf16>, vector<4x128xf32> -> vector<4x128xf32>
    %557 = arith.addf %554, %556 : vector<4x128xf32>
    %558 = arith.truncf %530 : vector<4x32xf32> to vector<4x32xbf16>
    %cst_114 = arith.constant dense<0.000000e+00> : vector<4x128xf32>
    %559 = tpu.matmul %558, %235, %cst_114 {dimension_numbers = #tpu.dot_dimension_numbers<[1], [0], [0], [1], [0, 0, 1, 1], [], []>} : vector<4x32xbf16>, vector<32x128xbf16>, vector<4x128xf32> -> vector<4x128xf32>
    %560 = arith.addf %557, %559 : vector<4x128xf32>
    %561 = arith.negf %560 : vector<4x128xf32>
    %562 = math.exp %561 : vector<4x128xf32>
    %cst_115 = arith.constant 1.000000e+00 : f32
    %563 = vector.broadcast %cst_115 : f32 to vector<4x128xf32>
    %564 = arith.addf %563, %562 : vector<4x128xf32>
    %565 = arith.divf %563, %564 : vector<4x128xf32>
    %566 = vector.extract_strided_slice %565 {offsets = [0, 0], sizes = [4, 32], strides = [1, 1]} : vector<4x128xf32> to vector<4x32xf32>
    %567 = vector.extract_strided_slice %565 {offsets = [0, 32], sizes = [4, 32], strides = [1, 1]} : vector<4x128xf32> to vector<4x32xf32>
    %568 = vector.extract_strided_slice %565 {offsets = [0, 64], sizes = [4, 32], strides = [1, 1]} : vector<4x128xf32> to vector<4x32xf32>
    %569 = vector.extract_strided_slice %560 {offsets = [0, 96], sizes = [4, 32], strides = [1, 1]} : vector<4x128xf32> to vector<4x32xf32>
    %570 = math.tanh %569 : vector<4x32xf32>
    %571 = arith.mulf %567, %528 : vector<4x32xf32>
    %572 = arith.mulf %566, %570 : vector<4x32xf32>
    %573 = arith.addf %571, %572 : vector<4x32xf32>
    %574 = math.tanh %573 : vector<4x32xf32>
    %575 = arith.mulf %568, %574 : vector<4x32xf32>
    %576 = arith.truncf %575 : vector<4x32xf32> to vector<4x32xbf16>
    %cst_116 = arith.constant dense<0.000000e+00> : vector<4x32xf32>
    %577 = tpu.matmul %576, %236, %cst_116 {dimension_numbers = #tpu.dot_dimension_numbers<[1], [0], [0], [1], [0, 0, 1, 1], [], []>} : vector<4x32xbf16>, vector<32x32xbf16>, vector<4x32xf32> -> vector<4x32xf32>
    %578 = arith.truncf %577 : vector<4x32xf32> to vector<4x32xbf16>
    %579 = vector.shape_cast %578 : vector<4x32xbf16> to vector<4x1x32xbf16>
    "tpu.trace_start"() <{level = 10 : i32, message = "bqh,bsh->bqs"}> : () -> ()
    %cst_117 = arith.constant dense<0.000000e+00> : vector<4x1x8xf32>
    %580 = tpu.matmul %579, %220, %cst_117 {dimension_numbers = #tpu.dot_dimension_numbers<[2], [2], [1], [1], [0, 0, 0, 1, 1, 1], [0], [0]>} : vector<4x1x32xbf16>, vector<4x8x32xbf16>, vector<4x1x8xf32> -> vector<4x1x8xf32>
    "tpu.trace_stop"() : () -> ()
    %cst_118 = arith.constant dense<0xFF800000> : vector<4x1xf32>
    %581 = vector.multi_reduction <maximumf>, %580, %cst_118 [2] : vector<4x1x8xf32> to vector<4x1xf32>
    %582 = vector.shape_cast %581 : vector<4x1xf32> to vector<4x1x1xf32>
    %583 = vector.broadcast %582 : vector<4x1x1xf32> to vector<4x1x8xf32>
    %584 = arith.subf %580, %583 : vector<4x1x8xf32>
    %585 = math.exp %584 : vector<4x1x8xf32>
    %cst_119 = arith.constant dense<0.000000e+00> : vector<4x1xf32>
    %586 = vector.multi_reduction <add>, %585, %cst_119 [2] : vector<4x1x8xf32> to vector<4x1xf32>
    %587 = vector.shape_cast %586 : vector<4x1xf32> to vector<4x1x1xf32>
    %588 = tpu.reciprocal %587 {approx = true} : vector<4x1x1xf32> -> vector<4x1x1xf32>
    %589 = vector.broadcast %588 : vector<4x1x1xf32> to vector<4x1x8xf32>
    %590 = arith.mulf %585, %589 : vector<4x1x8xf32>
    %591 = arith.truncf %590 : vector<4x1x8xf32> to vector<4x1x8xbf16>
    "tpu.trace_start"() <{level = 10 : i32, message = "bqs,bsh->bqh"}> : () -> ()
    %cst_120 = arith.constant dense<0.000000e+00> : vector<4x1x32xf32>
    %592 = tpu.matmul %591, %220, %cst_120 {dimension_numbers = #tpu.dot_dimension_numbers<[2], [1], [1], [2], [0, 0, 0, 1, 1, 2], [0], [0]>} : vector<4x1x8xbf16>, vector<4x8x32xbf16>, vector<4x1x32xf32> -> vector<4x1x32xf32>
    "tpu.trace_stop"() : () -> ()
    %593 = vector.shape_cast %592 : vector<4x1x32xf32> to vector<4x32xf32>
    %594 = arith.truncf %593 : vector<4x32xf32> to vector<4x32xbf16>
    %cst_121 = arith.constant dense<0.000000e+00> : vector<4x32xf32>
    %595 = tpu.matmul %594, %237, %cst_121 {dimension_numbers = #tpu.dot_dimension_numbers<[1], [0], [0], [1], [0, 0, 1, 1], [], []>} : vector<4x32xbf16>, vector<32x32xbf16>, vector<4x32xf32> -> vector<4x32xf32>
    %cst_122 = arith.constant dense<0.000000e+00> : vector<4x32xf32>
    %596 = tpu.matmul %576, %238, %cst_122 {dimension_numbers = #tpu.dot_dimension_numbers<[1], [0], [0], [1], [0, 0, 1, 1], [], []>} : vector<4x32xbf16>, vector<32x32xbf16>, vector<4x32xf32> -> vector<4x32xf32>
    %597 = arith.addf %595, %596 : vector<4x32xf32>
    %598 = math.tanh %597 : vector<4x32xf32>
    %599 = vector.shape_cast %283 : vector<4x32xf32> to vector<1x4x32xf32>
    %600 = vector.shape_cast %328 : vector<4x32xf32> to vector<1x4x32xf32>
    %601 = vector.shape_cast %373 : vector<4x32xf32> to vector<1x4x32xf32>
    %602 = vector.shape_cast %418 : vector<4x32xf32> to vector<1x4x32xf32>
    %603 = vector.shape_cast %463 : vector<4x32xf32> to vector<1x4x32xf32>
    %604 = vector.shape_cast %508 : vector<4x32xf32> to vector<1x4x32xf32>
    %605 = vector.shape_cast %553 : vector<4x32xf32> to vector<1x4x32xf32>
    %606 = vector.shape_cast %598 : vector<4x32xf32> to vector<1x4x32xf32>
    %607 = tpu.concatenate %599, %600, %601, %602, %603, %604, %605, %606 in 0 : vector<1x4x32xf32>, vector<1x4x32xf32>, vector<1x4x32xf32>, vector<1x4x32xf32>, vector<1x4x32xf32>, vector<1x4x32xf32>, vector<1x4x32xf32>, vector<1x4x32xf32> -> vector<8x4x32xf32>
    %c0_123 = arith.constant 0 : index
    %c0_124 = arith.constant 0 : index
    %c0_125 = arith.constant 0 : index
    %608 = vector.load %arg12[%c0_123, %c0_124, %c0_125] : memref<8x4x32xf32, #tpu.memory_space<vmem>>, vector<8x4x32xf32>
    tpu.vector_store %arg12[%c0_123, %c0_124, %c0_125], %607 {strides = array<i32>} : memref<8x4x32xf32, #tpu.memory_space<vmem>>, vector<8x4x32xf32>,
    return
  }
}

</mosaic_0001>

<bundles_post_ra>
// kernel: seq2seq_forward.1
= control target key start
LH: loop header
LB: loop body
LE: loop exit
PB: predicated region body
PF: predicated region fallthrough
CT: control target
= control target key end

     0   :  { %17 = vsyncpa [#allocation3], 0  ;;  %s10635_s0 = inlined_call_operand.vmem [shape: s32[32,1], index: 0, kind: input, shape index: {}]   ;;  %s10636_s1 = inlined_call_operand.vmem [shape: s32[32,1], index: 1, kind: input, shape index: {}]   ;;  %s10637_s2 = inlined_call_operand.vmem [shape: bf16[50,256], index: 2, kind: input, shape index: {}]   ;;  %s10638_s3 = inlined_call_operand.hbm [shape: f32[1,128], index: 3, kind: input, shape index: {}]   ;;  %s10639_s4 = inlined_call_operand.vmem [shape: bf16[32,128], index: 4, kind: input, shape index: {}]   ;;  %s10640_s5 = inlined_call_operand.vmem [shape: bf16[50,128], index: 5, kind: input, shape index: {}]   ;;  %s10641_s6 = inlined_call_operand.hbm [shape: f32[1,128], index: 6, kind: input, shape index: {}]   ;;  %s10642_s7 = inlined_call_operand.hbm [shape: bf16[32,128], index: 7, kind: input, shape index: {}]   ;;  %s10643_s8 = inlined_call_operand.hbm [shape: bf16[32,128], index: 8, kind: input, shape index: {}]   ;;  %s10644_s9 = inlined_call_operand.vmem [shape: bf16[32,32], index: 9, kind: input, shape index: {}]   ;;  %s10645_s10 = inlined_call_operand.hbm [shape: bf16[32,32], index: 10, kind: input, shape index: {}]   ;;  %s10646_s11 = inlined_call_operand.hbm [shape: bf16[32,32], index: 11, kind: input, shape index: {}]   ;;  %s10647_s12 = inlined_call_operand.hbm [shape: f32[8,4,32], index: 12, kind: output, shape index: {}]  }
   0x1   :  { %18 = vsyncpa [#allocation6], 0 }
   0x2   :  { %19 = vsyncpa [#allocation9], 0 }
   0x3   :  { %20 = vsyncpa [#allocation12], 0 }
   0x4   :  { %21 = vsyncpa [#allocation4], 0  ;;  %s9048_s21 = smov [#allocation5]  }
   0x5   :  { %s48_s22 = sshll.u32 %s9048_s21, 4  ;;  %s49_s22 = int_to_ptr.vmem [resolvable:$true] %s48_s22 }
   0x6   :  { %s8906_s23 = scalar_lea.vmem %s49_s22, 16  ;;  %s8910_s24 = scalar_lea.vmem %s49_s22, 32 }
   0x7   :  { %p8907_p0 = scmp.ne.s32.totalorder %s49_s22, %s8906_s23  ;;  %p8911_p1 = scmp.lt.s32.totalorder %s49_s22, %s49_s22 }
   0x8   :  { %p8912_p2 = scmp.lt.s32.totalorder %s8910_s24, %s8906_s23 }
   0xa   :  { %p8913_p3 = por %p8912_p2, %p8911_p1 }
   0xc   :  { %p8914_p4 = pnand %p8913_p3, %p8907_p0 }
   0xe   :  { %8917 = shalt.err (!%p8914_p4)
}
   0xf   :  { %51 = dma.hbm_to_vmem [thread:$0]  %s10641_s6, 16, %s49_s22, [#allocation6]  }
  0x10   :  { %s9049_s27 = smov [#allocation8]   ;;  %s9050_s29 = smov [#allocation2]  }
  0x11   :  { %s69_s28 = sshll.u32 %s9049_s27, 4  ;;  %s34_s30 = sshll.u32 %s9050_s29, 4  ;;  %s70_s28 = int_to_ptr.vmem [resolvable:$true] %s69_s28  ;;  %s35_s30 = int_to_ptr.vmem [resolvable:$true] %s34_s30 }
  0x12   :  { %s8926_s13 = scalar_lea.vmem %s70_s28, 256  ;;  %p8931_p6 = scmp.lt.s32.totalorder %s70_s28, %s70_s28 }
  0x13   :  { %p8927_p5 = scmp.ne.s32.totalorder %s70_s28, %s8926_s13  ;;  %p8932_p7 = scmp.lt.s32.totalorder %s8926_s13, %s8926_s13 }
  0x15   :  { %p8933_p8 = por %p8932_p7, %p8931_p6 }
  0x17   :  { %p8934_p9 = pnand %p8933_p8, %p8927_p5 }
  0x19   :  { %8937 = shalt.err (!%p8934_p9)
}
  0x1a   :  { %s9051_s14 = smov 64   ;;  %s9052_s15 = smov 4  }
  0x1b   :  { %75 = dma.hbm_to_vmem [thread:$0]  %s10643_s8, 256, %s70_s28, [#allocation9], %s9051_s14, %s9051_s14, %s9052_s15  }
  0x1c   :  { %s8946_s6 = scalar_lea.vmem %s35_s30, 16  ;;  %s8950_s18 = scalar_lea.vmem %s35_s30, 32 }
  0x1d   :  { %p8947_p10 = scmp.ne.s32.totalorder %s35_s30, %s8946_s6  ;;  %p8951_p11 = scmp.lt.s32.totalorder %s35_s30, %s35_s30 }
  0x1e   :  { %p8952_p12 = scmp.lt.s32.totalorder %s8950_s18, %s8946_s6 }
  0x20   :  { %p8953_p13 = por %p8952_p12, %p8951_p11 }
  0x22   :  { %p8954_p0 = pnand %p8953_p13, %p8947_p10 }
  0x24   :  { %8957 = shalt.err (!%p8954_p0)
}
  0x25   :  { %37 = dma.hbm_to_vmem [thread:$0]  %s10638_s3, 16, %s35_s30, [#allocation3]  }
  0x26   :  { %s9053_s21 = smov [#allocation7]   ;;  %s9054_s23 = smov [#allocation10]  }
  0x27   :  { %s57_s22 = sshll.u32 %s9053_s21, 4  ;;  %s83_s24 = sshll.u32 %s9054_s23, 4  ;;  %s58_s22 = int_to_ptr.vmem [resolvable:$true] %s57_s22  ;;  %s84_s24 = int_to_ptr.vmem [resolvable:$true] %s83_s24 }
  0x28   :  { %s8966_s25 = scalar_lea.vmem %s58_s22, 256  ;;  %p8971_p2 = scmp.lt.s32.totalorder %s58_s22, %s58_s22 }
  0x29   :  { %p8967_p1 = scmp.ne.s32.totalorder %s58_s22, %s8966_s25  ;;  %p8972_p3 = scmp.lt.s32.totalorder %s8966_s25, %s8966_s25 }
  0x2b   :  { %p8973_p4 = por %p8972_p3, %p8971_p2 }
  0x2d   :  { %p8974_p5 = pnand %p8973_p4, %p8967_p1 }
  0x2f   :  { %8977 = shalt.err (!%p8974_p5)
}
  0x30   :  { %63 = dma.hbm_to_vmem [thread:$0]  %s10642_s7, 256, %s58_s22, [#allocation6], %s9051_s14, %s9051_s14, %s9052_s15  }
  0x31   :  { %s8986_s3 = scalar_lea.vmem %s84_s24, 256  ;;  %p8991_p7 = scmp.lt.s32.totalorder %s84_s24, %s84_s24 }
  0x32   :  { %p8987_p6 = scmp.ne.s32.totalorder %s84_s24, %s8986_s3  ;;  %p8992_p8 = scmp.lt.s32.totalorder %s8986_s3, %s8986_s3 }
  0x34   :  { %p8993_p9 = por %p8992_p8, %p8991_p7 }
  0x36   :  { %p8994_p10 = pnand %p8993_p9, %p8987_p6 }
  0x38   :  { %8997 = shalt.err (!%p8994_p10)
}
  0x39   :  { %89 = dma.hbm_to_vmem [thread:$0]  %s10645_s10, 256, %s84_s24, [#allocation9], %s9051_s14, %s9051_s14, %s9052_s15  }
  0x3a   :  { %s9055_s29 = smov [#allocation11]  }
  0x3b   :  { %s95_s30 = sshll.u32 %s9055_s29, 4  ;;  %s96_s30 = int_to_ptr.vmem [resolvable:$true] %s95_s30 }
  0x3c   :  { %s9006_s13 = scalar_lea.vmem %s96_s30, 256  ;;  %p9011_p12 = scmp.lt.s32.totalorder %s96_s30, %s96_s30 }
  0x3d   :  { %p9007_p11 = scmp.ne.s32.totalorder %s96_s30, %s9006_s13  ;;  %p9012_p13 = scmp.lt.s32.totalorder %s9006_s13, %s9006_s13 }
  0x3f   :  { %p9013_p0 = por %p9012_p13, %p9011_p12 }
  0x41   :  { %p9014_p1 = pnand %p9013_p0, %p9007_p11 }
  0x43   :  { %9017 = shalt.err (!%p9014_p1)
}
  0x44   :  { %101 = dma.hbm_to_vmem [thread:$0]  %s10646_s11, 256, %s96_s30, [#allocation12], %s9051_s14, %s9051_s14, %s9052_s15  }
  0x45   :  { %9038 = dma.done.wait [#allocation3], 16  }
  0x46   :  { %9039 = vsyncadd [#allocation3], 4294967280 }
  0x47   :  { %9040 = dma.done.wait [#allocation6], 272  }
  0x48   :  { %9041 = vsyncadd [#allocation6], 4294967024 }
  0x49   :  { %9042 = dma.done.wait [#allocation9], 512  }
  0x4a   :  { %9043 = vsyncadd [#allocation9], 4294966784 }
  0x4b   :  { %9044 = dma.done.wait [#allocation12], 256  }
  0x4c   :  { %9045 = vsyncadd [#allocation12], 4294967040  ;;  %v9056_v0 = vmov 0   ;;  %v9057_v1 = vmov 0.0   ;;  %v121_v2 = vld [vmem:[%s10635_s0] sm:$0xff]  ;;  %v123_v3 = vld [vmem:[%s10635_s0 + $0x10] sm:$0xff]  ;;  %v125_v18 = vlaneseq }
  0x4d   :  { %8556 = vset.pattern.permute.xlu0 %v9056_v0  ;;  %8557 = vset.pattern.permute.xlu1 %v9056_v0  ;;  %v159_v4 = vld [vmem:[%s10637_s2 + $0x30] sm:$0x11]  ;;  %vm202_vm0 = vcmask 1040384   ;;  %v122_v5 = vld [vmem:[%s10635_s0 + $0x8] sm:$0xff]  ;;  %v124_v6 = vld [vmem:[%s10635_s0 + $0x18] sm:$0xff]  ;;  %vm9058_vm1 = vmmov 0  }
  0x4e   :  { %241 = vmatprep.mubr.bf16.mxu0 %v9056_v0  ;;  %7761 = vmatprep.subr.bf16.mxu1 %v9057_v1  ;;  %v7313_v7 = vcombine.high %v159_v4, %v159_v4  ;;  %v7312_v8 = vcombine.low %v159_v4, %v159_v4  ;;  %v8580_v9 = vld [vmem:[%s10637_s2 + $0x24] ss:$8 sps:$4 sm:$0xff]   ;;  %v8582_v11 = vld [vmem:[%s10637_s2 + $0x20] ss:$8 sps:$4 sm:$0xff]   ;;  %v8583_v12 = vld [vmem:[%s10637_s2 + $0x14] ss:$8 sps:$4 sm:$0xff]  }
  0x4f   :  { %128 = vperm.xlu0 %8556, %v121_v2   ;;  %134 = vperm.xlu1 %8557, %v123_v3   ;;  %v9190_v13 = vld [vmem:[%s10639_s4 + $0x8] sm:$0xff]   ;;  %v8585_v14 = vld [vmem:[%s10637_s2 + $0x10] ss:$8 sps:$4 sm:$0xff]   ;;  %v9206_v17 = vld [vmem:[%s10639_s4] sm:$0xff]   ;;  %v9221_v19 = vand.u32 127, %v125_v18  ;;  %vm195_vm4 = vcmask 408576  }
  0x50   :  { %7314 = vmatprep.subr.msk.bf16.mxu0 %vm202_vm0, %v7313_v7  ;;  %v204_v10 = vsel %vm202_vm0, %v7312_v8, 0  ;;  %7762 = vmatpush3.bf16.msra.mxu1 %v9190_v13  ;;  %v8586_v15 = vld [vmem:[%s10637_s2 + $0x4] ss:$8 sps:$4 sm:$0xff]   ;;  %v8588_v16 = vld [vmem:[%s10637_s2] ss:$8 sps:$4 sm:$0xff]   ;;  %s9059_s2 = smov 32  }
  0x51   :  { %218 = vmatpush1.bf16.msra.mxu0 %v204_v10  ;;  %7763 = vmatprep.subr.bf16.mxu1 %v9057_v1  ;;  %v7317_v36 = vld [vmem:[#allocation2] ss:$0 sm:$0xff]  ;;  %vm293_vm7 = vcmask 261120   ;;  %vm1266_vm8 = vcmask 1041408   ;;  %vm1271_vm9 = vcmask 1042432   ;;  %vm1276_vm10 = vcmask 1043456  }
  0x52   :  { %219 = vmatprep.subr.bf16.mxu0 %v8580_v9  ;;  %7765 = vmatprep.mubr.msk.bf16.mxu1 %vm9058_vm1, %v9057_v1  ;;  %vm1281_vm11 = vcmask 1044480   ;;  %vm1286_vm12 = vcmask 1045504   ;;  %vm1291_vm14 = vcmask 1046528  }
  0x53   :  { %131 = vperm.xlu0 %8556, %v122_v5   ;;  %137 = vperm.xlu1 %8557, %v124_v6  }
  0x54   :  { %7764 = vmatpush3.bf16.msra.mxu1 %v9206_v17 }
  0x55   :  { %220 = vmatpush1.bf16.msra.mxu0 %v8582_v11  ;;  %7769 = vmatprep.subr.bf16.mxu1 %v9057_v1 }
  0x56   :  { %221 = vmatprep.subr.bf16.mxu0 %v8583_v12 }
  0x57   :  { %7766 = vmatmul.mubr.bf16.vlgmr.msra.gmra.mxu1 %v9056_v0 }
  0x58   :  { %7770 = vmatpush3.bf16.msra.mxu1 %v9190_v13  ;;  %7773 = vmatprep.mubr.msk.bf16.mxu1 %vm9058_vm1, %v9057_v1 }
  0x59   :  { %222 = vmatpush1.bf16.msra.mxu0 %v8585_v14  ;;  %7771 = vmatprep.subr.bf16.mxu1 %v9057_v1 }
  0x5a   :  { %223 = vmatprep.subr.bf16.mxu0 %v8586_v15 }
  0x5c   :  { %7772 = vmatpush3.bf16.msra.mxu1 %v9206_v17 }
  0x5d   :  { %224 = vmatpush1.bf16.msra.mxu0 %v8588_v16  ;;  %7777 = vmatprep.subr.bf16.mxu1 %v9057_v1 }
  0x5e   :  { %7785 = vmatprep.subr.bf16.mxu0 %v9057_v1 }
  0xca   :  { %v129_v20 = vpop.permute.xlu0 %128  ;;  %v135_v21 = vpop.permute.xlu1 %134 }
  0xcb   :  { %vm139_vm2 = vcmp.eq.s32.totalorder %v9221_v19, %v129_v20  ;;  %vm141_vm5 = vcmp.eq.s32.totalorder %v9221_v19, %v135_v21 }
  0xcc   :  { %v7302_v23 = vsel %vm139_vm2, 1.0, %v9057_v1  ;;  %v7304_v27 = vsel %vm141_vm5, 1.0, %v9057_v1  ;;  %vm2013_vm5 = vcmask 64512  }
  0xce   :  { %v132_v22 = vpop.permute.xlu0 %131  ;;  %v138_v25 = vpop.permute.xlu1 %137 }
  0xcf   :  { %vm140_vm3 = vcmp.eq.s32.totalorder %v9221_v19, %v132_v22  ;;  %vm142_vm6 = vcmp.eq.s32.totalorder %v9221_v19, %v138_v25 }
  0xd0   :  { %v7303_v24 = vsel %vm140_vm3, 1.0, %v9057_v1  ;;  %v7305_v28 = vsel %vm142_vm6, 1.0, %v9057_v1  ;;  %vm2259_vm6 = vcmask 1041409  }
  0xd1   :  { %v151_v26 = vpack.c.bf16 %v7303_v24, %v7302_v23  ;;  %v152_v29 = vpack.c.bf16 %v7305_v28, %v7304_v27 }
  0xd3   :  { %7315 = vmatmul.mubr.msk.bf16.vlgmr.msra.gmra.mxu0 %vm195_vm4, %v151_v26 }
  0xd4   :  { %251 = vmatprep.mubr.bf16.mxu0 %v9056_v0  ;;  %7786 = vmatpush3.bf16.msra.mxu0 %v9190_v13 }
  0xd5   :  { %7787 = vmatprep.subr.bf16.mxu0 %v9057_v1 }
  0xd8   :  { %7788 = vmatpush3.bf16.msra.mxu0 %v9206_v17 }
  0xd9   :  { %7801 = vmatprep.subr.bf16.mxu0 %v9057_v1 }
  0xdb   :  { %7316 = vmatmul.mubr.msk.bf16.gmra.mxu0 %vm195_vm4, %v152_v29  ;;  %v9060_v29 = vmov 1966171168  }
  0xdc   :  { %7789 = vmatprep.mubr.msk.bf16.mxu0 %vm9058_vm1, %v9057_v1 }
 0x117   :  { %v331_v30 = vpop.f32.mrf.mxu1 }
 0x119   :  { %v7767_v31 = vpop.f32.mrf.mxu1 }
 0x11b   :  { %v334_v32 = vpop.f32.mrf.mxu1 }
 0x11c   :  { %v919_v32 = vshrl.u32 %v125_v18, 7 }
 0x11d   :  { %v7768_v33 = vpop.f32.mrf.mxu1 }
 0x193   :  { %v243_v34 = vpop.f32.mrf.mxu0 }
 0x194   :  { %v269_v49 = vadd.f32 %v7317_v36, %v243_v34 }
 0x195   :  { %v245_v35 = vpop.f32.mrf.mxu0 }
 0x196   :  { %v757_v45 = vrot.slane %v245_v35, 4 }
 0x197   :  { %v247_v37 = vpop.f32.mrf.mxu0 }
 0x198   :  { %v270_v38 = vadd.f32 %v7317_v36, %v247_v37 }
 0x199   :  { %v9240_v39 = vpop.f32.mrf.mxu0 }
 0x19b   :  { %v253_v40 = vpop.f32.mrf.mxu0 }
 0x19c   :  { %v9242_v41 = vadd.f32 %v7317_v36, %v253_v40 }
 0x19d   :  { %v255_v42 = vpop.f32.mrf.mxu0 }
 0x19e   :  { %v441_v43 = vrot.slane %v255_v42, 4 }
 0x19f   :  { %v257_v44 = vpop.f32.mrf.mxu0 }
 0x1a0   :  { %v272_v46 = vadd.f32 %v7317_v36, %v257_v44  ;;  %v9244_v47 = vadd.f32 %v441_v43, %v270_v38 }
 0x1a1   :  { %v259_v48 = vpop.f32.mrf.mxu0 }
 0x1a2   :  { %v278_v50 = vrot.slane %v259_v48, 4  ;;  %v9246_v51 = vadd.f32 %v757_v45, %v272_v46  ;;  %v9270_v45 = vsub.s32 0, %v919_v32 }
 0x1a4   :  { %v280_v52 = vadd.f32 %v278_v50, %v269_v49 }
 0x1a6   :  { %v337_v53 = vadd.f32 %v331_v30, %v280_v52  ;;  %v916_v30 = vunpack.c.l.s4 %v9060_v29 }
 0x1a8   :  { %8605 = vtanh.f32 %v337_v53  ;;  %v7320_v55 = vmul.f32 -1.442695, %v337_v53  ;;  %v917_v31 = vunpack.c.0.s8 %v916_v30 }
 0x1aa   :  { %8607 = vpow2.f32 %v7320_v55  ;;  %v9263_v33 = vsub.s32 %v917_v31, %v919_v32 }
 0x1b5   :  { %v8606_v54 = vpop.eup %8605 }
 0x1b6   :  { %347 = vrot.lane.b32.xlu0 %v8606_v54, %s9059_s2 }
 0x1b7   :  { %v8608_v56 = vpop.eup %8607 }
 0x1b8   :  { %v341_v57 = vadd.f32 1.0, %v8608_v56 }
 0x1ba   :  { %8609 = vrcp.f32 %v341_v57 }
 0x1c7   :  { %v8610_v58 = vpop.eup %8609 }
 0x1c8   :  { %v345_v61 = vmul.f32 0.0, %v8610_v58 }
 0x228   :  { %v348_v59 = vpop.permute.xlu0 %347 }
 0x229   :  { %v350_v60 = vmul.f32 %v8610_v58, %v348_v59 }
 0x22b   :  { %352 = vrot.lane.b32.xlu1 %v350_v60, %s9059_s2 }
 0x29d   :  { %v353_v62 = vpop.permute.xlu1 %352 }
 0x29e   :  { %v355_v63 = vadd.f32 %v353_v62, %v345_v61 }
 0x2a0   :  { %8611 = vtanh.f32 %v355_v63  ;;  %v421_v24 = vrot.slane %v355_v63, 4 }
 0x2ad   :  { %v8612_v2 = vpop.eup %8611 }
 0x2ae   :  { %358 = vrot.lane.b32.xlu0 %v8612_v2, %s9059_s2 }
 0x320   :  { %v359_v3 = vpop.permute.xlu0 %358 }
 0x321   :  { %v361_v4 = vmul.f32 %v8610_v58, %v359_v3 }
 0x323   :  { %v362_v5 = vpack.c.bf16 %v361_v4, %v361_v4  ;;  %v921_v35 = vrot.slane %v361_v4, %v9263_v33 }
 0x325   :  { %364 = vrot.lane.b32.xlu1 %v362_v5, %s9051_s14  ;;  %v922_v40 = vcombine.high %v921_v35, %v921_v35  ;;  %v9268_v44 = vrot.slane %v921_v35, %v9263_v33 }
 0x327   :  { %v9275_v48 = vrot.slane %v922_v40, %v9263_v33  ;;  %v9283_v53 = vcombine.high %v9268_v44, %v9268_v44 }
 0x329   :  { %v9302_v60 = vcombine.high %v9275_v48, %v9275_v48 }
 0x397   :  { %v365_v6 = vpop.permute.xlu1 %364 }
 0x398   :  { %7774 = vmatmul.mubr.msk.bf16.vlgmr.msra.gmra.mxu1 %vm293_vm7, %v365_v6 }
 0x399   :  { %7778 = vmatpush3.bf16.msra.mxu1 %v9190_v13  ;;  %7781 = vmatprep.mubr.msk.bf16.mxu1 %vm9058_vm1, %v9057_v1 }
 0x39a   :  { %7779 = vmatprep.subr.bf16.mxu1 %v9057_v1 }
 0x39d   :  { %7780 = vmatpush3.bf16.msra.mxu1 %v9206_v17 }
 0x39e   :  { %7793 = vmatprep.subr.bf16.mxu1 %v9057_v1 }
 0x458   :  { %v403_v7 = vpop.f32.mrf.mxu1 }
 0x459   :  { %v410_v8 = vrot.slane %v403_v7, 4 }
 0x45a   :  { %v7775_v9 = vpop.f32.mrf.mxu1 }
 0x45b   :  { %v412_v10 = vadd.f32 %v410_v8, %v280_v52 }
 0x45c   :  { %v406_v11 = vpop.f32.mrf.mxu1 }
 0x45d   :  { %8613 = vtanh.f32 %v412_v10  ;;  %v7322_v15 = vmul.f32 -1.442695, %v412_v10 }
 0x45e   :  { %v7776_v12 = vpop.f32.mrf.mxu1 }
 0x45f   :  { %8615 = vpow2.f32 %v7322_v15 }
 0x46a   :  { %v8614_v14 = vpop.eup %8613 }
 0x46b   :  { %425 = vrot.lane.b32.xlu0 %v8614_v14, %s9059_s2 }
 0x46c   :  { %v8616_v16 = vpop.eup %8615 }
 0x46d   :  { %v416_v20 = vadd.f32 1.0, %v8616_v16 }
 0x46f   :  { %8617 = vrcp.f32 %v416_v20 }
 0x47c   :  { %v8618_v21 = vpop.eup %8617 }
 0x47d   :  { %v423_v25 = vmul.f32 %v8618_v21, %v421_v24 }
 0x4dd   :  { %v426_v22 = vpop.permute.xlu0 %425 }
 0x4de   :  { %v428_v23 = vmul.f32 %v8618_v21, %v426_v22 }
 0x4e0   :  { %430 = vrot.lane.b32.xlu1 %v428_v23, %s9059_s2 }
 0x552   :  { %v431_v26 = vpop.permute.xlu1 %430 }
 0x553   :  { %v433_v27 = vadd.f32 %v431_v26, %v423_v25 }
 0x555   :  { %8619 = vtanh.f32 %v433_v27  ;;  %v501_v15 = vrot.slane %v433_v27, 4 }
 0x562   :  { %v8620_v28 = vpop.eup %8619 }
 0x563   :  { %436 = vrot.lane.b32.xlu0 %v8620_v28, %s9059_s2 }
 0x5d5   :  { %v437_v34 = vpop.permute.xlu0 %436 }
 0x5d6   :  { %v439_v36 = vmul.f32 %v8618_v21, %v437_v34 }
 0x5d8   :  { %v944_v37 = vcombine.high %v439_v36, %v439_v36  ;;  %v444_v38 = vpack.c.bf16 %v439_v36, %v439_v36 }
 0x5da   :  { %v951_v42 = vrot.slane %v944_v37, %v9263_v33  ;;  %v446_v43 = vrot.slane %v444_v38, 2 }
 0x5dc   :  { %v952_v46 = vcombine.high %v951_v42, %v951_v42  ;;  %v959_v18 = vrot.slane %v951_v42, %v9263_v33  ;;  %447 = vrot.lane.b32.xlu1 %v446_v43, %s9051_s14 }
 0x5de   :  { %v966_v49 = vrot.slane %v952_v46, %v9263_v33  ;;  %v967_v50 = vcombine.high %v959_v18, %v959_v18  ;;  %v9279_v52 = vrot.slane %v959_v18, %v9270_v45 }
 0x5e0   :  { %v1262_v54 = vsel %vm202_vm0, %v9268_v44, %v9279_v52  ;;  %v9289_v55 = vrot.slane %v967_v50, %v9270_v45  ;;  %v9292_v56 = vrot.slane %v966_v49, %v9270_v45  ;;  %v968_v57 = vcombine.high %v966_v49, %v966_v49 }
 0x5e2   :  { %v1264_v58 = vsel %vm202_vm0, %v9283_v53, %v9289_v55  ;;  %v1263_v59 = vsel %vm202_vm0, %v9275_v48, %v9292_v56  ;;  %v9305_v61 = vrot.slane %v968_v57, %v9270_v45 }
 0x5e4   :  { %v1265_v62 = vsel %vm202_vm0, %v9302_v60, %v9305_v61 }
 0x64e   :  { %v448_v63 = vpop.permute.xlu1 %447 }
 0x64f   :  { %7782 = vmatmul.mubr.msk.bf16.vlgmr.msra.gmra.mxu1 %vm293_vm7, %v448_v63 }
 0x650   :  { %7794 = vmatpush3.bf16.msra.mxu1 %v9190_v13  ;;  %7797 = vmatprep.mubr.msk.bf16.mxu1 %vm9058_vm1, %v9057_v1 }
 0x651   :  { %7795 = vmatprep.subr.bf16.mxu1 %v9057_v1 }
 0x654   :  { %7796 = vmatpush3.bf16.msra.mxu1 %v9206_v17 }
 0x655   :  { %7809 = vmatprep.subr.bf16.mxu1 %v9057_v1 }
 0x70f   :  { %v486_v2 = vpop.f32.mrf.mxu1 }
 0x710   :  { %v492_v3 = vadd.f32 %v486_v2, %v9244_v47 }
 0x711   :  { %v7783_v4 = vpop.f32.mrf.mxu1 }
 0x712   :  { %8621 = vtanh.f32 %v492_v3  ;;  %v7324_v8 = vmul.f32 -1.442695, %v492_v3 }
 0x713   :  { %v489_v5 = vpop.f32.mrf.mxu1 }
 0x714   :  { %8623 = vpow2.f32 %v7324_v8 }
 0x715   :  { %v7784_v6 = vpop.f32.mrf.mxu1 }
 0x71f   :  { %v8622_v7 = vpop.eup %8621 }
 0x720   :  { %505 = vrot.lane.b32.xlu0 %v8622_v7, %s9059_s2 }
 0x721   :  { %v8624_v9 = vpop.eup %8623 }
 0x722   :  { %v496_v10 = vadd.f32 1.0, %v8624_v9 }
 0x724   :  { %8625 = vrcp.f32 %v496_v10 }
 0x731   :  { %v8626_v11 = vpop.eup %8625 }
 0x732   :  { %v503_v16 = vmul.f32 %v8626_v11, %v501_v15 }
 0x792   :  { %v506_v12 = vpop.permute.xlu0 %505 }
 0x793   :  { %v508_v14 = vmul.f32 %v8626_v11, %v506_v12 }
 0x795   :  { %510 = vrot.lane.b32.xlu1 %v508_v14, %s9059_s2 }
 0x807   :  { %v511_v20 = vpop.permute.xlu1 %510 }
 0x808   :  { %v513_v21 = vadd.f32 %v511_v20, %v503_v16 }
 0x80a   :  { %8627 = vtanh.f32 %v513_v21  ;;  %v579_v5 = vrot.slane %v513_v21, 4 }
 0x817   :  { %v8628_v22 = vpop.eup %8627 }
 0x818   :  { %516 = vrot.lane.b32.xlu0 %v8628_v22, %s9059_s2 }
 0x88a   :  { %v517_v23 = vpop.permute.xlu0 %516 }
 0x88b   :  { %v519_v24 = vmul.f32 %v8626_v11, %v517_v23 }
 0x88d   :  { %v976_v25 = vrot.slane %v519_v24, %v9263_v33  ;;  %v520_v26 = vpack.c.bf16 %v519_v24, %v519_v24 }
 0x88f   :  { %v977_v28 = vcombine.high %v976_v25, %v976_v25  ;;  %v984_v29 = vrot.slane %v976_v25, %v9263_v33  ;;  %522 = vrot.lane.b32.xlu1 %v520_v26, %s9051_s14 }
 0x891   :  { %v991_v27 = vrot.slane %v977_v28, %v9263_v33  ;;  %v992_v30 = vcombine.high %v984_v29, %v984_v29  ;;  %v9326_v31 = vrot.slane %v984_v29, %v9270_v45 }
 0x893   :  { %v993_v32 = vcombine.high %v991_v27, %v991_v27  ;;  %v9329_v34 = vrot.slane %v991_v27, %v9270_v45  ;;  %v9332_v35 = vrot.slane %v992_v30, %v9270_v45  ;;  %v1267_v36 = vsel %vm1266_vm8, %v1262_v54, %v9326_v31 }
 0x895   :  { %v1269_v37 = vsel %vm1266_vm8, %v1264_v58, %v9332_v35  ;;  %v1268_v38 = vsel %vm1266_vm8, %v1263_v59, %v9329_v34  ;;  %v9341_v40 = vrot.slane %v993_v32, %v9270_v45 }
 0x897   :  { %v1270_v42 = vsel %vm1266_vm8, %v1265_v62, %v9341_v40 }
 0x901   :  { %v523_v43 = vpop.permute.xlu1 %522 }
 0x902   :  { %7790 = vmatmul.mubr.msk.bf16.vlgmr.msra.gmra.mxu0 %vm293_vm7, %v523_v43 }
 0x903   :  { %7802 = vmatpush3.bf16.msra.mxu0 %v9190_v13  ;;  %7805 = vmatprep.mubr.msk.bf16.mxu0 %vm9058_vm1, %v9057_v1 }
 0x904   :  { %7803 = vmatprep.subr.bf16.mxu0 %v9057_v1 }
 0x907   :  { %7804 = vmatpush3.bf16.msra.mxu0 %v9206_v17 }
 0x908   :  { %7817 = vmatprep.subr.bf16.mxu0 %v9057_v1 }
 0x9c2   :  { %v561_v46 = vpop.f32.mrf.mxu0 }
 0x9c3   :  { %v568_v18 = vrot.slane %v561_v46, 4 }
 0x9c4   :  { %v7791_v49 = vpop.f32.mrf.mxu0 }
 0x9c5   :  { %v570_v50 = vadd.f32 %v568_v18, %v9244_v47 }
 0x9c6   :  { %v564_v54 = vpop.f32.mrf.mxu0 }
 0x9c7   :  { %8629 = vtanh.f32 %v570_v50  ;;  %v7326_v59 = vmul.f32 -1.442695, %v570_v50 }
 0x9c8   :  { %v7792_v57 = vpop.f32.mrf.mxu0 }
 0x9c9   :  { %8631 = vpow2.f32 %v7326_v59 }
 0x9d4   :  { %v8630_v58 = vpop.eup %8629 }
 0x9d5   :  { %583 = vrot.lane.b32.xlu0 %v8630_v58, %s9059_s2 }
 0x9d6   :  { %v8632_v62 = vpop.eup %8631 }
 0x9d7   :  { %v574_v63 = vadd.f32 1.0, %v8632_v62 }
 0x9d9   :  { %8633 = vrcp.f32 %v574_v63 }
 0x9e6   :  { %v8634_v2 = vpop.eup %8633 }
 0x9e7   :  { %v581_v6 = vmul.f32 %v8634_v2, %v579_v5 }
 0xa47   :  { %v584_v3 = vpop.permute.xlu0 %583 }
 0xa48   :  { %v586_v4 = vmul.f32 %v8634_v2, %v584_v3 }
 0xa4a   :  { %588 = vrot.lane.b32.xlu1 %v586_v4, %s9059_s2 }
 0xabc   :  { %v589_v7 = vpop.permute.xlu1 %588 }
 0xabd   :  { %v591_v47 = vadd.f32 %v589_v7, %v581_v6 }
 0xabf   :  { %8635 = vtanh.f32 %v591_v47 }
 0xacc   :  { %v8636_v8 = vpop.eup %8635 }
 0xacd   :  { %594 = vrot.lane.b32.xlu0 %v8636_v8, %s9059_s2 }
 0xb3f   :  { %v595_v9 = vpop.permute.xlu0 %594 }
 0xb40   :  { %v597_v10 = vmul.f32 %v8634_v2, %v595_v9 }
 0xb42   :  { %v995_v11 = vcombine.high %v597_v10, %v597_v10  ;;  %v602_v12 = vpack.c.bf16 %v597_v10, %v597_v10 }
 0xb44   :  { %v1002_v14 = vrot.slane %v995_v11, %v9263_v33  ;;  %v604_v15 = vrot.slane %v602_v12, 2 }
 0xb46   :  { %v1003_v16 = vcombine.high %v1002_v14, %v1002_v14  ;;  %v1010_v20 = vrot.slane %v1002_v14, %v9263_v33  ;;  %605 = vrot.lane.b32.xlu1 %v604_v15, %s9051_s14 }
 0xb48   :  { %v1017_v21 = vrot.slane %v1003_v16, %v9263_v33  ;;  %v1018_v22 = vcombine.high %v1010_v20, %v1010_v20  ;;  %v9361_v23 = vrot.slane %v1010_v20, %v9270_v45 }
 0xb4a   :  { %v1019_v24 = vcombine.high %v1017_v21, %v1017_v21  ;;  %v9364_v25 = vrot.slane %v1017_v21, %v9270_v45  ;;  %v9367_v26 = vrot.slane %v1018_v22, %v9270_v45  ;;  %v1272_v28 = vsel %vm1271_vm9, %v1267_v36, %v9361_v23 }
 0xb4b   :  { %v599_v36 = vrot.slane %v9240_v39, 4  ;;  %v659_v39 = vrot.slane %v591_v47, 4 }
 0xb4c   :  { %v1274_v29 = vsel %vm1271_vm9, %v1269_v37, %v9367_v26  ;;  %v1273_v27 = vsel %vm1271_vm9, %v1268_v38, %v9364_v25  ;;  %v9376_v30 = vrot.slane %v1019_v24, %v9270_v45 }
 0xb4d   :  { %v601_v37 = vadd.f32 %v599_v36, %v9242_v41 }
 0xb4e   :  { %v1275_v32 = vsel %vm1271_vm9, %v1270_v42, %v9376_v30 }
 0xbb8   :  { %v606_v43 = vpop.permute.xlu1 %605 }
 0xbb9   :  { %7798 = vmatmul.mubr.msk.bf16.vlgmr.msra.gmra.mxu1 %vm293_vm7, %v606_v43 }
 0xbba   :  { %7810 = vmatpush3.bf16.msra.mxu1 %v9190_v13  ;;  %7813 = vmatprep.mubr.msk.bf16.mxu1 %vm9058_vm1, %v9057_v1 }
 0xbbb   :  { %7811 = vmatprep.subr.bf16.mxu1 %v9057_v1 }
 0xbbe   :  { %7812 = vmatpush3.bf16.msra.mxu1 %v9206_v17 }
 0xc79   :  { %v644_v38 = vpop.f32.mrf.mxu1 }
 0xc7a   :  { %v650_v46 = vadd.f32 %v644_v38, %v601_v37 }
 0xc7b   :  { %v7799_v18 = vpop.f32.mrf.mxu1 }
 0xc7c   :  { %8637 = vtanh.f32 %v650_v46  ;;  %v7328_v54 = vmul.f32 -1.442695, %v650_v46 }
 0xc7d   :  { %v647_v42 = vpop.f32.mrf.mxu1 }
 0xc7e   :  { %8639 = vpow2.f32 %v7328_v54 }
 0xc7f   :  { %v7800_v49 = vpop.f32.mrf.mxu1 }
 0xc89   :  { %v8638_v50 = vpop.eup %8637 }
 0xc8a   :  { %663 = vrot.lane.b32.xlu0 %v8638_v50, %s9059_s2 }
 0xc8b   :  { %v8640_v57 = vpop.eup %8639 }
 0xc8c   :  { %v654_v58 = vadd.f32 1.0, %v8640_v57 }
 0xc8e   :  { %8641 = vrcp.f32 %v654_v58 }
 0xc9b   :  { %v8642_v59 = vpop.eup %8641 }
 0xc9c   :  { %v661_v41 = vmul.f32 %v8642_v59, %v659_v39 }
 0xcfc   :  { %v664_v62 = vpop.permute.xlu0 %663 }
 0xcfd   :  { %v666_v63 = vmul.f32 %v8642_v59, %v664_v62 }
 0xcff   :  { %668 = vrot.lane.b32.xlu1 %v666_v63, %s9059_s2 }
 0xd71   :  { %v669_v2 = vpop.permute.xlu1 %668 }
 0xd72   :  { %v671_v3 = vadd.f32 %v669_v2, %v661_v41 }
 0xd74   :  { %8643 = vtanh.f32 %v671_v3  ;;  %v737_v57 = vrot.slane %v671_v3, 4 }
 0xd81   :  { %v8644_v4 = vpop.eup %8643 }
 0xd82   :  { %674 = vrot.lane.b32.xlu0 %v8644_v4, %s9059_s2 }
 0xdf4   :  { %v675_v5 = vpop.permute.xlu0 %674 }
 0xdf5   :  { %v677_v6 = vmul.f32 %v8642_v59, %v675_v5 }
 0xdf7   :  { %v1027_v7 = vrot.slane %v677_v6, %v9263_v33  ;;  %v678_v8 = vpack.c.bf16 %v677_v6, %v677_v6 }
 0xdf9   :  { %v1028_v9 = vcombine.high %v1027_v7, %v1027_v7  ;;  %v1035_v10 = vrot.slane %v1027_v7, %v9263_v33  ;;  %680 = vrot.lane.b32.xlu1 %v678_v8, %s9051_s14 }
 0xdfb   :  { %v1042_v47 = vrot.slane %v1028_v9, %v9263_v33  ;;  %v1043_v11 = vcombine.high %v1035_v10, %v1035_v10  ;;  %v9396_v12 = vrot.slane %v1035_v10, %v9270_v45 }
 0xdfd   :  { %v1044_v14 = vcombine.high %v1042_v47, %v1042_v47  ;;  %v9399_v15 = vrot.slane %v1042_v47, %v9270_v45  ;;  %v9402_v16 = vrot.slane %v1043_v11, %v9270_v45  ;;  %v1277_v20 = vsel %vm1276_vm10, %v1272_v28, %v9396_v12 }
 0xdff   :  { %v9407_v21 = vrot.slane %v1044_v14, %v9270_v45  ;;  %v1279_v22 = vsel %vm1276_vm10, %v1274_v29, %v9402_v16  ;;  %v1278_v24 = vsel %vm1276_vm10, %v1273_v27, %v9399_v15 }
 0xe01   :  { %v1280_v43 = vsel %vm1276_vm10, %v1275_v32, %v9407_v21 }
 0xe6b   :  { %v681_v36 = vpop.permute.xlu1 %680 }
 0xe6c   :  { %7806 = vmatmul.mubr.msk.bf16.vlgmr.msra.gmra.mxu0 %vm293_vm7, %v681_v36 }
 0xe6d   :  { %7818 = vmatpush3.bf16.msra.mxu0 %v9190_v13  ;;  %7821 = vmatprep.mubr.msk.bf16.mxu0 %vm9058_vm1, %v9057_v1 }
 0xe6e   :  { %7819 = vmatprep.subr.bf16.mxu0 %v9057_v1 }
 0xe71   :  { %7820 = vmatpush3.bf16.msra.mxu0 %v9206_v17 }
 0xe72   :  { %7837 = vmatprep.subr.bf16.mxu0 %v9057_v1 }
 0xf2c   :  { %v719_v28 = vpop.f32.mrf.mxu0 }
 0xf2d   :  { %v726_v29 = vrot.slane %v719_v28, 4 }
 0xf2e   :  { %v7807_v27 = vpop.f32.mrf.mxu0 }
 0xf2f   :  { %v728_v38 = vadd.f32 %v726_v29, %v601_v37 }
 0xf30   :  { %v722_v46 = vpop.f32.mrf.mxu0 }
 0xf31   :  { %8645 = vtanh.f32 %v728_v38  ;;  %v7330_v13 = vmul.f32 -1.442695, %v728_v38 }
 0xf32   :  { %v7808_v32 = vpop.f32.mrf.mxu0 }
 0xf33   :  { %8647 = vpow2.f32 %v7330_v13 }
 0xf3e   :  { %v8646_v18 = vpop.eup %8645 }
 0xf3f   :  { %741 = vrot.lane.b32.xlu0 %v8646_v18, %s9059_s2 }
 0xf40   :  { %v8648_v42 = vpop.eup %8647 }
 0xf41   :  { %v732_v49 = vadd.f32 1.0, %v8648_v42 }
 0xf43   :  { %8649 = vrcp.f32 %v732_v49 }
 0xf50   :  { %v8650_v50 = vpop.eup %8649 }
 0xf51   :  { %v739_v58 = vmul.f32 %v8650_v50, %v737_v57 }
 0xfb1   :  { %v742_v54 = vpop.permute.xlu0 %741 }
 0xfb2   :  { %v744_v17 = vmul.f32 %v8650_v50, %v742_v54 }
 0xfb4   :  { %746 = vrot.lane.b32.xlu1 %v744_v17, %s9059_s2 }
0x1026   :  { %v747_v59 = vpop.permute.xlu1 %746 }
0x1027   :  { %v749_v37 = vadd.f32 %v747_v59, %v739_v58 }
0x1029   :  { %8651 = vtanh.f32 %v749_v37  ;;  %v817_v17 = vrot.slane %v749_v37, 4 }
0x1036   :  { %v8652_v62 = vpop.eup %8651 }
0x1037   :  { %752 = vrot.lane.b32.xlu0 %v8652_v62, %s9059_s2 }
0x10a9   :  { %v753_v63 = vpop.permute.xlu0 %752 }
0x10aa   :  { %v755_v39 = vmul.f32 %v8650_v50, %v753_v63 }
0x10ac   :  { %v1046_v41 = vcombine.high %v755_v39, %v755_v39  ;;  %v760_v2 = vpack.c.bf16 %v755_v39, %v755_v39 }
0x10ae   :  { %v1053_v4 = vrot.slane %v1046_v41, %v9263_v33  ;;  %v762_v5 = vrot.slane %v760_v2, 2 }
0x10b0   :  { %v1054_v6 = vcombine.high %v1053_v4, %v1053_v4  ;;  %v1061_v7 = vrot.slane %v1053_v4, %v9263_v33  ;;  %763 = vrot.lane.b32.xlu1 %v762_v5, %s9051_s14 }
0x10b2   :  { %v1068_v3 = vrot.slane %v1054_v6, %v9263_v33  ;;  %v1069_v8 = vcombine.high %v1061_v7, %v1061_v7  ;;  %v9430_v9 = vrot.slane %v1061_v7, %v9270_v45 }
0x10b4   :  { %v1070_v10 = vcombine.high %v1068_v3, %v1068_v3  ;;  %v1282_v47 = vsel %vm1281_vm11, %v1277_v20, %v9430_v9  ;;  %v9435_v11 = vrot.slane %v1069_v8, %v9270_v45  ;;  %v9438_v14 = vrot.slane %v1068_v3, %v9270_v45 }
0x10b6   :  { %v1284_v36 = vsel %vm1281_vm11, %v1279_v22, %v9435_v11  ;;  %v1283_v28 = vsel %vm1281_vm11, %v1278_v24, %v9438_v14  ;;  %v9445_v29 = vrot.slane %v1070_v10, %v9270_v45 }
0x10b8   :  { %v1285_v27 = vsel %vm1281_vm11, %v1280_v43, %v9445_v29 }
0x1122   :  { %v764_v38 = vpop.permute.xlu1 %763 }
0x1123   :  { %7814 = vmatmul.mubr.msk.bf16.vlgmr.msra.gmra.mxu1 %vm293_vm7, %v764_v38 }
0x11e3   :  { %v802_v20 = vpop.f32.mrf.mxu1 }
0x11e4   :  { %v808_v46 = vadd.f32 %v802_v20, %v9246_v51 }
0x11e5   :  { %v7815_v32 = vpop.f32.mrf.mxu1 }
0x11e6   :  { %8653 = vtanh.f32 %v808_v46  ;;  %v7332_v24 = vmul.f32 -1.442695, %v808_v46 }
0x11e7   :  { %v805_v18 = vpop.f32.mrf.mxu1 }
0x11e8   :  { %8655 = vpow2.f32 %v7332_v24 }
0x11e9   :  { %v7816_v13 = vpop.f32.mrf.mxu1 }
0x11f3   :  { %v8654_v22 = vpop.eup %8653 }
0x11f4   :  { %821 = vrot.lane.b32.xlu0 %v8654_v22, %s9059_s2 }
0x11f5   :  { %v8656_v42 = vpop.eup %8655 }
0x11f6   :  { %v812_v49 = vadd.f32 1.0, %v8656_v42 }
0x11f8   :  { %8657 = vrcp.f32 %v812_v49 }
0x1205   :  { %v8658_v50 = vpop.eup %8657 }
0x1206   :  { %v819_v57 = vmul.f32 %v8658_v50, %v817_v17 }
0x1266   :  { %v822_v43 = vpop.permute.xlu0 %821 }
0x1267   :  { %v824_v54 = vmul.f32 %v8658_v50, %v822_v43 }
0x1269   :  { %826 = vrot.lane.b32.xlu1 %v824_v54, %s9059_s2 }
0x12db   :  { %v827_v58 = vpop.permute.xlu1 %826 }
0x12dc   :  { %v829_v59 = vadd.f32 %v827_v58, %v819_v57  ;;  %v1391_v58 = vld [vmem:[%s10636_s1 + $0x10] sm:$0xff] }
0x12de   :  { %8659 = vtanh.f32 %v829_v59 }
0x12eb   :  { %v8660_v62 = vpop.eup %8659 }
0x12ec   :  { %832 = vrot.lane.b32.xlu0 %v8660_v62, %s9059_s2  ;;  %v895_v62 = vrot.slane %v829_v59, 4  ;;  %v8593_v59 = vld [vmem:[%s10640_s5 + $0x8] sm:$0xff]  }
0x135e   :  { %v833_v63 = vpop.permute.xlu0 %832 }
0x135f   :  { %v835_v39 = vmul.f32 %v8658_v50, %v833_v63 }
0x1361   :  { %v1078_v41 = vrot.slane %v835_v39, %v9263_v33  ;;  %v836_v2 = vpack.c.bf16 %v835_v39, %v835_v39 }
0x1363   :  { %v1079_v4 = vcombine.high %v1078_v41, %v1078_v41  ;;  %v1086_v5 = vrot.slane %v1078_v41, %v9263_v33  ;;  %838 = vrot.lane.b32.xlu1 %v836_v2, %s9051_s14  ;;  %v8591_v2 = vld [vmem:[%s10640_s5 + $0x18] ss:$0 sps:$4 sm:$0x11]  }
0x1364   :  { %8541 = vmatprep.subr.msk.bf16.mxu1 %vm202_vm0, %v8591_v2 }
0x1365   :  { %v1093_v37 = vrot.slane %v1079_v4, %v9263_v33  ;;  %v1094_v6 = vcombine.high %v1086_v5, %v1086_v5  ;;  %v9459_v7 = vrot.slane %v1086_v5, %v9270_v45  ;;  %v1461_v4 = vsel %vm202_vm0, %v8591_v2, 0  ;;  %v8592_v5 = vld [vmem:[%s10640_s5 + $0x10] sm:$0xff]  }
0x1366   :  { %7826 = vmatpush3.bf16.msra.mxu1 %v1461_v4 }
0x1367   :  { %v1095_v3 = vcombine.high %v1093_v37, %v1093_v37  ;;  %v9463_v8 = vsel %vm1286_vm12, %v1282_v47, %v9459_v7  ;;  %v9466_v10 = vrot.slane %v1094_v6, %v9270_v45  ;;  %v9469_v38 = vrot.slane %v1093_v37, %v9270_v45  ;;  %7827 = vmatprep.subr.bf16.mxu1 %v8592_v5  ;;  %v1390_v6 = vld [vmem:[%s10636_s1 + $0x8] sm:$0xff] }
0x1369   :  { %v9473_v20 = vsel %vm1286_vm12, %v1284_v36, %v9466_v10  ;;  %v9477_v46 = vsel %vm1286_vm12, %v1283_v28, %v9469_v38  ;;  %v9480_v32 = vrot.slane %v1095_v3, %v9270_v45  ;;  %v8594_v3 = vld [vmem:[%s10640_s5] sm:$0xff]  }
0x136a   :  { %7828 = vmatpush3.bf16.msra.mxu1 %v8592_v5  ;;  %v1311_v5 = vrot.slane %v9283_v53, %v9270_v45 }
0x136b   :  { %v9484_v47 = vsel %vm1286_vm12, %v1285_v27, %v9480_v32  ;;  %7829 = vmatprep.subr.bf16.mxu1 %v8593_v59 }
0x136e   :  { %7830 = vmatpush3.bf16.msra.mxu1 %v8593_v59 }
0x136f   :  { %7831 = vmatprep.subr.bf16.mxu1 %v8594_v3 }
0x1372   :  { %7832 = vmatpush3.bf16.msra.mxu1 %v8594_v3 }
0x1373   :  { %7853 = vmatprep.subr.bf16.mxu1 %v9057_v1 }
0x13d5   :  { %v839_v18 = vpop.permute.xlu1 %838 }
0x13d6   :  { %7822 = vmatmul.mubr.msk.bf16.vlgmr.msra.gmra.mxu0 %vm293_vm7, %v839_v18  ;;  %v9519_v18 = vld [vmem:[#allocation7 + $0x8] sm:$0xff]  }
0x13d7   :  { %7841 = vmatprep.mubr.msk.bf16.mxu0 %vm9058_vm1, %v9057_v1  ;;  %7838 = vmatpush3.bf16.msra.mxu0 %v9519_v18 }
0x13d8   :  { %7839 = vmatprep.subr.bf16.mxu0 %v9057_v1 }
0x1496   :  { %v877_v13 = vpop.f32.mrf.mxu0 }
0x1497   :  { %v884_v36 = vrot.slane %v877_v13, 4  ;;  %v1392_v13 = vld [vmem:[%s10636_s1 + $0x18] sm:$0xff] }
0x1498   :  { %v7823_v22 = vpop.f32.mrf.mxu0 }
0x1499   :  { %v886_v24 = vadd.f32 %v884_v36, %v9246_v51  ;;  %v1389_v51 = vld [vmem:[%s10636_s1] sm:$0xff] }
0x149a   :  { %v880_v28 = vpop.f32.mrf.mxu0  ;;  %v9527_v36 = vld [vmem:[#allocation7] sm:$0xff]   ;;  %v9530_v22 = vld [vmem:[#allocation8 + $0x8] sm:$0xff]  }
0x149b   :  { %8661 = vtanh.f32 %v886_v24  ;;  %v7334_v50 = vmul.f32 -1.442695, %v886_v24  ;;  %7840 = vmatpush3.bf16.msra.mxu0 %v9527_v36  ;;  %v9535_v24 = vld [vmem:[#allocation8] sm:$0xff]  }
0x149c   :  { %v7824_v42 = vpop.f32.mrf.mxu0  ;;  %7845 = vmatprep.subr.bf16.mxu0 %v9057_v1 }
0x149d   :  { %8663 = vpow2.f32 %v7334_v50 }
0x149e   :  { %7842 = vmatmul.mubr.bf16.vlgmr.msra.gmra.mxu0 %v9056_v0 }
0x149f   :  { %7846 = vmatpush3.bf16.msra.mxu0 %v9530_v22  ;;  %7849 = vmatprep.mubr.msk.bf16.mxu0 %vm9058_vm1, %v9057_v1 }
0x14a0   :  { %7847 = vmatprep.subr.bf16.mxu0 %v9057_v1 }
0x14a3   :  { %7848 = vmatpush3.bf16.msra.mxu0 %v9535_v24 }
0x14a4   :  { %7861 = vmatprep.subr.bf16.mxu0 %v9057_v1 }
0x14a8   :  { %v8662_v49 = vpop.eup %8661 }
0x14a9   :  { %899 = vrot.lane.b32.xlu0 %v8662_v49, %s9059_s2 }
0x14aa   :  { %v8664_v27 = vpop.eup %8663 }
0x14ab   :  { %v890_v43 = vadd.f32 1.0, %v8664_v27 }
0x14ad   :  { %8665 = vrcp.f32 %v890_v43 }
0x14ba   :  { %v8666_v54 = vpop.eup %8665 }
0x14bb   :  { %v897_v63 = vmul.f32 %v8666_v54, %v895_v62 }
0x151b   :  { %v900_v17 = vpop.permute.xlu0 %899 }
0x151c   :  { %v902_v57 = vmul.f32 %v8666_v54, %v900_v17 }
0x151e   :  { %904 = vrot.lane.b32.xlu1 %v902_v57, %s9059_s2 }
0x1522   :  { %1394 = vperm.xlu1 %8557, %v1389_v51  }
0x1526   :  { %1400 = vperm.xlu1 %8557, %v1391_v58   ;;  %v1303_v58 = vrot.slane %v9268_v44, %v9270_v45 }
0x1590   :  { %v905_v39 = vpop.permute.xlu1 %904 }
0x1591   :  { %v9498_v41 = vadd.f32 %v905_v39, %v897_v63 }
0x1593   :  { %8667 = vtanh.f32 %v9498_v41 }
0x159d   :  { %v1395_v42 = vpop.permute.xlu1 %1394 }
0x159e   :  { %vm1405_vm13 = vcmp.eq.s32.totalorder %v9221_v19, %v1395_v42 }
0x159f   :  { %v7335_v2 = vsel %vm1405_vm13, 1.0, %v9057_v1 }
0x15a0   :  { %v8668_v37 = vpop.eup %8667 }
0x15a1   :  { %910 = vrot.lane.b32.xlu0 %v8668_v37, %s9059_s2  ;;  %v1401_v17 = vpop.permute.xlu1 %1400 }
0x15a2   :  { %vm1407_vm15 = vcmp.eq.s32.totalorder %v9221_v19, %v1401_v17 }
0x15a5   :  { %1397 = vperm.xlu0 %8556, %v1390_v6  }
0x15a9   :  { %1403 = vperm.xlu0 %8556, %v1392_v13  }
0x1613   :  { %v911_v28 = vpop.permute.xlu0 %910 }
0x1614   :  { %v913_v49 = vmul.f32 %v8666_v54, %v911_v28 }
0x1616   :  { %v1097_v50 = vcombine.high %v913_v49, %v913_v49  ;;  %v1585_v27 = vpack.c.bf16 %v913_v49, %v913_v49 }
0x1618   :  { %v1104_v0 = vrot.slane %v1097_v50, %v9263_v33  ;;  %v1587_v43 = vrot.slane %v1585_v27, 2 }
0x161a   :  { %v1105_v57 = vcombine.high %v1104_v0, %v1104_v0  ;;  %v1112_v51 = vrot.slane %v1104_v0, %v9263_v33  ;;  %1588 = vrot.lane.b32.xlu1 %v1587_v43, %s9051_s14  ;;  %v7337_v0 = vsel %vm1407_vm15, 1.0, %v9057_v1 }
0x161c   :  { %v1119_v62 = vrot.slane %v1105_v57, %v9263_v33  ;;  %v1320_v54 = vsel %vm202_vm0, %v1112_v51, %v9459_v7  ;;  %v1245_v63 = vrot.slane %v1112_v51, %v9270_v45  ;;  %v1120_v39 = vcombine.high %v1112_v51, %v1112_v51 }
0x161d   :  { %v1324_v4 = vsel %vm1266_vm8, %v1320_v54, %v9430_v9 }
0x161e   :  { %v9560_v44 = vsel %vm1291_vm14, %v9463_v8, %v1245_v63  ;;  %v1328_v7 = vsel %vm1271_vm9, %v1324_v4, %v9396_v12  ;;  %v1253_v59 = vrot.slane %v1120_v39, %v9270_v45  ;;  %v1322_v37 = vsel %vm202_vm0, %v1120_v39, %v9466_v10  ;;  %v1578_v63 = vpop.f32.mrf.mxu0 }
0x161f   :  { %v1332_v6 = vsel %vm1276_vm10, %v1328_v7, %v9361_v23  ;;  %v1326_v9 = vsel %vm1266_vm8, %v1322_v37, %v9435_v11  ;;  %v1249_v53 = vrot.slane %v1119_v62, %v9270_v45  ;;  %v1321_v8 = vsel %vm202_vm0, %v1119_v62, %v9469_v38 }
0x1620   :  { %v1398_v3 = vpop.permute.xlu0 %1397  ;;  %v1336_v12 = vsel %vm1281_vm11, %v1332_v6, %v9326_v31  ;;  %v9578_v13 = vsel %vm1291_vm14, %v9473_v20, %v1253_v59  ;;  %v1330_v10 = vsel %vm1271_vm9, %v1326_v9, %v9402_v16  ;;  %v1325_v23 = vsel %vm1266_vm8, %v1321_v8, %v9438_v14 }
0x1621   :  { %vm1406_vm2 = vcmp.eq.s32.totalorder %v9221_v19, %v1398_v3  ;;  %v1340_v11 = vsel %vm1286_vm12, %v1336_v12, %v9279_v52  ;;  %v1334_v38 = vsel %vm1276_vm10, %v1330_v10, %v9367_v26  ;;  %v9591_v31 = vsel %vm1291_vm14, %v9477_v46, %v1249_v53 }
0x1622   :  { %v7336_v20 = vsel %vm1406_vm2, 1.0, %v9057_v1  ;;  %v9595_v28 = vsel %vm1291_vm14, %v1340_v11, %v1303_v58  ;;  %v1338_v16 = vsel %vm1281_vm11, %v1334_v38, %v9332_v35  ;;  %v1329_v14 = vsel %vm1271_vm9, %v1325_v23, %v9399_v15 }
0x1623   :  { %v1417_v42 = vpack.c.bf16 %v7336_v20, %v7335_v2  ;;  %v8558_v52 = vpack.i.bf16 %v9595_v28, %v9560_v44  ;;  %v1342_v26 = vsel %vm1286_vm12, %v1338_v16, %v9289_v55  ;;  %v1333_v46 = vsel %vm1276_vm10, %v1329_v14, %v9364_v25 }
0x1624   :  { %v1404_v49 = vpop.permute.xlu0 %1403  ;;  %v9608_v50 = vsel %vm1291_vm14, %v1342_v26, %v1311_v5  ;;  %v1307_v35 = vrot.slane %v9275_v48, %v9270_v45  ;;  %v1337_v15 = vsel %vm1281_vm11, %v1333_v46, %v9329_v34  ;;  %v1121_v27 = vcombine.high %v1119_v62, %v1119_v62 }
0x1625   :  { %vm1408_vm3 = vcmp.eq.s32.totalorder %v9221_v19, %v1404_v49  ;;  %7833 = vmatprep.mubr.msk.bf16.mxu1 %vm195_vm4, %v1417_v42  ;;  %v8568_v55 = vpack.i.bf16 %v9608_v50, %v9578_v13  ;;  %v1341_v25 = vsel %vm1286_vm12, %v1337_v15, %v9292_v56  ;;  %v1654_v42 = vrot.slane %v9498_v41, 4  ;;  %v9676_v15 = vld [vmem:[%s10644_s9 + $0x8] sm:$0xff]   ;;  %v9682_v41 = vld [vmem:[%s10644_s9] sm:$0xff]  }
0x1626   :  { %v7338_v48 = vsel %vm1408_vm3, 1.0, %v9057_v1  ;;  %v9625_v43 = vsel %vm1291_vm14, %v1341_v25, %v1307_v35  ;;  %v1257_v34 = vrot.slane %v1121_v27, %v9270_v45  ;;  %v1323_v17 = vsel %vm202_vm0, %v1121_v27, %v9480_v32 }
0x1627   :  { %v1418_v57 = vpack.c.bf16 %v7338_v48, %v7337_v0  ;;  %v8563_v19 = vpack.i.bf16 %v9625_v43, %v9591_v31  ;;  %v1327_v51 = vsel %vm1266_vm8, %v1323_v17, %v9445_v29  ;;  %v1315_v32 = vrot.slane %v9302_v60, %v9270_v45 }
0x1628   :  { %v9636_v56 = vsel %vm1291_vm14, %v9484_v47, %v1257_v34  ;;  %v1331_v58 = vsel %vm1271_vm9, %v1327_v51, %v9407_v21  ;;  %vm1380_vm0 = vcmask 130048   ;;  %vm2262_vm8 = vcmask 1042434  }
0x1629   :  { %7834 = vmatmul.mubr.msk.bf16.vlgmr.msra.gmra.mxu1 %vm195_vm4, %v1418_v57  ;;  %v1335_v62 = vsel %vm1276_vm10, %v1331_v58, %v9376_v30  ;;  %v7843_v30 = vpop.f32.mrf.mxu0  ;;  %vm1964_vm4 = vcmask 57344   ;;  %vm2265_vm9 = vcmask 1043459  }
0x162a   :  { %v1339_v54 = vsel %vm1281_vm11, %v1335_v62, %v9341_v40  ;;  %7857 = vmatprep.mubr.msk.bf16.mxu1 %vm9058_vm1, %v9057_v1  ;;  %v7339_v40 = vld [vmem:[#allocation5] ss:$0 sm:$0xff]  ;;  %7854 = vmatpush3.bf16.msra.mxu1 %v9676_v15 }
0x162b   :  { %v1343_v29 = vsel %vm1286_vm12, %v1339_v54, %v9305_v61  ;;  %v1581_v39 = vpop.f32.mrf.mxu0  ;;  %7855 = vmatprep.subr.bf16.mxu1 %v9057_v1 }
0x162c   :  { %v9652_v47 = vsel %vm1291_vm14, %v1343_v29, %v1315_v32 }
0x162d   :  { %v8573_v21 = vpack.i.bf16 %v9652_v47, %v9636_v56  ;;  %v7844_v2 = vpop.f32.mrf.mxu0 }
0x162e   :  { %7856 = vmatpush3.bf16.msra.mxu1 %v9682_v41 }
0x162f   :  { %7867 = vmatprep.subr.bf16.mxu1 %v9057_v1 }
0x168c   :  { %v1589_v60 = vpop.permute.xlu1 %1588 }
0x168d   :  { %7850 = vmatmul.mubr.msk.bf16.vlgmr.msra.gmra.mxu0 %vm293_vm7, %v1589_v60 }
0x168e   :  { %7863 = vmatprep.mubr.msk.bf16.mxu0 %vm9058_vm1, %v9057_v1 }
0x16e9   :  { %v7835_v4 = vpop.f32.mrf.mxu1 }
0x16ea   :  { %v9659_v5 = vadd.f32 %v7835_v4, %v7339_v40 }
0x16eb   :  { %v1497_v61 = vpop.f32.mrf.mxu1 }
0x16ec   :  { %v9663_v37 = vadd.f32 %v7339_v40, %v1497_v61 }
0x16ed   :  { %v7836_v7 = vpop.f32.mrf.mxu1 }
0x16ee   :  { %v9661_v59 = vadd.f32 %v7836_v7, %v7339_v40  ;;  %v1584_v6 = vadd.f32 %v1578_v63, %v9663_v37 }
0x16ef   :  { %v9719_v56 = vpop.f32.mrf.mxu1 }
0x174d   :  { %v1639_v9 = vpop.f32.mrf.mxu0 }
0x174e   :  { %v1645_v53 = vadd.f32 %v1639_v9, %v1584_v6 }
0x174f   :  { %v7851_v8 = vpop.f32.mrf.mxu0 }
0x1750   :  { %8669 = vtanh.f32 %v1645_v53  ;;  %v7351_v23 = vmul.f32 -1.442695, %v1645_v53 }
0x1751   :  { %v1642_v3 = vpop.f32.mrf.mxu0 }
0x1752   :  { %8671 = vpow2.f32 %v7351_v23 }
0x1753   :  { %v7852_v12 = vpop.f32.mrf.mxu0 }
0x175d   :  { %v8670_v10 = vpop.eup %8669 }
0x175e   :  { %1658 = vrot.lane.b32.xlu0 %v8670_v10, %s9059_s2 }
0x175f   :  { %v8672_v11 = vpop.eup %8671 }
0x1760   :  { %v1649_v38 = vadd.f32 1.0, %v8672_v11 }
0x1762   :  { %8673 = vrcp.f32 %v1649_v38 }
0x176f   :  { %v8674_v20 = vpop.eup %8673 }
0x1770   :  { %v1656_v26 = vmul.f32 %v8674_v20, %v1654_v42 }
0x17d0   :  { %v1659_v16 = vpop.permute.xlu0 %1658 }
0x17d1   :  { %v1661_v14 = vmul.f32 %v8674_v20, %v1659_v16 }
0x17d3   :  { %1663 = vrot.lane.b32.xlu1 %v1661_v14, %s9059_s2 }
0x1845   :  { %v1664_v46 = vpop.permute.xlu1 %1663 }
0x1846   :  { %v9669_v49 = vadd.f32 %v1664_v46, %v1656_v26 }
0x1848   :  { %8675 = vtanh.f32 %v9669_v49 }
0x1855   :  { %v8676_v35 = vpop.eup %8675 }
0x1856   :  { %1669 = vrot.lane.b32.xlu0 %v8676_v35, %s9059_s2 }
0x185a   :  { %8559 = vrot.lane.b32.xlu0 %v8558_v52, %s9051_s14 }
0x185e   :  { %8569 = vrot.lane.b32.xlu0 %v8568_v55, %s9051_s14 }
0x18c8   :  { %v1670_v27 = vpop.permute.xlu0 %1669 }
0x18c9   :  { %v1672_v0 = vmul.f32 %v8674_v20, %v1670_v27 }
0x18cb   :  { %v1673_v25 = vpack.c.bf16 %v1672_v0, %v1672_v0 }
0x18cc   :  { %v8560_v48 = vpop.permute.xlu0 %8559 }
0x18cd   :  { %v8562_v34 = vunpack.i.h.bf16 %v8560_v48  ;;  %v8561_v17 = vunpack.i.l.bf16 %v8560_v48  ;;  %1675 = vrot.lane.b32.xlu1 %v1673_v25, %s9051_s14 }
0x18cf   :  { %v1381_v44 = vsel %vm1380_vm0, %v8561_v17, %v8562_v34 }
0x18d0   :  { %v1385_v28 = vpack.c.bf16 %v1381_v44, %v1381_v44  ;;  %v8570_v51 = vpop.permute.xlu0 %8569 }
0x18d1   :  { %8564 = vrot.lane.b32.xlu1 %v8563_v19, %s9051_s14  ;;  %v8572_v62 = vunpack.i.h.bf16 %v8570_v51  ;;  %v8571_v32 = vunpack.i.l.bf16 %v8570_v51 }
0x18d2   :  { %v9702_v13 = vsel %vm293_vm7, %v1385_v28, 0  ;;  %v9752_v42 = vsel %vm1276_vm10, %v1385_v28, 0 }
0x18d3   :  { %7862 = vmatpush3.bf16.xpose.msra.mxu0 %v9702_v13  ;;  %v1383_v39 = vsel %vm1380_vm0, %v8571_v32, %v8572_v62 }
0x18d4   :  { %7873 = vmatprep.subr.bf16.mxu0 %v9057_v1  ;;  %v9725_v7 = vpack.c.bf16 %v1383_v39, %v1383_v39 }
0x18d5   :  { %8574 = vrot.lane.b32.xlu1 %v8573_v21, %s9051_s14 }
0x18d6   :  { %v9733_v10 = vsel %vm293_vm7, %v9725_v7, 0 }
0x193f   :  { %v9707_v52 = vpop.permute.xlu1 %1675 }
0x1940   :  { %7858 = vmatmul.mubr.msk.bf16.vlgmr.msra.gmra.mxu1 %vm293_vm7, %v9707_v52 }
0x1941   :  { %7869 = vmatprep.mubr.msk.bf16.mxu1 %vm9058_vm1, %v9057_v1 }
0x1943   :  { %v8565_v50 = vpop.permute.xlu1 %8564 }
0x1944   :  { %v8567_v31 = vunpack.i.h.bf16 %v8565_v50  ;;  %v8566_v55 = vunpack.i.l.bf16 %v8565_v50 }
0x1946   :  { %v1382_v43 = vsel %vm1380_vm0, %v8566_v55, %v8567_v31 }
0x1947   :  { %v1386_v57 = vpack.c.bf16 %v1382_v43, %v1382_v43  ;;  %v8575_v58 = vpop.permute.xlu1 %8574 }
0x1948   :  { %v8577_v47 = vunpack.i.h.bf16 %v8575_v58  ;;  %v8576_v21 = vunpack.i.l.bf16 %v8575_v58 }
0x1949   :  { %v9715_v19 = vsel %vm293_vm7, %v1386_v57, 0  ;;  %v9760_v46 = vsel %vm1276_vm10, %v1386_v57, 0 }
0x194a   :  { %7868 = vmatpush3.bf16.xpose.msra.mxu1 %v9715_v19  ;;  %v1384_v4 = vsel %vm1380_vm0, %v8576_v21, %v8577_v47 }
0x194b   :  { %7879 = vmatprep.subr.bf16.mxu1 %v9057_v1  ;;  %v9728_v8 = vpack.c.bf16 %v1384_v4, %v1384_v4 }
0x194d   :  { %v9742_v38 = vsel %vm293_vm7, %v9728_v8, 0 }
0x1a00   :  { %v1726_v54 = vpop.f32.mrf.mxu1 }
0x1a01   :  { %v1732_v29 = vpack.c.bf16 %v1726_v54, %v1726_v54 }
0x1a02   :  { %v7859_v63 = vpop.f32.mrf.mxu1 }
0x1a03   :  { %v1740_v30 = vrot.slane %v1732_v29, %v9263_v33 }
0x1a04   :  { %v1729_v2 = vpop.f32.mrf.mxu1 }
0x1a05   :  { %v1741_v60 = vcombine.high %v1740_v30, %v1740_v30  ;;  %v1748_v40 = vrot.slane %v1740_v30, %v9263_v33 }
0x1a06   :  { %v7860_v61 = vpop.f32.mrf.mxu1 }
0x1a07   :  { %v1755_v6 = vrot.slane %v1741_v60, %v9263_v33  ;;  %v1757_v9 = vunpack.i.h.s16 %v1748_v40  ;;  %v7355_v53 = vpack.i.b16 %v1748_v40, %v1748_v40 }
0x1a09   :  { %v1764_v3 = vrot.slane %v7355_v53, %v9270_v45  ;;  %v1811_v12 = vpack.i.b16 %v1757_v9, %v1757_v9  ;;  %v1759_v23 = vunpack.i.h.s16 %v1755_v6  ;;  %v7358_v20 = vpack.i.b16 %v1755_v6, %v1755_v6 }
0x1a0b   :  { %v1815_v11 = vrot.slane %v1811_v12, %v9270_v45  ;;  %7864 = vmatmul.mubr.msk.bf16.vlgmr.msra.gmra.mxu0 %vm293_vm7, %v1764_v3  ;;  %v1913_v16 = vpack.i.b16 %v1759_v23, %v1759_v23  ;;  %v1866_v14 = vrot.slane %v7358_v20, %v9270_v45 }
0x1a0c   :  { %7874 = vmatpush3.bf16.xpose.msra.mxu0 %v9733_v10  ;;  %7875 = vmatprep.mubr.msk.bf16.mxu0 %vm9058_vm1, %v9057_v1 }
0x1a0d   :  { %7870 = vmatmul.mubr.msk.bf16.vlgmr.msra.gmra.mxu1 %vm293_vm7, %v1815_v11  ;;  %7885 = vmatprep.subr.bf16.mxu0 %v9057_v1  ;;  %v1917_v26 = vrot.slane %v1913_v16, %v9270_v45 }
0x1a0e   :  { %7880 = vmatpush3.bf16.xpose.msra.mxu1 %v9742_v38  ;;  %7881 = vmatprep.mubr.msk.bf16.mxu1 %vm9058_vm1, %v9057_v1 }
0x1a0f   :  { %7891 = vmatprep.subr.bf16.mxu1 %v9057_v1 }
0x1a13   :  { %7876 = vmatmul.mubr.msk.bf16.vlgmr.msra.gmra.mxu0 %vm293_vm7, %v1866_v14 }
0x1a14   :  { %7886 = vmatpush3.bf16.msra.mxu0 %v9752_v42  ;;  %7887 = vmatprep.mubr.msk.bf16.mxu0 %vm9058_vm1, %v9057_v1 }
0x1a15   :  { %7882 = vmatmul.mubr.msk.bf16.vlgmr.msra.gmra.mxu1 %vm293_vm7, %v1917_v26  ;;  %7897 = vmatprep.subr.bf16.mxu0 %v9057_v1 }
0x1a16   :  { %7892 = vmatpush3.bf16.msra.mxu1 %v9760_v46  ;;  %7893 = vmatprep.mubr.msk.bf16.mxu1 %vm9058_vm1, %v9057_v1 }
0x1a17   :  { %7903 = vmatprep.subr.bf16.mxu1 %v9057_v1 }
0x1acb   :  { %v1805_v35 = vpop.f32.mrf.mxu0 }
0x1acc   :  { %v1965_v27 = vsel %vm1964_vm4, %v1805_v35, -inf }
0x1acd   :  { %v1856_v0 = vpop.f32.mrf.mxu1  ;;  %1966 = vmax.xlane.f32.xlu0 %v1965_v27  ;;  %v7865_v25 = vpop.f32.mrf.mxu0 }
0x1ace   :  { %v1968_v48 = vsel %vm1964_vm4, %v1856_v0, -inf }
0x1acf   :  { %1969 = vmax.xlane.f32.xlu1 %v1968_v48  ;;  %v1808_v34 = vpop.f32.mrf.mxu0  ;;  %v7871_v17 = vpop.f32.mrf.mxu1 }
0x1ad1   :  { %v7866_v44 = vpop.f32.mrf.mxu0  ;;  %v1859_v28 = vpop.f32.mrf.mxu1 }
0x1ad2   :  { %v9778_v28 = vsel %vm1276_vm10, %v9725_v7, 0 }
0x1ad3   :  { %v7872_v50 = vpop.f32.mrf.mxu1  ;;  %v1907_v31 = vpop.f32.mrf.mxu0 }
0x1ad4   :  { %v1971_v55 = vsel %vm1964_vm4, %v1907_v31, -inf }
0x1ad5   :  { %v1958_v43 = vpop.f32.mrf.mxu1  ;;  %1972 = vmax.xlane.f32.xlu0 %v1971_v55  ;;  %v7877_v57 = vpop.f32.mrf.mxu0 }
0x1ad6   :  { %v1974_v62 = vsel %vm1964_vm4, %v1958_v43, -inf }
0x1ad7   :  { %v1910_v51 = vpop.f32.mrf.mxu0  ;;  %v7883_v58 = vpop.f32.mrf.mxu1 }
0x1ad8   :  { %v9798_v58 = vld [vmem:[#allocation11] sm:$0xff]  }
0x1ad9   :  { %v1961_v32 = vpop.f32.mrf.mxu1  ;;  %1975 = vmax.xlane.f32.xlu0 %v1974_v62  ;;  %v7878_v54 = vpop.f32.mrf.mxu0 }
0x1ada   :  { %v9816_v32 = vld [vmem:[#allocation10 + $0x8] sm:$0xff]   ;;  %v9819_v54 = vld [vmem:[#allocation10] sm:$0xff]  }
0x1adb   :  { %v7884_v29 = vpop.f32.mrf.mxu1 }
0x1b56   :  { %v1967_v47 = vpop.xlane.xlu0 %1966 }
0x1b57   :  { %v1977_v21 = vsub.f32 %v1805_v35, %v1967_v47 }
0x1b58   :  { %v1970_v63 = vpop.xlane.xlu1 %1969 }
0x1b59   :  { %v1981_v30 = vmul.f32 1.442695, %v1977_v21  ;;  %v1978_v39 = vsub.f32 %v1856_v0, %v1970_v63 }
0x1b5b   :  { %8677 = vpow2.f32 %v1981_v30  ;;  %v1983_v2 = vmul.f32 1.442695, %v1978_v39 }
0x1b5d   :  { %8679 = vpow2.f32 %v1983_v2 }
0x1b5e   :  { %v1973_v60 = vpop.xlane.xlu0 %1972 }
0x1b5f   :  { %v1979_v40 = vsub.f32 %v1907_v31, %v1973_v60  ;;  %v9786_v31 = vsel %vm1276_vm10, %v9728_v8, 0  ;;  %vm7273_vm10 = vcmask 257024  }
0x1b61   :  { %v1985_v4 = vmul.f32 1.442695, %v1979_v40 }
0x1b62   :  { %v1976_v61 = vpop.xlane.xlu0 %1975 }
0x1b63   :  { %8681 = vpow2.f32 %v1985_v4  ;;  %v1980_v6 = vsub.f32 %v1958_v43, %v1976_v61  ;;  %v9794_v43 = vld [vmem:[#allocation11 + $0x8] sm:$0xff]  }
0x1b65   :  { %v1987_v9 = vmul.f32 1.442695, %v1980_v6 }
0x1b67   :  { %8683 = vpow2.f32 %v1987_v9 }
0x1b68   :  { %v8678_v53 = vpop.eup %8677 }
0x1b69   :  { %v1989_v3 = vsel %vm1964_vm4, %v8678_v53, 0.0 }
0x1b6a   :  { %v8680_v12 = vpop.eup %8679  ;;  %1990 = vadd.xlane.f32.xlu1 %v1989_v3 }
0x1b6b   :  { %v1992_v23 = vsel %vm1964_vm4, %v8680_v12, 0.0 }
0x1b6c   :  { %1993 = vadd.xlane.f32.xlu0 %v1992_v23 }
0x1b70   :  { %v8682_v11 = vpop.eup %8681 }
0x1b71   :  { %v1995_v20 = vsel %vm1964_vm4, %v8682_v11, 0.0 }
0x1b72   :  { %1996 = vadd.xlane.f32.xlu1 %v1995_v20 }
0x1b74   :  { %v8684_v16 = vpop.eup %8683 }
0x1b75   :  { %v1998_v14 = vsel %vm1964_vm4, %v8684_v16, 0.0 }
0x1b76   :  { %1999 = vadd.xlane.f32.xlu0 %v1998_v14 }
0x1bf3   :  { %v1991_v26 = vpop.xlane.xlu1 %1990 }
0x1bf4   :  { %8685 = vrcp.f32 %v1991_v26 }
0x1bf5   :  { %v1994_v35 = vpop.xlane.xlu0 %1993 }
0x1bf6   :  { %8687 = vrcp.f32 %v1994_v35 }
0x1bfb   :  { %v1997_v27 = vpop.xlane.xlu1 %1996 }
0x1bfc   :  { %8689 = vrcp.f32 %v1997_v27 }
0x1bff   :  { %v2000_v0 = vpop.xlane.xlu0 %1999 }
0x1c00   :  { %8691 = vrcp.f32 %v2000_v0 }
0x1c01   :  { %v8686_v25 = vpop.eup %8685 }
0x1c02   :  { %v2005_v48 = vmul.f32 %v8686_v25, %v8678_v53 }
0x1c03   :  { %v8688_v34 = vpop.eup %8687 }
0x1c04   :  { %v2009_v17 = vpack.c.bf16 %v2005_v48, %v2005_v48  ;;  %v2006_v44 = vmul.f32 %v8688_v34, %v8680_v12 }
0x1c06   :  { %7888 = vmatmul.mubr.msk.bf16.vlgmr.msra.gmra.mxu0 %vm2013_vm5, %v2009_v17  ;;  %v2010_v50 = vpack.c.bf16 %v2006_v44, %v2006_v44 }
0x1c07   :  { %7898 = vmatpush3.bf16.msra.mxu0 %v9778_v28  ;;  %7899 = vmatprep.mubr.msk.bf16.mxu0 %vm9058_vm1, %v9057_v1 }
0x1c08   :  { %7894 = vmatmul.mubr.msk.bf16.vlgmr.msra.gmra.mxu1 %vm2013_vm5, %v2010_v50  ;;  %7909 = vmatprep.subr.bf16.mxu0 %v9057_v1 }
0x1c09   :  { %v8690_v55 = vpop.eup %8689  ;;  %7904 = vmatpush3.bf16.msra.mxu1 %v9786_v31  ;;  %7905 = vmatprep.mubr.msk.bf16.mxu1 %vm9058_vm1, %v9057_v1 }
0x1c0a   :  { %v2007_v7 = vmul.f32 %v8690_v55, %v8682_v11  ;;  %7917 = vmatprep.subr.bf16.mxu1 %v9057_v1 }
0x1c0c   :  { %v2011_v57 = vpack.c.bf16 %v2007_v7, %v2007_v7 }
0x1c0d   :  { %v8692_v51 = vpop.eup %8691 }
0x1c0e   :  { %7900 = vmatmul.mubr.msk.bf16.vlgmr.msra.gmra.mxu0 %vm2013_vm5, %v2011_v57  ;;  %v2008_v8 = vmul.f32 %v8692_v51, %v8684_v16 }
0x1c0f   :  { %7910 = vmatpush3.bf16.msra.mxu0 %v9794_v43  ;;  %7913 = vmatprep.mubr.msk.bf16.mxu0 %vm9058_vm1, %v9057_v1 }
0x1c10   :  { %v2012_v62 = vpack.c.bf16 %v2008_v8, %v2008_v8  ;;  %7911 = vmatprep.subr.bf16.mxu0 %v9057_v1 }
0x1c12   :  { %7906 = vmatmul.mubr.msk.bf16.vlgmr.msra.gmra.mxu1 %vm2013_vm5, %v2012_v62 }
0x1c13   :  { %7912 = vmatpush3.bf16.msra.mxu0 %v9798_v58  ;;  %7921 = vmatprep.mubr.msk.bf16.mxu1 %vm9058_vm1, %v9057_v1 }
0x1c14   :  { %7925 = vmatprep.subr.bf16.mxu0 %v9057_v1  ;;  %7918 = vmatpush3.bf16.msra.mxu1 %v9816_v32 }
0x1c15   :  { %7919 = vmatprep.subr.bf16.mxu1 %v9057_v1 }
0x1c16   :  { %7914 = vmatmul.mubr.msk.bf16.vlgmr.msra.gmra.mxu0 %vm293_vm7, %v9707_v52 }
0x1c17   :  { %7926 = vmatpush3.bf16.msra.mxu0 %v9519_v18  ;;  %7929 = vmatprep.mubr.msk.bf16.mxu0 %vm9058_vm1, %v9057_v1 }
0x1c18   :  { %7927 = vmatprep.subr.bf16.mxu0 %v9057_v1  ;;  %7920 = vmatpush3.bf16.msra.mxu1 %v9819_v54 }
0x1c19   :  { %7933 = vmatprep.subr.bf16.mxu1 %v9057_v1 }
0x1c1b   :  { %7928 = vmatpush3.bf16.msra.mxu0 %v9527_v36 }
0x1c1c   :  { %7941 = vmatprep.subr.bf16.mxu0 %v9057_v1 }
0x1cc6   :  { %v2053_v18 = vpop.f32.mrf.mxu0 }
0x1cc7   :  { %v2194_v6 = vpack.c.bf16 %v2053_v18, %v2053_v18 }
0x1cc8   :  { %v7889_v29 = vpop.f32.mrf.mxu0  ;;  %v2098_v47 = vpop.f32.mrf.mxu1 }
0x1cc9   :  { %v2195_v36 = vpack.c.bf16 %v2098_v47, %v2098_v47  ;;  %v2254_v14 = vunpack.c.l.b16 %v2194_v6 }
0x1cca   :  { %v2056_v21 = vpop.f32.mrf.mxu0  ;;  %v7895_v63 = vpop.f32.mrf.mxu1 }
0x1ccb   :  { %v2255_v40 = vunpack.c.l.b16 %v2195_v36 }
0x1ccc   :  { %v7890_v30 = vpop.f32.mrf.mxu0  ;;  %v2101_v39 = vpop.f32.mrf.mxu1 }
0x1ccd   :  { %v2258_v12 = vrot.slane %v2255_v40, 7 }
0x1cce   :  { %v7896_v2 = vpop.f32.mrf.mxu1  ;;  %v2143_v60 = vpop.f32.mrf.mxu0 }
0x1ccf   :  { %v2196_v4 = vpack.c.bf16 %v2143_v60, %v2143_v60  ;;  %v2260_v0 = vsel %vm2259_vm6, %v2258_v12, %v2254_v14 }
0x1cd0   :  { %v7901_v61 = vpop.f32.mrf.mxu0 }
0x1cd1   :  { %v2256_v9 = vunpack.c.l.b16 %v2196_v4 }
0x1cd2   :  { %v2146_v53 = vpop.f32.mrf.mxu0  ;;  %v2188_v3 = vpop.f32.mrf.mxu1 }
0x1cd3   :  { %v2197_v23 = vpack.c.bf16 %v2188_v3, %v2188_v3  ;;  %v2261_v11 = vrot.slane %v2256_v9, 6 }
0x1cd4   :  { %v7902_v20 = vpop.f32.mrf.mxu0  ;;  %v7907_v16 = vpop.f32.mrf.mxu1 }
0x1cd5   :  { %v2257_v26 = vunpack.c.l.b16 %v2197_v23  ;;  %v2263_v48 = vsel %vm2262_vm8, %v2261_v11, %v2260_v0  ;;  %v2424_v11 = vrot.slane %v9669_v49, 4 }
0x1cd6   :  { %v2191_v35 = vpop.f32.mrf.mxu1  ;;  %v2244_v27 = vpop.f32.mrf.mxu0 }
0x1cd7   :  { %v2264_v25 = vrot.slane %v2257_v26, 5 }
0x1cd8   :  { %v7908_v34 = vpop.f32.mrf.mxu1  ;;  %v7915_v17 = vpop.f32.mrf.mxu0 }
0x1cd9   :  { %v2266_v44 = vsel %vm2265_vm9, %v2264_v25, %v2263_v48 }
0x1cda   :  { %v2267_v50 = vpack.c.b16 %v2266_v44, %v2266_v44  ;;  %v2247_v55 = vpop.f32.mrf.mxu0 }
0x1cdc   :  { %v7916_v7 = vpop.f32.mrf.mxu0  ;;  %7922 = vmatmul.mubr.msk.bf16.vlgmr.msra.gmra.mxu1 %vm293_vm7, %v2267_v50 }
0x1cdd   :  { %7934 = vmatpush3.bf16.msra.mxu1 %v9530_v22  ;;  %7937 = vmatprep.mubr.msk.bf16.mxu1 %vm9058_vm1, %v9057_v1 }
0x1cde   :  { %7935 = vmatprep.subr.bf16.mxu1 %v9057_v1 }
0x1ce1   :  { %7936 = vmatpush3.bf16.msra.mxu1 %v9535_v24 }
0x1ce2   :  { %7949 = vmatprep.subr.bf16.mxu1 %v9057_v1 }
0x1ce4   :  { %7938 = vmatmul.mubr.msk.bf16.vlgmr.msra.gmra.mxu1 %vm293_vm7, %v9707_v52 }
0x1ce5   :  { %7950 = vmatpush3.bf16.xpose.msra.mxu1 %v9702_v13  ;;  %7951 = vmatprep.mubr.msk.bf16.mxu1 %vm9058_vm1, %v9057_v1 }
0x1ce6   :  { %7961 = vmatprep.subr.bf16.mxu1 %v9057_v1 }
0x1d9c   :  { %v2317_v22 = vpop.f32.mrf.mxu1 }
0x1d9d   :  { %v2318_v57 = vadd.f32 %v2317_v22, %v2244_v27 }
0x1d9e   :  { %v7923_v51 = vpop.f32.mrf.mxu1 }
0x1d9f   :  { %8693 = vtanh.f32 %v2318_v57 }
0x1da0   :  { %v2320_v8 = vpop.f32.mrf.mxu1 }
0x1da2   :  { %v7924_v62 = vpop.f32.mrf.mxu1 }
0x1da4   :  { %v2406_v18 = vpop.f32.mrf.mxu1 }
0x1da5   :  { %v2413_v39 = vrot.slane %v2406_v18, 4 }
0x1da6   :  { %v7939_v24 = vpop.f32.mrf.mxu1 }
0x1da8   :  { %v2409_v29 = vpop.f32.mrf.mxu1 }
0x1daa   :  { %v7940_v47 = vpop.f32.mrf.mxu1 }
0x1dac   :  { %v8694_v21 = vpop.eup %8693 }
0x1dad   :  { %v2324_v52 = vpack.c.bf16 %v8694_v21, %v8694_v21  ;;  %7274 = vst.msk [vmem:[#allocation13] sm:$0xf] %vm7273_vm10, %v8694_v21 }
0x1daf   :  { %7930 = vmatmul.mubr.msk.bf16.vlgmr.msra.gmra.mxu0 %vm293_vm7, %v2324_v52 }
0x1db0   :  { %7942 = vmatpush3.bf16.msra.mxu0 %v9676_v15  ;;  %7945 = vmatprep.mubr.msk.bf16.mxu0 %vm9058_vm1, %v9057_v1 }
0x1db1   :  { %7943 = vmatprep.subr.bf16.mxu0 %v9057_v1 }
0x1db4   :  { %7944 = vmatpush3.bf16.msra.mxu0 %v9682_v41 }
0x1db5   :  { %7955 = vmatprep.subr.bf16.mxu0 %v9057_v1 }
0x1e6f   :  { %v2362_v63 = vpop.f32.mrf.mxu0 }
0x1e70   :  { %v2369_v36 = vrot.slane %v2362_v63, 4 }
0x1e71   :  { %v7931_v30 = vpop.f32.mrf.mxu0 }
0x1e72   :  { %v2371_v2 = vadd.f32 %v2369_v36, %v9663_v37 }
0x1e73   :  { %v2365_v60 = vpop.f32.mrf.mxu0 }
0x1e74   :  { %v2415_v40 = vadd.f32 %v2413_v39, %v2371_v2 }
0x1e75   :  { %v7932_v4 = vpop.f32.mrf.mxu0 }
0x1e76   :  { %8695 = vtanh.f32 %v2415_v40  ;;  %v7373_v6 = vmul.f32 -1.442695, %v2415_v40 }
0x1e78   :  { %8697 = vpow2.f32 %v7373_v6 }
0x1e83   :  { %v8696_v61 = vpop.eup %8695 }
0x1e84   :  { %2428 = vrot.lane.b32.xlu1 %v8696_v61, %s9059_s2 }
0x1e85   :  { %v8698_v9 = vpop.eup %8697 }
0x1e86   :  { %v2419_v53 = vadd.f32 1.0, %v8698_v9 }
0x1e88   :  { %8699 = vrcp.f32 %v2419_v53 }
0x1e95   :  { %v8700_v3 = vpop.eup %8699 }
0x1e96   :  { %v2426_v37 = vmul.f32 %v8700_v3, %v2424_v11 }
0x1ef6   :  { %v2429_v12 = vpop.permute.xlu1 %2428 }
0x1ef7   :  { %v2431_v23 = vmul.f32 %v8700_v3, %v2429_v12 }
0x1ef9   :  { %2433 = vrot.lane.b32.xlu0 %v2431_v23, %s9059_s2 }
0x1f6b   :  { %v2434_v20 = vpop.permute.xlu0 %2433 }
0x1f6c   :  { %v9852_v16 = vadd.f32 %v2434_v20, %v2426_v37 }
0x1f6e   :  { %8701 = vtanh.f32 %v9852_v16 }
0x1f7b   :  { %v8702_v14 = vpop.eup %8701 }
0x1f7c   :  { %2439 = vrot.lane.b32.xlu1 %v8702_v14, %s9059_s2 }
0x1fee   :  { %v2440_v26 = vpop.permute.xlu1 %2439 }
0x1fef   :  { %v2442_v35 = vmul.f32 %v8700_v3, %v2440_v26 }
0x1ff1   :  { %v2443_v27 = vpack.c.bf16 %v2442_v35, %v2442_v35 }
0x1ff3   :  { %v2445_v0 = vrot.slane %v2443_v27, 2 }
0x1ff5   :  { %2446 = vrot.lane.b32.xlu1 %v2445_v0, %s9051_s14 }
0x2067   :  { %v9857_v25 = vpop.permute.xlu1 %2446 }
0x2068   :  { %7946 = vmatmul.mubr.msk.bf16.vlgmr.msra.gmra.mxu0 %vm293_vm7, %v9857_v25 }
0x2069   :  { %7956 = vmatpush3.bf16.xpose.msra.mxu0 %v9715_v19  ;;  %7957 = vmatprep.mubr.msk.bf16.mxu0 %vm9058_vm1, %v9057_v1 }
0x206a   :  { %7967 = vmatprep.subr.bf16.mxu0 %v9057_v1 }
0x2128   :  { %v2485_v49 = vpop.f32.mrf.mxu0 }
0x2129   :  { %v2491_v48 = vpack.c.bf16 %v2485_v49, %v2485_v49 }
0x212a   :  { %v7947_v34 = vpop.f32.mrf.mxu0 }
0x212b   :  { %v2499_v17 = vrot.slane %v2491_v48, %v9263_v33 }
0x212c   :  { %v2488_v44 = vpop.f32.mrf.mxu0 }
0x212d   :  { %v2500_v50 = vcombine.high %v2499_v17, %v2499_v17  ;;  %v2507_v55 = vrot.slane %v2499_v17, %v9263_v33 }
0x212e   :  { %v7948_v7 = vpop.f32.mrf.mxu0 }
0x212f   :  { %v2514_v22 = vrot.slane %v2500_v50, %v9263_v33  ;;  %v2516_v57 = vunpack.i.h.s16 %v2507_v55  ;;  %v7375_v51 = vpack.i.b16 %v2507_v55, %v2507_v55 }
0x2131   :  { %v2523_v8 = vrot.slane %v7375_v51, %v9270_v45  ;;  %v2567_v62 = vpack.i.b16 %v2516_v57, %v2516_v57  ;;  %v2518_v18 = vunpack.i.h.s16 %v2514_v22  ;;  %v7378_v29 = vpack.i.b16 %v2514_v22, %v2514_v22 }
0x2133   :  { %v2571_v24 = vrot.slane %v2567_v62, %v9270_v45  ;;  %7952 = vmatmul.mubr.msk.bf16.vlgmr.msra.gmra.mxu1 %vm293_vm7, %v2523_v8  ;;  %v2663_v47 = vpack.i.b16 %v2518_v18, %v2518_v18  ;;  %v2619_v21 = vrot.slane %v7378_v29, %v9270_v45 }
0x2134   :  { %7962 = vmatpush3.bf16.xpose.msra.mxu1 %v9733_v10  ;;  %7963 = vmatprep.mubr.msk.bf16.mxu1 %vm9058_vm1, %v9057_v1 }
0x2135   :  { %7958 = vmatmul.mubr.msk.bf16.vlgmr.msra.gmra.mxu0 %vm293_vm7, %v2571_v24  ;;  %7973 = vmatprep.subr.bf16.mxu1 %v9057_v1  ;;  %v2667_v52 = vrot.slane %v2663_v47, %v9270_v45 }
0x2136   :  { %7968 = vmatpush3.bf16.xpose.msra.mxu0 %v9742_v38  ;;  %7969 = vmatprep.mubr.msk.bf16.mxu0 %vm9058_vm1, %v9057_v1 }
0x2137   :  { %7979 = vmatprep.subr.bf16.mxu0 %v9057_v1 }
0x213b   :  { %7964 = vmatmul.mubr.msk.bf16.vlgmr.msra.gmra.mxu1 %vm293_vm7, %v2619_v21 }
0x213c   :  { %7974 = vmatpush3.bf16.msra.mxu1 %v9752_v42  ;;  %7975 = vmatprep.mubr.msk.bf16.mxu1 %vm9058_vm1, %v9057_v1 }
0x213d   :  { %7970 = vmatmul.mubr.msk.bf16.vlgmr.msra.gmra.mxu0 %vm293_vm7, %v2667_v52  ;;  %7985 = vmatprep.subr.bf16.mxu1 %v9057_v1 }
0x213e   :  { %7980 = vmatpush3.bf16.msra.mxu0 %v9760_v46  ;;  %7981 = vmatprep.mubr.msk.bf16.mxu0 %vm9058_vm1, %v9057_v1 }
0x213f   :  { %7991 = vmatprep.subr.bf16.mxu0 %v9057_v1 }
0x21f3   :  { %v2561_v63 = vpop.f32.mrf.mxu1 }
0x21f4   :  { %v2711_v36 = vsel %vm1964_vm4, %v2561_v63, -inf }
0x21f5   :  { %2712 = vmax.xlane.f32.xlu0 %v2711_v36  ;;  %v7953_v30 = vpop.f32.mrf.mxu1  ;;  %v2609_v39 = vpop.f32.mrf.mxu0 }
0x21f6   :  { %v2714_v2 = vsel %vm1964_vm4, %v2609_v39, -inf }
0x21f7   :  { %v2564_v60 = vpop.f32.mrf.mxu1  ;;  %2715 = vmax.xlane.f32.xlu1 %v2714_v2  ;;  %v7959_v40 = vpop.f32.mrf.mxu0 }
0x21f9   :  { %v7954_v4 = vpop.f32.mrf.mxu1  ;;  %v2612_v61 = vpop.f32.mrf.mxu0 }
0x21fb   :  { %v7960_v6 = vpop.f32.mrf.mxu0  ;;  %v2657_v9 = vpop.f32.mrf.mxu1 }
0x21fc   :  { %v2717_v53 = vsel %vm1964_vm4, %v2657_v9, -inf }
0x21fd   :  { %2718 = vmax.xlane.f32.xlu0 %v2717_v53  ;;  %v7965_v3 = vpop.f32.mrf.mxu1  ;;  %v2705_v12 = vpop.f32.mrf.mxu0 }
0x21fe   :  { %v2720_v37 = vsel %vm1964_vm4, %v2705_v12, -inf }
0x21ff   :  { %v2660_v23 = vpop.f32.mrf.mxu1  ;;  %v7971_v11 = vpop.f32.mrf.mxu0 }
0x2200   :  { %v9925_v23 = vld [vmem:[#allocation7 + $0x8] sm:$0xff]   ;;  %v9932_v11 = vld [vmem:[#allocation7] sm:$0xff]  }
0x2201   :  { %v7966_v20 = vpop.f32.mrf.mxu1  ;;  %2721 = vmax.xlane.f32.xlu0 %v2720_v37  ;;  %v2708_v14 = vpop.f32.mrf.mxu0 }
0x2203   :  { %v7972_v26 = vpop.f32.mrf.mxu0 }
0x227e   :  { %v2713_v35 = vpop.xlane.xlu0 %2712 }
0x227f   :  { %v2723_v27 = vsub.f32 %v2561_v63, %v2713_v35 }
0x2280   :  { %v2716_v0 = vpop.xlane.xlu1 %2715 }
0x2281   :  { %v2727_v49 = vmul.f32 1.442695, %v2723_v27  ;;  %v2724_v48 = vsub.f32 %v2609_v39, %v2716_v0 }
0x2283   :  { %8703 = vpow2.f32 %v2727_v49  ;;  %v2729_v34 = vmul.f32 1.442695, %v2724_v48 }
0x2285   :  { %8705 = vpow2.f32 %v2729_v34 }
0x2286   :  { %v2719_v17 = vpop.xlane.xlu0 %2718 }
0x2287   :  { %v2725_v44 = vsub.f32 %v2657_v9, %v2719_v17 }
0x2289   :  { %v2731_v50 = vmul.f32 1.442695, %v2725_v44 }
0x228a   :  { %v2722_v55 = vpop.xlane.xlu0 %2721 }
0x228b   :  { %8707 = vpow2.f32 %v2731_v50  ;;  %v2726_v7 = vsub.f32 %v2705_v12, %v2722_v55 }
0x228d   :  { %v2733_v22 = vmul.f32 1.442695, %v2726_v7 }
0x228f   :  { %8709 = vpow2.f32 %v2733_v22 }
0x2290   :  { %v8704_v57 = vpop.eup %8703 }
0x2291   :  { %v2735_v51 = vsel %vm1964_vm4, %v8704_v57, 0.0 }
0x2292   :  { %v8706_v8 = vpop.eup %8705  ;;  %2736 = vadd.xlane.f32.xlu1 %v2735_v51 }
0x2293   :  { %v2738_v62 = vsel %vm1964_vm4, %v8706_v8, 0.0 }
0x2294   :  { %2739 = vadd.xlane.f32.xlu0 %v2738_v62 }
0x2298   :  { %v8708_v18 = vpop.eup %8707 }
0x2299   :  { %v2741_v24 = vsel %vm1964_vm4, %v8708_v18, 0.0 }
0x229a   :  { %2742 = vadd.xlane.f32.xlu1 %v2741_v24 }
0x229c   :  { %v8710_v29 = vpop.eup %8709 }
0x229d   :  { %v2744_v47 = vsel %vm1964_vm4, %v8710_v29, 0.0 }
0x229e   :  { %2745 = vadd.xlane.f32.xlu0 %v2744_v47 }
0x231b   :  { %v2737_v21 = vpop.xlane.xlu1 %2736 }
0x231c   :  { %8711 = vrcp.f32 %v2737_v21 }
0x231d   :  { %v2740_v52 = vpop.xlane.xlu0 %2739 }
0x231e   :  { %8713 = vrcp.f32 %v2740_v52 }
0x2323   :  { %v2743_v63 = vpop.xlane.xlu1 %2742 }
0x2324   :  { %8715 = vrcp.f32 %v2743_v63 }
0x2327   :  { %v2746_v36 = vpop.xlane.xlu0 %2745 }
0x2328   :  { %8717 = vrcp.f32 %v2746_v36 }
0x2329   :  { %v8712_v30 = vpop.eup %8711 }
0x232a   :  { %v2751_v39 = vmul.f32 %v8712_v30, %v8704_v57 }
0x232b   :  { %v8714_v2 = vpop.eup %8713 }
0x232c   :  { %v2755_v60 = vpack.c.bf16 %v2751_v39, %v2751_v39  ;;  %v2752_v40 = vmul.f32 %v8714_v2, %v8706_v8 }
0x232e   :  { %7976 = vmatmul.mubr.msk.bf16.vlgmr.msra.gmra.mxu1 %vm2013_vm5, %v2755_v60  ;;  %v2756_v4 = vpack.c.bf16 %v2752_v40, %v2752_v40 }
0x232f   :  { %7986 = vmatpush3.bf16.msra.mxu1 %v9778_v28  ;;  %7987 = vmatprep.mubr.msk.bf16.mxu1 %vm9058_vm1, %v9057_v1 }
0x2330   :  { %7982 = vmatmul.mubr.msk.bf16.vlgmr.msra.gmra.mxu0 %vm2013_vm5, %v2756_v4  ;;  %7997 = vmatprep.subr.bf16.mxu1 %v9057_v1 }
0x2331   :  { %v8716_v61 = vpop.eup %8715  ;;  %7992 = vmatpush3.bf16.msra.mxu0 %v9786_v31  ;;  %7993 = vmatprep.mubr.msk.bf16.mxu0 %vm9058_vm1, %v9057_v1 }
0x2332   :  { %v2753_v6 = vmul.f32 %v8716_v61, %v8708_v18  ;;  %8005 = vmatprep.subr.bf16.mxu0 %v9057_v1 }
0x2334   :  { %v2757_v9 = vpack.c.bf16 %v2753_v6, %v2753_v6  ;;  %v9940_v6 = vld [vmem:[#allocation8 + $0x8] sm:$0xff]  }
0x2335   :  { %v8718_v53 = vpop.eup %8717 }
0x2336   :  { %7988 = vmatmul.mubr.msk.bf16.vlgmr.msra.gmra.mxu1 %vm2013_vm5, %v2757_v9  ;;  %v2754_v3 = vmul.f32 %v8718_v53, %v8710_v29  ;;  %v9946_v9 = vld [vmem:[#allocation8] sm:$0xff]  }
0x2337   :  { %7998 = vmatpush3.bf16.msra.mxu1 %v9794_v43  ;;  %8001 = vmatprep.mubr.msk.bf16.mxu1 %vm9058_vm1, %v9057_v1 }
0x2338   :  { %v2758_v12 = vpack.c.bf16 %v2754_v3, %v2754_v3  ;;  %7999 = vmatprep.subr.bf16.mxu1 %v9057_v1 }
0x233a   :  { %7994 = vmatmul.mubr.msk.bf16.vlgmr.msra.gmra.mxu0 %vm2013_vm5, %v2758_v12 }
0x233b   :  { %8000 = vmatpush3.bf16.msra.mxu1 %v9798_v58  ;;  %8006 = vmatpush3.bf16.msra.mxu0 %v9816_v32 }
0x233c   :  { %8007 = vmatprep.subr.bf16.mxu0 %v9057_v1  ;;  %8009 = vmatprep.mubr.msk.bf16.mxu0 %vm9058_vm1, %v9057_v1 }
0x233d   :  { %8013 = vmatprep.subr.bf16.mxu1 %v9057_v1 }
0x233e   :  { %8002 = vmatmul.mubr.msk.bf16.vlgmr.msra.gmra.mxu1 %vm293_vm7, %v9857_v25 }
0x233f   :  { %8008 = vmatpush3.bf16.msra.mxu0 %v9819_v54  ;;  %8014 = vmatpush3.bf16.msra.mxu1 %v9925_v23 }
0x2340   :  { %8021 = vmatprep.subr.bf16.mxu0 %v9057_v1  ;;  %8015 = vmatprep.subr.bf16.mxu1 %v9057_v1 }
0x2341   :  { %8017 = vmatprep.mubr.msk.bf16.mxu1 %vm9058_vm1, %v9057_v1 }
0x2343   :  { %8016 = vmatpush3.bf16.msra.mxu1 %v9932_v11 }
0x2344   :  { %8029 = vmatprep.subr.bf16.mxu1 %v9057_v1 }
0x23ee   :  { %v2796_v37 = vpop.f32.mrf.mxu1 }
0x23ef   :  { %v2931_v55 = vpack.c.bf16 %v2796_v37, %v2796_v37 }
0x23f0   :  { %v7977_v20 = vpop.f32.mrf.mxu1  ;;  %v2839_v14 = vpop.f32.mrf.mxu0 }
0x23f1   :  { %v2932_v27 = vpack.c.bf16 %v2839_v14, %v2839_v14  ;;  %v2979_v29 = vunpack.c.l.b16 %v2931_v55 }
0x23f2   :  { %v2799_v26 = vpop.f32.mrf.mxu1  ;;  %v7983_v35 = vpop.f32.mrf.mxu0 }
0x23f3   :  { %v2980_v17 = vunpack.c.l.b16 %v2932_v27 }
0x23f4   :  { %v7978_v0 = vpop.f32.mrf.mxu1  ;;  %v2842_v49 = vpop.f32.mrf.mxu0 }
0x23f5   :  { %v2983_v51 = vrot.slane %v2980_v17, 7 }
0x23f6   :  { %v7984_v48 = vpop.f32.mrf.mxu0  ;;  %v2882_v34 = vpop.f32.mrf.mxu1 }
0x23f7   :  { %v2933_v44 = vpack.c.bf16 %v2882_v34, %v2882_v34  ;;  %v2984_v63 = vsel %vm2259_vm6, %v2983_v51, %v2979_v29 }
0x23f8   :  { %v7989_v50 = vpop.f32.mrf.mxu1 }
0x23f9   :  { %v2981_v7 = vunpack.c.l.b16 %v2933_v44 }
0x23fa   :  { %v2885_v22 = vpop.f32.mrf.mxu1  ;;  %v2925_v57 = vpop.f32.mrf.mxu0 }
0x23fb   :  { %v2934_v8 = vpack.c.bf16 %v2925_v57, %v2925_v57  ;;  %v2985_v62 = vrot.slane %v2981_v7, 6 }
0x23fc   :  { %v7990_v18 = vpop.f32.mrf.mxu1  ;;  %v7995_v24 = vpop.f32.mrf.mxu0 }
0x23fd   :  { %v2982_v47 = vunpack.c.l.b16 %v2934_v8  ;;  %v2986_v30 = vsel %vm2262_vm8, %v2985_v62, %v2984_v63  ;;  %v3128_v62 = vrot.slane %v9852_v16, 4 }
0x23fe   :  { %v2928_v21 = vpop.f32.mrf.mxu0  ;;  %v2969_v52 = vpop.f32.mrf.mxu1 }
0x23ff   :  { %v2987_v36 = vrot.slane %v2982_v47, 5 }
0x2400   :  { %v7996_v39 = vpop.f32.mrf.mxu0  ;;  %v8003_v2 = vpop.f32.mrf.mxu1 }
0x2401   :  { %v2988_v60 = vsel %vm2265_vm9, %v2987_v36, %v2986_v30 }
0x2402   :  { %v2989_v40 = vpack.c.b16 %v2988_v60, %v2988_v60  ;;  %v2972_v4 = vpop.f32.mrf.mxu1 }
0x2404   :  { %v8004_v61 = vpop.f32.mrf.mxu1  ;;  %8010 = vmatmul.mubr.msk.bf16.vlgmr.msra.gmra.mxu0 %vm293_vm7, %v2989_v40 }
0x2405   :  { %8022 = vmatpush3.bf16.msra.mxu0 %v9940_v6  ;;  %8025 = vmatprep.mubr.msk.bf16.mxu0 %vm9058_vm1, %v9057_v1 }
0x2406   :  { %8023 = vmatprep.subr.bf16.mxu0 %v9057_v1 }
0x2409   :  { %8024 = vmatpush3.bf16.msra.mxu0 %v9946_v9 }
0x240a   :  { %8037 = vmatprep.subr.bf16.mxu0 %v9057_v1 }
0x240c   :  { %8026 = vmatmul.mubr.msk.bf16.vlgmr.msra.gmra.mxu0 %vm293_vm7, %v9857_v25  ;;  %v8881_v25 = vld [vmem:[#allocation5] ss:$0 sm:$0xff] }
0x240d   :  { %8038 = vmatpush3.bf16.xpose.msra.mxu0 %v9702_v13  ;;  %8039 = vmatprep.mubr.msk.bf16.mxu0 %vm9058_vm1, %v9057_v1  ;;  %v9965_v48 = vadd.f32 %v8881_v25, %v9719_v56 }
0x240e   :  { %8049 = vmatprep.subr.bf16.mxu0 %v9057_v1 }
0x24c4   :  { %v3027_v53 = vpop.f32.mrf.mxu0 }
0x24c5   :  { %v3028_v3 = vadd.f32 %v3027_v53, %v2969_v52 }
0x24c6   :  { %v8011_v12 = vpop.f32.mrf.mxu0 }
0x24c7   :  { %8719 = vtanh.f32 %v3028_v3 }
0x24c8   :  { %v3030_v37 = vpop.f32.mrf.mxu0 }
0x24ca   :  { %v8012_v20 = vpop.f32.mrf.mxu0 }
0x24cc   :  { %v3113_v14 = vpop.f32.mrf.mxu0 }
0x24ce   :  { %v8027_v26 = vpop.f32.mrf.mxu0 }
0x24d0   :  { %v3116_v35 = vpop.f32.mrf.mxu0 }
0x24d2   :  { %v8028_v27 = vpop.f32.mrf.mxu0 }
0x24d4   :  { %v8720_v0 = vpop.eup %8719 }
0x24d5   :  { %v3034_v49 = vpack.c.bf16 %v8720_v0, %v8720_v0  ;;  %7275 = vst.msk [vmem:[#allocation13 + $0x4] sm:$0xf] %vm7273_vm10, %v8720_v0 }
0x24d7   :  { %8018 = vmatmul.mubr.msk.bf16.vlgmr.msra.gmra.mxu1 %vm293_vm7, %v3034_v49 }
0x24d8   :  { %8030 = vmatpush3.bf16.msra.mxu1 %v9676_v15  ;;  %8033 = vmatprep.mubr.msk.bf16.mxu1 %vm9058_vm1, %v9057_v1 }
0x24d9   :  { %8031 = vmatprep.subr.bf16.mxu1 %v9057_v1 }
0x24dc   :  { %8032 = vmatpush3.bf16.msra.mxu1 %v9682_v41 }
0x24dd   :  { %8043 = vmatprep.subr.bf16.mxu1 %v9057_v1 }
0x2597   :  { %v3072_v34 = vpop.f32.mrf.mxu1 }
0x2598   :  { %v3078_v17 = vadd.f32 %v3072_v34, %v9965_v48 }
0x2599   :  { %v8019_v44 = vpop.f32.mrf.mxu1 }
0x259a   :  { %v3119_v50 = vadd.f32 %v3113_v14, %v3078_v17 }
0x259b   :  { %v3075_v55 = vpop.f32.mrf.mxu1 }
0x259c   :  { %8721 = vtanh.f32 %v3119_v50  ;;  %v7389_v22 = vmul.f32 -1.442695, %v3119_v50 }
0x259d   :  { %v8020_v15 = vpop.f32.mrf.mxu1 }
0x259e   :  { %8723 = vpow2.f32 %v7389_v22 }
0x25a9   :  { %v8722_v7 = vpop.eup %8721 }
0x25aa   :  { %3132 = vrot.lane.b32.xlu1 %v8722_v7, %s9059_s2 }
0x25ab   :  { %v8724_v41 = vpop.eup %8723 }
0x25ac   :  { %v3123_v57 = vadd.f32 1.0, %v8724_v41 }
0x25ae   :  { %8725 = vrcp.f32 %v3123_v57 }
0x25bb   :  { %v8726_v51 = vpop.eup %8725 }
0x25bc   :  { %v3130_v18 = vmul.f32 %v8726_v51, %v3128_v62 }
0x261c   :  { %v3133_v8 = vpop.permute.xlu1 %3132 }
0x261d   :  { %v3135_v56 = vmul.f32 %v8726_v51, %v3133_v8 }
0x261f   :  { %3137 = vrot.lane.b32.xlu0 %v3135_v56, %s9059_s2 }
0x2691   :  { %v3138_v24 = vpop.permute.xlu0 %3137 }
0x2692   :  { %v9971_v29 = vadd.f32 %v3138_v24, %v3130_v18 }
0x2694   :  { %8727 = vtanh.f32 %v9971_v29 }
0x26a1   :  { %v8728_v47 = vpop.eup %8727 }
0x26a2   :  { %3143 = vrot.lane.b32.xlu1 %v8728_v47, %s9059_s2 }
0x2714   :  { %v3144_v21 = vpop.permute.xlu1 %3143 }
0x2715   :  { %v3146_v52 = vmul.f32 %v8726_v51, %v3144_v21 }
0x2717   :  { %v3147_v63 = vpack.c.bf16 %v3146_v52, %v3146_v52 }
0x2719   :  { %3149 = vrot.lane.b32.xlu1 %v3147_v63, %s9051_s14 }
0x278b   :  { %v9976_v36 = vpop.permute.xlu1 %3149 }
0x278c   :  { %8034 = vmatmul.mubr.msk.bf16.vlgmr.msra.gmra.mxu1 %vm293_vm7, %v9976_v36 }
0x278d   :  { %8044 = vmatpush3.bf16.xpose.msra.mxu1 %v9715_v19  ;;  %8045 = vmatprep.mubr.msk.bf16.mxu1 %vm9058_vm1, %v9057_v1 }
0x278e   :  { %8055 = vmatprep.subr.bf16.mxu1 %v9057_v1 }
0x284c   :  { %v3188_v16 = vpop.f32.mrf.mxu1 }
0x284d   :  { %v3194_v30 = vpack.c.bf16 %v3188_v16, %v3188_v16 }
0x284e   :  { %v8035_v39 = vpop.f32.mrf.mxu1 }
0x284f   :  { %v3202_v2 = vrot.slane %v3194_v30, %v9263_v33 }
0x2850   :  { %v3191_v60 = vpop.f32.mrf.mxu1 }
0x2851   :  { %v3203_v40 = vcombine.high %v3202_v2, %v3202_v2  ;;  %v3210_v4 = vrot.slane %v3202_v2, %v9263_v33 }
0x2852   :  { %v8036_v61 = vpop.f32.mrf.mxu1 }
0x2853   :  { %v3217_v53 = vrot.slane %v3203_v40, %v9263_v33  ;;  %v3219_v3 = vunpack.i.h.s16 %v3210_v4  ;;  %v7391_v12 = vpack.i.b16 %v3210_v4, %v3210_v4 }
0x2855   :  { %v3226_v37 = vrot.slane %v7391_v12, %v9270_v45  ;;  %v3270_v20 = vpack.i.b16 %v3219_v3, %v3219_v3  ;;  %v3221_v14 = vunpack.i.h.s16 %v3217_v53  ;;  %v7394_v35 = vpack.i.b16 %v3217_v53, %v3217_v53 }
0x2857   :  { %v3274_v26 = vrot.slane %v3270_v20, %v9270_v45  ;;  %8040 = vmatmul.mubr.msk.bf16.vlgmr.msra.gmra.mxu0 %vm293_vm7, %v3226_v37  ;;  %v3366_v27 = vpack.i.b16 %v3221_v14, %v3221_v14  ;;  %v3322_v0 = vrot.slane %v7394_v35, %v9270_v45 }
0x2858   :  { %8050 = vmatpush3.bf16.xpose.msra.mxu0 %v9733_v10  ;;  %8051 = vmatprep.mubr.msk.bf16.mxu0 %vm9058_vm1, %v9057_v1 }
0x2859   :  { %8046 = vmatmul.mubr.msk.bf16.vlgmr.msra.gmra.mxu1 %vm293_vm7, %v3274_v26  ;;  %8061 = vmatprep.subr.bf16.mxu0 %v9057_v1  ;;  %v3370_v49 = vrot.slane %v3366_v27, %v9270_v45 }
0x285a   :  { %8056 = vmatpush3.bf16.xpose.msra.mxu1 %v9742_v38  ;;  %8057 = vmatprep.mubr.msk.bf16.mxu1 %vm9058_vm1, %v9057_v1 }
0x285b   :  { %8067 = vmatprep.subr.bf16.mxu1 %v9057_v1 }
0x285f   :  { %8052 = vmatmul.mubr.msk.bf16.vlgmr.msra.gmra.mxu0 %vm293_vm7, %v3322_v0 }
0x2860   :  { %8062 = vmatpush3.bf16.msra.mxu0 %v9752_v42  ;;  %8063 = vmatprep.mubr.msk.bf16.mxu0 %vm9058_vm1, %v9057_v1 }
0x2861   :  { %8058 = vmatmul.mubr.msk.bf16.vlgmr.msra.gmra.mxu1 %vm293_vm7, %v3370_v49  ;;  %8073 = vmatprep.subr.bf16.mxu0 %v9057_v1 }
0x2862   :  { %8068 = vmatpush3.bf16.msra.mxu1 %v9760_v46  ;;  %8069 = vmatprep.mubr.msk.bf16.mxu1 %vm9058_vm1, %v9057_v1 }
0x2863   :  { %8079 = vmatprep.subr.bf16.mxu1 %v9057_v1 }
0x2917   :  { %v3264_v25 = vpop.f32.mrf.mxu0 }
0x2918   :  { %v3414_v34 = vsel %vm1964_vm4, %v3264_v25, -inf }
0x2919   :  { %v3312_v17 = vpop.f32.mrf.mxu1  ;;  %3415 = vmax.xlane.f32.xlu0 %v3414_v34  ;;  %v8041_v44 = vpop.f32.mrf.mxu0 }
0x291a   :  { %v3417_v50 = vsel %vm1964_vm4, %v3312_v17, -inf }
0x291b   :  { %3418 = vmax.xlane.f32.xlu1 %v3417_v50  ;;  %v3267_v55 = vpop.f32.mrf.mxu0  ;;  %v8047_v15 = vpop.f32.mrf.mxu1 }
0x291d   :  { %v8042_v7 = vpop.f32.mrf.mxu0  ;;  %v3315_v22 = vpop.f32.mrf.mxu1 }
0x291f   :  { %v8048_v41 = vpop.f32.mrf.mxu1  ;;  %v3360_v57 = vpop.f32.mrf.mxu0 }
0x2920   :  { %v3420_v51 = vsel %vm1964_vm4, %v3360_v57, -inf }
0x2921   :  { %v3408_v8 = vpop.f32.mrf.mxu1  ;;  %3421 = vmax.xlane.f32.xlu0 %v3420_v51  ;;  %v8053_v56 = vpop.f32.mrf.mxu0 }
0x2922   :  { %v3423_v24 = vsel %vm1964_vm4, %v3408_v8, -inf }
0x2923   :  { %v3363_v62 = vpop.f32.mrf.mxu0  ;;  %v8059_v18 = vpop.f32.mrf.mxu1 }
0x2925   :  { %v3411_v47 = vpop.f32.mrf.mxu1  ;;  %3424 = vmax.xlane.f32.xlu0 %v3423_v24  ;;  %v8054_v21 = vpop.f32.mrf.mxu0 }
0x2927   :  { %v8060_v52 = vpop.f32.mrf.mxu1 }
0x29a2   :  { %v3416_v63 = vpop.xlane.xlu0 %3415 }
0x29a3   :  { %v3426_v16 = vsub.f32 %v3264_v25, %v3416_v63 }
0x29a4   :  { %v3419_v30 = vpop.xlane.xlu1 %3418 }
0x29a5   :  { %v3430_v39 = vmul.f32 1.442695, %v3426_v16  ;;  %v3427_v2 = vsub.f32 %v3312_v17, %v3419_v30 }
0x29a7   :  { %8729 = vpow2.f32 %v3430_v39  ;;  %v3432_v60 = vmul.f32 1.442695, %v3427_v2 }
0x29a9   :  { %8731 = vpow2.f32 %v3432_v60 }
0x29aa   :  { %v3422_v40 = vpop.xlane.xlu0 %3421 }
0x29ab   :  { %v3428_v4 = vsub.f32 %v3360_v57, %v3422_v40 }
0x29ad   :  { %v3434_v61 = vmul.f32 1.442695, %v3428_v4 }
0x29ae   :  { %v3425_v53 = vpop.xlane.xlu0 %3424 }
0x29af   :  { %8733 = vpow2.f32 %v3434_v61  ;;  %v3429_v3 = vsub.f32 %v3408_v8, %v3425_v53 }
0x29b1   :  { %v3436_v12 = vmul.f32 1.442695, %v3429_v3 }
0x29b3   :  { %8735 = vpow2.f32 %v3436_v12 }
0x29b4   :  { %v8730_v37 = vpop.eup %8729 }
0x29b5   :  { %v3438_v20 = vsel %vm1964_vm4, %v8730_v37, 0.0 }
0x29b6   :  { %v8732_v14 = vpop.eup %8731  ;;  %3439 = vadd.xlane.f32.xlu1 %v3438_v20 }
0x29b7   :  { %v3441_v26 = vsel %vm1964_vm4, %v8732_v14, 0.0 }
0x29b8   :  { %3442 = vadd.xlane.f32.xlu0 %v3441_v26 }
0x29bc   :  { %v8734_v35 = vpop.eup %8733 }
0x29bd   :  { %v3444_v27 = vsel %vm1964_vm4, %v8734_v35, 0.0 }
0x29be   :  { %3445 = vadd.xlane.f32.xlu1 %v3444_v27 }
0x29c0   :  { %v8736_v0 = vpop.eup %8735 }
0x29c1   :  { %v3447_v49 = vsel %vm1964_vm4, %v8736_v0, 0.0 }
0x29c2   :  { %3448 = vadd.xlane.f32.xlu0 %v3447_v49 }
0x2a3f   :  { %v3440_v25 = vpop.xlane.xlu1 %3439 }
0x2a40   :  { %8737 = vrcp.f32 %v3440_v25 }
0x2a41   :  { %v3443_v34 = vpop.xlane.xlu0 %3442 }
0x2a42   :  { %8739 = vrcp.f32 %v3443_v34 }
0x2a47   :  { %v3446_v17 = vpop.xlane.xlu1 %3445 }
0x2a48   :  { %8741 = vrcp.f32 %v3446_v17 }
0x2a4b   :  { %v3449_v44 = vpop.xlane.xlu0 %3448 }
0x2a4c   :  { %8743 = vrcp.f32 %v3449_v44 }
0x2a4d   :  { %v8738_v50 = vpop.eup %8737 }
0x2a4e   :  { %v3454_v55 = vmul.f32 %v8738_v50, %v8730_v37 }
0x2a4f   :  { %v8740_v15 = vpop.eup %8739 }
0x2a50   :  { %v3458_v7 = vpack.c.bf16 %v3454_v55, %v3454_v55  ;;  %v3455_v22 = vmul.f32 %v8740_v15, %v8732_v14 }
0x2a52   :  { %8064 = vmatmul.mubr.msk.bf16.vlgmr.msra.gmra.mxu0 %vm2013_vm5, %v3458_v7  ;;  %v3459_v41 = vpack.c.bf16 %v3455_v22, %v3455_v22 }
0x2a53   :  { %8074 = vmatpush3.bf16.msra.mxu0 %v9778_v28  ;;  %8075 = vmatprep.mubr.msk.bf16.mxu0 %vm9058_vm1, %v9057_v1 }
0x2a54   :  { %8070 = vmatmul.mubr.msk.bf16.vlgmr.msra.gmra.mxu1 %vm2013_vm5, %v3459_v41  ;;  %8085 = vmatprep.subr.bf16.mxu0 %v9057_v1 }
0x2a55   :  { %v8742_v57 = vpop.eup %8741  ;;  %8080 = vmatpush3.bf16.msra.mxu1 %v9786_v31  ;;  %8081 = vmatprep.mubr.msk.bf16.mxu1 %vm9058_vm1, %v9057_v1 }
0x2a56   :  { %v3456_v51 = vmul.f32 %v8742_v57, %v8734_v35  ;;  %8093 = vmatprep.subr.bf16.mxu1 %v9057_v1 }
0x2a58   :  { %v3460_v8 = vpack.c.bf16 %v3456_v51, %v3456_v51 }
0x2a59   :  { %v8744_v56 = vpop.eup %8743 }
0x2a5a   :  { %8076 = vmatmul.mubr.msk.bf16.vlgmr.msra.gmra.mxu0 %vm2013_vm5, %v3460_v8  ;;  %v3457_v62 = vmul.f32 %v8744_v56, %v8736_v0 }
0x2a5b   :  { %8086 = vmatpush3.bf16.msra.mxu0 %v9794_v43  ;;  %8089 = vmatprep.mubr.msk.bf16.mxu0 %vm9058_vm1, %v9057_v1 }
0x2a5c   :  { %v3461_v18 = vpack.c.bf16 %v3457_v62, %v3457_v62  ;;  %8087 = vmatprep.subr.bf16.mxu0 %v9057_v1 }
0x2a5e   :  { %8082 = vmatmul.mubr.msk.bf16.vlgmr.msra.gmra.mxu1 %vm2013_vm5, %v3461_v18 }
0x2a5f   :  { %8088 = vmatpush3.bf16.msra.mxu0 %v9798_v58  ;;  %8094 = vmatpush3.bf16.msra.mxu1 %v9816_v32 }
0x2a60   :  { %8095 = vmatprep.subr.bf16.mxu1 %v9057_v1  ;;  %8097 = vmatprep.mubr.msk.bf16.mxu1 %vm9058_vm1, %v9057_v1 }
0x2a61   :  { %8101 = vmatprep.subr.bf16.mxu0 %v9057_v1 }
0x2a62   :  { %8090 = vmatmul.mubr.msk.bf16.vlgmr.msra.gmra.mxu0 %vm293_vm7, %v9976_v36 }
0x2a63   :  { %8096 = vmatpush3.bf16.msra.mxu1 %v9819_v54  ;;  %8102 = vmatpush3.bf16.msra.mxu0 %v9925_v23 }
0x2a64   :  { %8109 = vmatprep.subr.bf16.mxu1 %v9057_v1  ;;  %8103 = vmatprep.subr.bf16.mxu0 %v9057_v1 }
0x2a65   :  { %8105 = vmatprep.mubr.msk.bf16.mxu0 %vm9058_vm1, %v9057_v1 }
0x2a67   :  { %8104 = vmatpush3.bf16.msra.mxu0 %v9932_v11 }
0x2a68   :  { %8117 = vmatprep.subr.bf16.mxu0 %v9057_v1 }
0x2b12   :  { %v3499_v43 = vpop.f32.mrf.mxu0 }
0x2b13   :  { %v3634_v60 = vpack.c.bf16 %v3499_v43, %v3499_v43 }
0x2b14   :  { %v8065_v58 = vpop.f32.mrf.mxu0  ;;  %v3542_v32 = vpop.f32.mrf.mxu1 }
0x2b15   :  { %v3635_v21 = vpack.c.bf16 %v3542_v32, %v3542_v32  ;;  %v3682_v14 = vunpack.c.l.b16 %v3634_v60  ;;  %v10081_v32 = vld [vmem:[%s10644_s9] sm:$0xff]  }
0x2b16   :  { %v3502_v24 = vpop.f32.mrf.mxu0  ;;  %v8071_v47 = vpop.f32.mrf.mxu1 }
0x2b17   :  { %v3683_v30 = vunpack.c.l.b16 %v3635_v21 }
0x2b18   :  { %v8066_v54 = vpop.f32.mrf.mxu0  ;;  %v3545_v52 = vpop.f32.mrf.mxu1 }
0x2b19   :  { %v3686_v53 = vrot.slane %v3683_v30, 7 }
0x2b1a   :  { %v8072_v63 = vpop.f32.mrf.mxu1  ;;  %v3585_v16 = vpop.f32.mrf.mxu0 }
0x2b1b   :  { %v3636_v39 = vpack.c.bf16 %v3585_v16, %v3585_v16  ;;  %v3687_v0 = vsel %vm2259_vm6, %v3686_v53, %v3682_v14 }
0x2b1c   :  { %v8077_v2 = vpop.f32.mrf.mxu0 }
0x2b1d   :  { %v3684_v40 = vunpack.c.l.b16 %v3636_v39 }
0x2b1e   :  { %v3588_v4 = vpop.f32.mrf.mxu0  ;;  %v3628_v61 = vpop.f32.mrf.mxu1 }
0x2b1f   :  { %v3637_v3 = vpack.c.bf16 %v3628_v61, %v3628_v61  ;;  %v3688_v12 = vrot.slane %v3684_v40, 6 }
0x2b20   :  { %v8078_v37 = vpop.f32.mrf.mxu0  ;;  %v8083_v20 = vpop.f32.mrf.mxu1 }
0x2b21   :  { %v3685_v26 = vunpack.c.l.b16 %v3637_v3  ;;  %v3689_v25 = vsel %vm2262_vm8, %v3688_v12, %v3687_v0  ;;  %v3837_v3 = vrot.slane %v9971_v29, 4 }
0x2b22   :  { %v3631_v35 = vpop.f32.mrf.mxu1  ;;  %v3672_v27 = vpop.f32.mrf.mxu0 }
0x2b23   :  { %v3690_v49 = vrot.slane %v3685_v26, 5 }
0x2b24   :  { %v8084_v34 = vpop.f32.mrf.mxu1  ;;  %v8091_v17 = vpop.f32.mrf.mxu0 }
0x2b25   :  { %v3691_v44 = vsel %vm2265_vm9, %v3690_v49, %v3689_v25 }
0x2b26   :  { %v3692_v50 = vpack.c.b16 %v3691_v44, %v3691_v44  ;;  %v3675_v55 = vpop.f32.mrf.mxu0 }
0x2b28   :  { %v8092_v15 = vpop.f32.mrf.mxu0  ;;  %8098 = vmatmul.mubr.msk.bf16.vlgmr.msra.gmra.mxu1 %vm293_vm7, %v3692_v50 }
0x2b29   :  { %8110 = vmatpush3.bf16.msra.mxu1 %v9940_v6  ;;  %8113 = vmatprep.mubr.msk.bf16.mxu1 %vm9058_vm1, %v9057_v1 }
0x2b2a   :  { %8111 = vmatprep.subr.bf16.mxu1 %v9057_v1 }
0x2b2d   :  { %8112 = vmatpush3.bf16.msra.mxu1 %v9946_v9 }
0x2b2e   :  { %8125 = vmatprep.subr.bf16.mxu1 %v9057_v1 }
0x2b30   :  { %8114 = vmatmul.mubr.msk.bf16.vlgmr.msra.gmra.mxu1 %vm293_vm7, %v9976_v36  ;;  %v10072_v36 = vld [vmem:[%s10644_s9 + $0x8] sm:$0xff]  }
0x2b31   :  { %8126 = vmatpush3.bf16.xpose.msra.mxu1 %v9702_v13  ;;  %8127 = vmatprep.mubr.msk.bf16.mxu1 %vm9058_vm1, %v9057_v1 }
0x2b32   :  { %8137 = vmatprep.subr.bf16.mxu1 %v9057_v1 }
0x2be8   :  { %v3730_v7 = vpop.f32.mrf.mxu1 }
0x2be9   :  { %v3731_v22 = vadd.f32 %v3730_v7, %v3672_v27 }
0x2bea   :  { %v8099_v41 = vpop.f32.mrf.mxu1 }
0x2beb   :  { %8745 = vtanh.f32 %v3731_v22 }
0x2bec   :  { %v3733_v57 = vpop.f32.mrf.mxu1 }
0x2bee   :  { %v8100_v51 = vpop.f32.mrf.mxu1 }
0x2bf0   :  { %v3819_v8 = vpop.f32.mrf.mxu1 }
0x2bf1   :  { %v3826_v54 = vrot.slane %v3819_v8, 4 }
0x2bf2   :  { %v8115_v56 = vpop.f32.mrf.mxu1 }
0x2bf4   :  { %v3822_v62 = vpop.f32.mrf.mxu1 }
0x2bf6   :  { %v8116_v18 = vpop.f32.mrf.mxu1 }
0x2bf8   :  { %v8746_v43 = vpop.eup %8745 }
0x2bf9   :  { %v3737_v58 = vpack.c.bf16 %v8746_v43, %v8746_v43  ;;  %7276 = vst.msk [vmem:[#allocation13 + $0x8] sm:$0xf] %vm7273_vm10, %v8746_v43 }
0x2bfb   :  { %8106 = vmatmul.mubr.msk.bf16.vlgmr.msra.gmra.mxu0 %vm293_vm7, %v3737_v58 }
0x2bfc   :  { %8118 = vmatpush3.bf16.msra.mxu0 %v10072_v36  ;;  %8121 = vmatprep.mubr.msk.bf16.mxu0 %vm9058_vm1, %v9057_v1 }
0x2bfd   :  { %8119 = vmatprep.subr.bf16.mxu0 %v9057_v1 }
0x2c00   :  { %8120 = vmatpush3.bf16.msra.mxu0 %v10081_v32 }
0x2c01   :  { %8131 = vmatprep.subr.bf16.mxu0 %v9057_v1 }
0x2cbb   :  { %v3775_v24 = vpop.f32.mrf.mxu0 }
0x2cbc   :  { %v3782_v47 = vrot.slane %v3775_v24, 4 }
0x2cbd   :  { %v8107_v21 = vpop.f32.mrf.mxu0 }
0x2cbe   :  { %v3784_v52 = vadd.f32 %v3782_v47, %v9965_v48 }
0x2cbf   :  { %v3778_v63 = vpop.f32.mrf.mxu0 }
0x2cc0   :  { %v3828_v16 = vadd.f32 %v3826_v54, %v3784_v52 }
0x2cc1   :  { %v8108_v30 = vpop.f32.mrf.mxu0 }
0x2cc2   :  { %8747 = vtanh.f32 %v3828_v16  ;;  %v7405_v2 = vmul.f32 -1.442695, %v3828_v16 }
0x2cc4   :  { %8749 = vpow2.f32 %v7405_v2 }
0x2ccf   :  { %v8748_v39 = vpop.eup %8747 }
0x2cd0   :  { %3841 = vrot.lane.b32.xlu1 %v8748_v39, %s9059_s2 }
0x2cd1   :  { %v8750_v60 = vpop.eup %8749 }
0x2cd2   :  { %v3832_v40 = vadd.f32 1.0, %v8750_v60 }
0x2cd4   :  { %8751 = vrcp.f32 %v3832_v40 }
0x2ce1   :  { %v8752_v4 = vpop.eup %8751 }
0x2ce2   :  { %v3839_v48 = vmul.f32 %v8752_v4, %v3837_v3 }
0x2d42   :  { %v3842_v61 = vpop.permute.xlu1 %3841 }
0x2d43   :  { %v3844_v53 = vmul.f32 %v8752_v4, %v3842_v61 }
0x2d45   :  { %3846 = vrot.lane.b32.xlu0 %v3844_v53, %s9059_s2 }
0x2db7   :  { %v3847_v12 = vpop.permute.xlu0 %3846 }
0x2db8   :  { %v10089_v37 = vadd.f32 %v3847_v12, %v3839_v48 }
0x2dba   :  { %8753 = vtanh.f32 %v10089_v37 }
0x2dc7   :  { %v8754_v20 = vpop.eup %8753 }
0x2dc8   :  { %3852 = vrot.lane.b32.xlu1 %v8754_v20, %s9059_s2 }
0x2e3a   :  { %v3853_v14 = vpop.permute.xlu1 %3852 }
0x2e3b   :  { %v3855_v26 = vmul.f32 %v8752_v4, %v3853_v14 }
0x2e3d   :  { %v3856_v35 = vpack.c.bf16 %v3855_v26, %v3855_v26 }
0x2e3f   :  { %v3858_v27 = vrot.slane %v3856_v35, 2 }
0x2e41   :  { %3859 = vrot.lane.b32.xlu1 %v3858_v27, %s9051_s14 }
0x2eb3   :  { %v10094_v0 = vpop.permute.xlu1 %3859 }
0x2eb4   :  { %8122 = vmatmul.mubr.msk.bf16.vlgmr.msra.gmra.mxu0 %vm293_vm7, %v10094_v0 }
0x2eb5   :  { %8132 = vmatpush3.bf16.xpose.msra.mxu0 %v9715_v19  ;;  %8133 = vmatprep.mubr.msk.bf16.mxu0 %vm9058_vm1, %v9057_v1 }
0x2eb6   :  { %8143 = vmatprep.subr.bf16.mxu0 %v9057_v1 }
0x2f74   :  { %v3898_v29 = vpop.f32.mrf.mxu0 }
0x2f75   :  { %v3904_v49 = vpack.c.bf16 %v3898_v29, %v3898_v29 }
0x2f76   :  { %v8123_v25 = vpop.f32.mrf.mxu0 }
0x2f77   :  { %v3912_v34 = vrot.slane %v3904_v49, %v9263_v33 }
0x2f78   :  { %v3901_v17 = vpop.f32.mrf.mxu0 }
0x2f79   :  { %v3913_v44 = vcombine.high %v3912_v34, %v3912_v34  ;;  %v3920_v50 = vrot.slane %v3912_v34, %v9263_v33 }
0x2f7a   :  { %v8124_v55 = vpop.f32.mrf.mxu0 }
0x2f7b   :  { %v3927_v15 = vrot.slane %v3913_v44, %v9263_v33  ;;  %v3929_v7 = vunpack.i.h.s16 %v3920_v50  ;;  %v7407_v22 = vpack.i.b16 %v3920_v50, %v3920_v50 }
0x2f7d   :  { %v3936_v41 = vrot.slane %v7407_v22, %v9270_v45  ;;  %v3980_v57 = vpack.i.b16 %v3929_v7, %v3929_v7  ;;  %v3931_v51 = vunpack.i.h.s16 %v3927_v15  ;;  %v7410_v56 = vpack.i.b16 %v3927_v15, %v3927_v15 }
0x2f7f   :  { %v3984_v8 = vrot.slane %v3980_v57, %v9270_v45  ;;  %8128 = vmatmul.mubr.msk.bf16.vlgmr.msra.gmra.mxu1 %vm293_vm7, %v3936_v41  ;;  %v4076_v62 = vpack.i.b16 %v3931_v51, %v3931_v51  ;;  %v4032_v18 = vrot.slane %v7410_v56, %v9270_v45 }
0x2f80   :  { %8138 = vmatpush3.bf16.xpose.msra.mxu1 %v9733_v10  ;;  %8139 = vmatprep.mubr.msk.bf16.mxu1 %vm9058_vm1, %v9057_v1 }
0x2f81   :  { %8134 = vmatmul.mubr.msk.bf16.vlgmr.msra.gmra.mxu0 %vm293_vm7, %v3984_v8  ;;  %8149 = vmatprep.subr.bf16.mxu1 %v9057_v1  ;;  %v4080_v43 = vrot.slane %v4076_v62, %v9270_v45 }
0x2f82   :  { %8144 = vmatpush3.bf16.xpose.msra.mxu0 %v9742_v38  ;;  %8145 = vmatprep.mubr.msk.bf16.mxu0 %vm9058_vm1, %v9057_v1 }
0x2f83   :  { %8155 = vmatprep.subr.bf16.mxu0 %v9057_v1 }
0x2f87   :  { %8140 = vmatmul.mubr.msk.bf16.vlgmr.msra.gmra.mxu1 %vm293_vm7, %v4032_v18 }
0x2f88   :  { %8150 = vmatpush3.bf16.msra.mxu1 %v9752_v42  ;;  %8151 = vmatprep.mubr.msk.bf16.mxu1 %vm9058_vm1, %v9057_v1 }
0x2f89   :  { %8146 = vmatmul.mubr.msk.bf16.vlgmr.msra.gmra.mxu0 %vm293_vm7, %v4080_v43  ;;  %8161 = vmatprep.subr.bf16.mxu1 %v9057_v1 }
0x2f8a   :  { %8156 = vmatpush3.bf16.msra.mxu0 %v9760_v46  ;;  %8157 = vmatprep.mubr.msk.bf16.mxu0 %vm9058_vm1, %v9057_v1 }
0x2f8b   :  { %8167 = vmatprep.subr.bf16.mxu0 %v9057_v1 }
0x303f   :  { %v3974_v58 = vpop.f32.mrf.mxu1 }
0x3040   :  { %v4124_v24 = vsel %vm1964_vm4, %v3974_v58, -inf }
0x3041   :  { %4125 = vmax.xlane.f32.xlu0 %v4124_v24  ;;  %v8129_v47 = vpop.f32.mrf.mxu1  ;;  %v4022_v21 = vpop.f32.mrf.mxu0 }
0x3042   :  { %v4127_v54 = vsel %vm1964_vm4, %v4022_v21, -inf }
0x3043   :  { %v3977_v52 = vpop.f32.mrf.mxu1  ;;  %4128 = vmax.xlane.f32.xlu1 %v4127_v54  ;;  %v8135_v63 = vpop.f32.mrf.mxu0 }
0x3045   :  { %v8130_v16 = vpop.f32.mrf.mxu1  ;;  %v4025_v30 = vpop.f32.mrf.mxu0 }
0x3047   :  { %v8136_v39 = vpop.f32.mrf.mxu0  ;;  %v4070_v2 = vpop.f32.mrf.mxu1 }
0x3048   :  { %v4130_v60 = vsel %vm1964_vm4, %v4070_v2, -inf }
0x3049   :  { %4131 = vmax.xlane.f32.xlu0 %v4130_v60  ;;  %v8141_v40 = vpop.f32.mrf.mxu1  ;;  %v4118_v4 = vpop.f32.mrf.mxu0 }
0x304a   :  { %v4133_v3 = vsel %vm1964_vm4, %v4118_v4, -inf  ;;  %v10148_v40 = vld [vmem:[#allocation11 + $0x8] sm:$0xff]  }
0x304b   :  { %v4073_v61 = vpop.f32.mrf.mxu1  ;;  %v8147_v53 = vpop.f32.mrf.mxu0 }
0x304c   :  { %v10155_v61 = vld [vmem:[#allocation11] sm:$0xff]   ;;  %v10158_v53 = vld [vmem:[#allocation10 + $0x8] sm:$0xff]  }
0x304d   :  { %v8142_v48 = vpop.f32.mrf.mxu1  ;;  %4134 = vmax.xlane.f32.xlu0 %v4133_v3  ;;  %v4121_v12 = vpop.f32.mrf.mxu0  ;;  %v10167_v3 = vld [vmem:[#allocation10] sm:$0xff]  }
0x304f   :  { %v8148_v20 = vpop.f32.mrf.mxu0 }
0x30ca   :  { %v4126_v14 = vpop.xlane.xlu0 %4125 }
0x30cb   :  { %v4136_v26 = vsub.f32 %v3974_v58, %v4126_v14 }
0x30cc   :  { %v4129_v35 = vpop.xlane.xlu1 %4128 }
0x30cd   :  { %v4140_v27 = vmul.f32 1.442695, %v4136_v26  ;;  %v4137_v29 = vsub.f32 %v4022_v21, %v4129_v35 }
0x30cf   :  { %8755 = vpow2.f32 %v4140_v27  ;;  %v4142_v49 = vmul.f32 1.442695, %v4137_v29 }
0x30d1   :  { %8757 = vpow2.f32 %v4142_v49 }
0x30d2   :  { %v4132_v25 = vpop.xlane.xlu0 %4131 }
0x30d3   :  { %v4138_v34 = vsub.f32 %v4070_v2, %v4132_v25 }
0x30d5   :  { %v4144_v17 = vmul.f32 1.442695, %v4138_v34 }
0x30d6   :  { %v4135_v44 = vpop.xlane.xlu0 %4134 }
0x30d7   :  { %8759 = vpow2.f32 %v4144_v17  ;;  %v4139_v50 = vsub.f32 %v4118_v4, %v4135_v44 }
0x30d9   :  { %v4146_v55 = vmul.f32 1.442695, %v4139_v50 }
0x30db   :  { %8761 = vpow2.f32 %v4146_v55 }
0x30dc   :  { %v8756_v15 = vpop.eup %8755 }
0x30dd   :  { %v4148_v7 = vsel %vm1964_vm4, %v8756_v15, 0.0 }
0x30de   :  { %v8758_v22 = vpop.eup %8757  ;;  %4149 = vadd.xlane.f32.xlu1 %v4148_v7 }
0x30df   :  { %v4151_v41 = vsel %vm1964_vm4, %v8758_v22, 0.0 }
0x30e0   :  { %4152 = vadd.xlane.f32.xlu0 %v4151_v41 }
0x30e4   :  { %v8760_v57 = vpop.eup %8759 }
0x30e5   :  { %v4154_v51 = vsel %vm1964_vm4, %v8760_v57, 0.0 }
0x30e6   :  { %4155 = vadd.xlane.f32.xlu1 %v4154_v51 }
0x30e8   :  { %v8762_v8 = vpop.eup %8761 }
0x30e9   :  { %v4157_v56 = vsel %vm1964_vm4, %v8762_v8, 0.0 }
0x30ea   :  { %4158 = vadd.xlane.f32.xlu0 %v4157_v56 }
0x3167   :  { %v4150_v62 = vpop.xlane.xlu1 %4149 }
0x3168   :  { %8763 = vrcp.f32 %v4150_v62 }
0x3169   :  { %v4153_v18 = vpop.xlane.xlu0 %4152 }
0x316a   :  { %8765 = vrcp.f32 %v4153_v18 }
0x316f   :  { %v4156_v43 = vpop.xlane.xlu1 %4155 }
0x3170   :  { %8767 = vrcp.f32 %v4156_v43 }
0x3173   :  { %v4159_v58 = vpop.xlane.xlu0 %4158 }
0x3174   :  { %8769 = vrcp.f32 %v4159_v58 }
0x3175   :  { %v8764_v24 = vpop.eup %8763 }
0x3176   :  { %v4164_v47 = vmul.f32 %v8764_v24, %v8756_v15 }
0x3177   :  { %v8766_v21 = vpop.eup %8765 }
0x3178   :  { %v4168_v54 = vpack.c.bf16 %v4164_v47, %v4164_v47  ;;  %v4165_v52 = vmul.f32 %v8766_v21, %v8758_v22 }
0x317a   :  { %v4169_v63 = vpack.c.bf16 %v4165_v52, %v4165_v52  ;;  %8152 = vmatmul.mubr.msk.bf16.vlgmr.msra.gmra.mxu1 %vm2013_vm5, %v4168_v54 }
0x317b   :  { %8162 = vmatpush3.bf16.msra.mxu1 %v9778_v28  ;;  %8163 = vmatprep.mubr.msk.bf16.mxu1 %vm9058_vm1, %v9057_v1 }
0x317c   :  { %8158 = vmatmul.mubr.msk.bf16.vlgmr.msra.gmra.mxu0 %vm2013_vm5, %v4169_v63  ;;  %8173 = vmatprep.subr.bf16.mxu1 %v9057_v1 }
0x317d   :  { %v8768_v16 = vpop.eup %8767  ;;  %8168 = vmatpush3.bf16.msra.mxu0 %v9786_v31  ;;  %8169 = vmatprep.mubr.msk.bf16.mxu0 %vm9058_vm1, %v9057_v1 }
0x317e   :  { %v4166_v30 = vmul.f32 %v8768_v16, %v8760_v57  ;;  %8181 = vmatprep.subr.bf16.mxu0 %v9057_v1 }
0x3180   :  { %v4170_v39 = vpack.c.bf16 %v4166_v30, %v4166_v30 }
0x3181   :  { %v8770_v2 = vpop.eup %8769 }
0x3182   :  { %v4167_v60 = vmul.f32 %v8770_v2, %v8762_v8  ;;  %8164 = vmatmul.mubr.msk.bf16.vlgmr.msra.gmra.mxu1 %vm2013_vm5, %v4170_v39 }
0x3183   :  { %8174 = vmatpush3.bf16.msra.mxu1 %v10148_v40  ;;  %8177 = vmatprep.mubr.msk.bf16.mxu1 %vm9058_vm1, %v9057_v1 }
0x3184   :  { %v4171_v4 = vpack.c.bf16 %v4167_v60, %v4167_v60  ;;  %8175 = vmatprep.subr.bf16.mxu1 %v9057_v1 }
0x3186   :  { %8170 = vmatmul.mubr.msk.bf16.vlgmr.msra.gmra.mxu0 %vm2013_vm5, %v4171_v4 }
0x3187   :  { %8176 = vmatpush3.bf16.msra.mxu1 %v10155_v61  ;;  %8182 = vmatpush3.bf16.msra.mxu0 %v10158_v53 }
0x3188   :  { %8183 = vmatprep.subr.bf16.mxu0 %v9057_v1  ;;  %8185 = vmatprep.mubr.msk.bf16.mxu0 %vm9058_vm1, %v9057_v1 }
0x3189   :  { %8189 = vmatprep.subr.bf16.mxu1 %v9057_v1 }
0x318a   :  { %8178 = vmatmul.mubr.msk.bf16.vlgmr.msra.gmra.mxu1 %vm293_vm7, %v10094_v0 }
0x318b   :  { %8184 = vmatpush3.bf16.msra.mxu0 %v10167_v3  ;;  %8190 = vmatpush3.bf16.msra.mxu1 %v9925_v23 }
0x318c   :  { %8197 = vmatprep.subr.bf16.mxu0 %v9057_v1  ;;  %8191 = vmatprep.subr.bf16.mxu1 %v9057_v1 }
0x318d   :  { %8193 = vmatprep.mubr.msk.bf16.mxu1 %vm9058_vm1, %v9057_v1 }
0x318f   :  { %8192 = vmatpush3.bf16.msra.mxu1 %v9932_v11 }
0x3190   :  { %8205 = vmatprep.subr.bf16.mxu1 %v9057_v1 }
0x323a   :  { %v4209_v48 = vpop.f32.mrf.mxu1 }
0x323b   :  { %v4344_v44 = vpack.c.bf16 %v4209_v48, %v4209_v48 }
0x323c   :  { %v8153_v12 = vpop.f32.mrf.mxu1  ;;  %v4252_v20 = vpop.f32.mrf.mxu0 }
0x323d   :  { %v4345_v35 = vpack.c.bf16 %v4252_v20, %v4252_v20  ;;  %v4392_v51 = vunpack.c.l.b16 %v4344_v44 }
0x323e   :  { %v4212_v14 = vpop.f32.mrf.mxu1  ;;  %v8159_v26 = vpop.f32.mrf.mxu0 }
0x323f   :  { %v4393_v25 = vunpack.c.l.b16 %v4345_v35 }
0x3240   :  { %v8154_v27 = vpop.f32.mrf.mxu1  ;;  %v4255_v29 = vpop.f32.mrf.mxu0 }
0x3241   :  { %v4396_v11 = vrot.slane %v4393_v25, 7 }
0x3242   :  { %v8160_v23 = vpop.f32.mrf.mxu0  ;;  %v4295_v49 = vpop.f32.mrf.mxu1 }
0x3243   :  { %v4346_v34 = vpack.c.bf16 %v4295_v49, %v4295_v49  ;;  %v4397_v18 = vsel %vm2259_vm6, %v4396_v11, %v4392_v51 }
0x3244   :  { %v8165_v17 = vpop.f32.mrf.mxu1 }
0x3245   :  { %v4394_v50 = vunpack.c.l.b16 %v4346_v34 }
0x3246   :  { %v4298_v55 = vpop.f32.mrf.mxu1  ;;  %v4338_v15 = vpop.f32.mrf.mxu0 }
0x3247   :  { %v4347_v7 = vpack.c.bf16 %v4338_v15, %v4338_v15  ;;  %v4398_v22 = vrot.slane %v4394_v50, 6  ;;  %v4541_v55 = vrot.slane %v10089_v37, 4 }
0x3248   :  { %v8166_v41 = vpop.f32.mrf.mxu1  ;;  %v8171_v57 = vpop.f32.mrf.mxu0 }
0x3249   :  { %v4395_v8 = vunpack.c.l.b16 %v4347_v7  ;;  %v4399_v58 = vsel %vm2262_vm8, %v4398_v22, %v4397_v18 }
0x324a   :  { %v4341_v56 = vpop.f32.mrf.mxu0  ;;  %v4382_v62 = vpop.f32.mrf.mxu1 }
0x324b   :  { %v4400_v43 = vrot.slane %v4395_v8, 5 }
0x324c   :  { %v8172_v24 = vpop.f32.mrf.mxu0  ;;  %v8179_v47 = vpop.f32.mrf.mxu1 }
0x324d   :  { %v4401_v21 = vsel %vm2265_vm9, %v4400_v43, %v4399_v58 }
0x324e   :  { %v4402_v54 = vpack.c.b16 %v4401_v21, %v4401_v21  ;;  %v4385_v52 = vpop.f32.mrf.mxu1 }
0x3250   :  { %v8180_v63 = vpop.f32.mrf.mxu1  ;;  %8186 = vmatmul.mubr.msk.bf16.vlgmr.msra.gmra.mxu0 %vm293_vm7, %v4402_v54 }
0x3251   :  { %8198 = vmatpush3.bf16.msra.mxu0 %v9940_v6  ;;  %8201 = vmatprep.mubr.msk.bf16.mxu0 %vm9058_vm1, %v9057_v1 }
0x3252   :  { %8199 = vmatprep.subr.bf16.mxu0 %v9057_v1 }
0x3255   :  { %8200 = vmatpush3.bf16.msra.mxu0 %v9946_v9 }
0x3256   :  { %8213 = vmatprep.subr.bf16.mxu0 %v9057_v1 }
0x3258   :  { %8202 = vmatmul.mubr.msk.bf16.vlgmr.msra.gmra.mxu0 %vm293_vm7, %v10094_v0 }
0x3259   :  { %8214 = vmatpush3.bf16.xpose.msra.mxu0 %v9702_v13  ;;  %8215 = vmatprep.mubr.msk.bf16.mxu0 %vm9058_vm1, %v9057_v1 }
0x325a   :  { %8225 = vmatprep.subr.bf16.mxu0 %v9057_v1 }
0x3310   :  { %v4440_v6 = vpop.f32.mrf.mxu0 }
0x3311   :  { %v4441_v16 = vadd.f32 %v4440_v6, %v4382_v62 }
0x3312   :  { %v8187_v30 = vpop.f32.mrf.mxu0 }
0x3313   :  { %8771 = vtanh.f32 %v4441_v16 }
0x3314   :  { %v4443_v39 = vpop.f32.mrf.mxu0 }
0x3316   :  { %v8188_v2 = vpop.f32.mrf.mxu0 }
0x3318   :  { %v4526_v60 = vpop.f32.mrf.mxu0 }
0x331a   :  { %v8203_v9 = vpop.f32.mrf.mxu0 }
0x331c   :  { %v4529_v4 = vpop.f32.mrf.mxu0 }
0x331e   :  { %v8204_v48 = vpop.f32.mrf.mxu0 }
0x3320   :  { %v8772_v12 = vpop.eup %8771 }
0x3321   :  { %v4447_v20 = vpack.c.bf16 %v8772_v12, %v8772_v12  ;;  %7277 = vst.msk [vmem:[#allocation13 + $0xc] sm:$0xf] %vm7273_vm10, %v8772_v12 }
0x3323   :  { %8194 = vmatmul.mubr.msk.bf16.vlgmr.msra.gmra.mxu1 %vm293_vm7, %v4447_v20 }
0x3324   :  { %8206 = vmatpush3.bf16.msra.mxu1 %v10072_v36  ;;  %8209 = vmatprep.mubr.msk.bf16.mxu1 %vm9058_vm1, %v9057_v1 }
0x3325   :  { %8207 = vmatprep.subr.bf16.mxu1 %v9057_v1 }
0x3328   :  { %8208 = vmatpush3.bf16.msra.mxu1 %v10081_v32 }
0x3329   :  { %8219 = vmatprep.subr.bf16.mxu1 %v9057_v1 }
0x33e3   :  { %v4485_v0 = vpop.f32.mrf.mxu1 }
0x33e4   :  { %v4491_v14 = vadd.f32 %v4485_v0, %v9659_v5 }
0x33e5   :  { %v8195_v26 = vpop.f32.mrf.mxu1 }
0x33e6   :  { %v4532_v35 = vadd.f32 %v4526_v60, %v4491_v14 }
0x33e7   :  { %v4488_v27 = vpop.f32.mrf.mxu1 }
0x33e8   :  { %8773 = vtanh.f32 %v4532_v35  ;;  %v7421_v49 = vmul.f32 -1.442695, %v4532_v35 }
0x33e9   :  { %v8196_v29 = vpop.f32.mrf.mxu1 }
0x33ea   :  { %8775 = vpow2.f32 %v7421_v49 }
0x33f5   :  { %v8774_v23 = vpop.eup %8773 }
0x33f6   :  { %4545 = vrot.lane.b32.xlu1 %v8774_v23, %s9059_s2 }
0x33f7   :  { %v8776_v25 = vpop.eup %8775 }
0x33f8   :  { %v4536_v34 = vadd.f32 1.0, %v8776_v25 }
0x33fa   :  { %8777 = vrcp.f32 %v4536_v34 }
0x3407   :  { %v8778_v17 = vpop.eup %8777 }
0x3408   :  { %v4543_v15 = vmul.f32 %v8778_v17, %v4541_v55 }
0x3468   :  { %v4546_v44 = vpop.permute.xlu1 %4545 }
0x3469   :  { %v4548_v50 = vmul.f32 %v8778_v17, %v4546_v44 }
0x346b   :  { %4550 = vrot.lane.b32.xlu0 %v4548_v50, %s9059_s2 }
0x34dd   :  { %v4551_v11 = vpop.permute.xlu0 %4550 }
0x34de   :  { %v10205_v7 = vadd.f32 %v4551_v11, %v4543_v15 }
0x34e0   :  { %8779 = vtanh.f32 %v10205_v7 }
0x34ed   :  { %v8780_v22 = vpop.eup %8779 }
0x34ee   :  { %4556 = vrot.lane.b32.xlu1 %v8780_v22, %s9059_s2 }
0x3560   :  { %v4557_v41 = vpop.permute.xlu1 %4556 }
0x3561   :  { %v4559_v57 = vmul.f32 %v8778_v17, %v4557_v41 }
0x3563   :  { %v4560_v51 = vpack.c.bf16 %v4559_v57, %v4559_v57 }
0x3565   :  { %4562 = vrot.lane.b32.xlu1 %v4560_v51, %s9051_s14 }
0x35d7   :  { %v10210_v8 = vpop.permute.xlu1 %4562 }
0x35d8   :  { %8210 = vmatmul.mubr.msk.bf16.vlgmr.msra.gmra.mxu1 %vm293_vm7, %v10210_v8 }
0x35d9   :  { %8220 = vmatpush3.bf16.xpose.msra.mxu1 %v9715_v19  ;;  %8221 = vmatprep.mubr.msk.bf16.mxu1 %vm9058_vm1, %v9057_v1 }
0x35da   :  { %8231 = vmatprep.subr.bf16.mxu1 %v9057_v1 }
0x3698   :  { %v4601_v37 = vpop.f32.mrf.mxu1 }
0x3699   :  { %v4607_v56 = vpack.c.bf16 %v4601_v37, %v4601_v37 }
0x369a   :  { %v8211_v62 = vpop.f32.mrf.mxu1 }
0x369b   :  { %v4615_v18 = vrot.slane %v4607_v56, %v9263_v33 }
0x369c   :  { %v4604_v43 = vpop.f32.mrf.mxu1 }
0x369d   :  { %v4616_v58 = vcombine.high %v4615_v18, %v4615_v18  ;;  %v4623_v24 = vrot.slane %v4615_v18, %v9263_v33 }
0x369e   :  { %v8212_v47 = vpop.f32.mrf.mxu1 }
0x369f   :  { %v4630_v21 = vrot.slane %v4616_v58, %v9263_v33  ;;  %v4632_v54 = vunpack.i.h.s16 %v4623_v24  ;;  %v7423_v52 = vpack.i.b16 %v4623_v24, %v4623_v24 }
0x36a1   :  { %v4639_v63 = vrot.slane %v7423_v52, %v9270_v45  ;;  %v4683_v6 = vpack.i.b16 %v4632_v54, %v4632_v54  ;;  %v4634_v16 = vunpack.i.h.s16 %v4630_v21  ;;  %v7426_v39 = vpack.i.b16 %v4630_v21, %v4630_v21 }
0x36a3   :  { %v4687_v30 = vrot.slane %v4683_v6, %v9270_v45  ;;  %8216 = vmatmul.mubr.msk.bf16.vlgmr.msra.gmra.mxu0 %vm293_vm7, %v4639_v63  ;;  %v4779_v2 = vpack.i.b16 %v4634_v16, %v4634_v16  ;;  %v4735_v60 = vrot.slane %v7426_v39, %v9270_v45 }
0x36a4   :  { %8226 = vmatpush3.bf16.xpose.msra.mxu0 %v9733_v10  ;;  %8227 = vmatprep.mubr.msk.bf16.mxu0 %vm9058_vm1, %v9057_v1 }
0x36a5   :  { %8222 = vmatmul.mubr.msk.bf16.vlgmr.msra.gmra.mxu1 %vm293_vm7, %v4687_v30  ;;  %8237 = vmatprep.subr.bf16.mxu0 %v9057_v1  ;;  %v4783_v9 = vrot.slane %v4779_v2, %v9270_v45 }
0x36a6   :  { %8232 = vmatpush3.bf16.xpose.msra.mxu1 %v9742_v38  ;;  %8233 = vmatprep.mubr.msk.bf16.mxu1 %vm9058_vm1, %v9057_v1 }
0x36a7   :  { %8243 = vmatprep.subr.bf16.mxu1 %v9057_v1 }
0x36ab   :  { %8228 = vmatmul.mubr.msk.bf16.vlgmr.msra.gmra.mxu0 %vm293_vm7, %v4735_v60 }
0x36ac   :  { %8238 = vmatpush3.bf16.msra.mxu0 %v9752_v42  ;;  %8239 = vmatprep.mubr.msk.bf16.mxu0 %vm9058_vm1, %v9057_v1 }
0x36ad   :  { %8234 = vmatmul.mubr.msk.bf16.vlgmr.msra.gmra.mxu1 %vm293_vm7, %v4783_v9  ;;  %8249 = vmatprep.subr.bf16.mxu0 %v9057_v1 }
0x36ae   :  { %8244 = vmatpush3.bf16.msra.mxu1 %v9760_v46  ;;  %8245 = vmatprep.mubr.msk.bf16.mxu1 %vm9058_vm1, %v9057_v1 }
0x36af   :  { %8255 = vmatprep.subr.bf16.mxu1 %v9057_v1 }
0x3763   :  { %v4677_v4 = vpop.f32.mrf.mxu0 }
0x3764   :  { %v4827_v48 = vsel %vm1964_vm4, %v4677_v4, -inf }
0x3765   :  { %v4725_v12 = vpop.f32.mrf.mxu1  ;;  %4828 = vmax.xlane.f32.xlu0 %v4827_v48  ;;  %v8217_v20 = vpop.f32.mrf.mxu0 }
0x3766   :  { %v4830_v0 = vsel %vm1964_vm4, %v4725_v12, -inf }
0x3767   :  { %4831 = vmax.xlane.f32.xlu1 %v4830_v0  ;;  %v4680_v14 = vpop.f32.mrf.mxu0  ;;  %v8223_v26 = vpop.f32.mrf.mxu1 }
0x3769   :  { %v8218_v35 = vpop.f32.mrf.mxu0  ;;  %v4728_v27 = vpop.f32.mrf.mxu1 }
0x376b   :  { %v8224_v29 = vpop.f32.mrf.mxu1  ;;  %v4773_v23 = vpop.f32.mrf.mxu0 }
0x376c   :  { %v4833_v49 = vsel %vm1964_vm4, %v4773_v23, -inf }
0x376d   :  { %v4821_v25 = vpop.f32.mrf.mxu1  ;;  %4834 = vmax.xlane.f32.xlu0 %v4833_v49  ;;  %v8229_v34 = vpop.f32.mrf.mxu0 }
0x376e   :  { %v4836_v50 = vsel %vm1964_vm4, %v4821_v25, -inf  ;;  %v10278_v34 = vld [vmem:[#allocation7 + $0x8] sm:$0xff]  }
0x376f   :  { %v4776_v17 = vpop.f32.mrf.mxu0  ;;  %v8235_v44 = vpop.f32.mrf.mxu1 }
0x3770   :  { %v10285_v17 = vld [vmem:[#allocation7] sm:$0xff]  }
0x3771   :  { %v4824_v55 = vpop.f32.mrf.mxu1  ;;  %4837 = vmax.xlane.f32.xlu0 %v4836_v50  ;;  %v8230_v15 = vpop.f32.mrf.mxu0 }
0x3773   :  { %v8236_v11 = vpop.f32.mrf.mxu1 }
0x37ee   :  { %v4829_v22 = vpop.xlane.xlu0 %4828 }
0x37ef   :  { %v4839_v41 = vsub.f32 %v4677_v4, %v4829_v22 }
0x37f0   :  { %v4832_v57 = vpop.xlane.xlu1 %4831 }
0x37f1   :  { %v4843_v51 = vmul.f32 1.442695, %v4839_v41  ;;  %v4840_v37 = vsub.f32 %v4725_v12, %v4832_v57 }
0x37f3   :  { %8781 = vpow2.f32 %v4843_v51  ;;  %v4845_v56 = vmul.f32 1.442695, %v4840_v37 }
0x37f5   :  { %8783 = vpow2.f32 %v4845_v56 }
0x37f6   :  { %v4835_v62 = vpop.xlane.xlu0 %4834 }
0x37f7   :  { %v4841_v18 = vsub.f32 %v4773_v23, %v4835_v62 }
0x37f9   :  { %v4847_v43 = vmul.f32 1.442695, %v4841_v18 }
0x37fa   :  { %v4838_v58 = vpop.xlane.xlu0 %4837 }
0x37fb   :  { %8785 = vpow2.f32 %v4847_v43  ;;  %v4842_v24 = vsub.f32 %v4821_v25, %v4838_v58 }
0x37fd   :  { %v4849_v47 = vmul.f32 1.442695, %v4842_v24 }
0x37ff   :  { %8787 = vpow2.f32 %v4849_v47 }
0x3800   :  { %v8782_v21 = vpop.eup %8781 }
0x3801   :  { %v4851_v54 = vsel %vm1964_vm4, %v8782_v21, 0.0 }
0x3802   :  { %v8784_v52 = vpop.eup %8783  ;;  %4852 = vadd.xlane.f32.xlu1 %v4851_v54 }
0x3803   :  { %v4854_v63 = vsel %vm1964_vm4, %v8784_v52, 0.0 }
0x3804   :  { %4855 = vadd.xlane.f32.xlu0 %v4854_v63 }
0x3808   :  { %v8786_v6 = vpop.eup %8785 }
0x3809   :  { %v4857_v16 = vsel %vm1964_vm4, %v8786_v6, 0.0 }
0x380a   :  { %4858 = vadd.xlane.f32.xlu1 %v4857_v16 }
0x380c   :  { %v8788_v30 = vpop.eup %8787 }
0x380d   :  { %v4860_v39 = vsel %vm1964_vm4, %v8788_v30, 0.0 }
0x380e   :  { %4861 = vadd.xlane.f32.xlu0 %v4860_v39 }
0x388b   :  { %v4853_v2 = vpop.xlane.xlu1 %4852 }
0x388c   :  { %8789 = vrcp.f32 %v4853_v2 }
0x388d   :  { %v4856_v60 = vpop.xlane.xlu0 %4855 }
0x388e   :  { %8791 = vrcp.f32 %v4856_v60 }
0x3893   :  { %v4859_v9 = vpop.xlane.xlu1 %4858 }
0x3894   :  { %8793 = vrcp.f32 %v4859_v9 }
0x3897   :  { %v4862_v4 = vpop.xlane.xlu0 %4861 }
0x3898   :  { %8795 = vrcp.f32 %v4862_v4 }
0x3899   :  { %v8790_v48 = vpop.eup %8789 }
0x389a   :  { %v4867_v12 = vmul.f32 %v8790_v48, %v8782_v21 }
0x389b   :  { %v8792_v20 = vpop.eup %8791 }
0x389c   :  { %v4871_v0 = vpack.c.bf16 %v4867_v12, %v4867_v12  ;;  %v4868_v14 = vmul.f32 %v8792_v20, %v8784_v52 }
0x389e   :  { %v4872_v26 = vpack.c.bf16 %v4868_v14, %v4868_v14  ;;  %8240 = vmatmul.mubr.msk.bf16.vlgmr.msra.gmra.mxu0 %vm2013_vm5, %v4871_v0 }
0x389f   :  { %8250 = vmatpush3.bf16.msra.mxu0 %v9778_v28  ;;  %8251 = vmatprep.mubr.msk.bf16.mxu0 %vm9058_vm1, %v9057_v1 }
0x38a0   :  { %8246 = vmatmul.mubr.msk.bf16.vlgmr.msra.gmra.mxu1 %vm2013_vm5, %v4872_v26  ;;  %8261 = vmatprep.subr.bf16.mxu0 %v9057_v1 }
0x38a1   :  { %v8794_v35 = vpop.eup %8793  ;;  %8256 = vmatpush3.bf16.msra.mxu1 %v9786_v31  ;;  %8257 = vmatprep.mubr.msk.bf16.mxu1 %vm9058_vm1, %v9057_v1 }
0x38a2   :  { %v4869_v27 = vmul.f32 %v8794_v35, %v8786_v6  ;;  %8269 = vmatprep.subr.bf16.mxu1 %v9057_v1  ;;  %v10293_v35 = vld [vmem:[#allocation8 + $0x8] sm:$0xff]  }
0x38a4   :  { %v4873_v29 = vpack.c.bf16 %v4869_v27, %v4869_v27  ;;  %v10299_v27 = vld [vmem:[#allocation8] sm:$0xff]  }
0x38a5   :  { %v8796_v23 = vpop.eup %8795 }
0x38a6   :  { %v4870_v49 = vmul.f32 %v8796_v23, %v8788_v30  ;;  %8252 = vmatmul.mubr.msk.bf16.vlgmr.msra.gmra.mxu0 %vm2013_vm5, %v4873_v29 }
0x38a7   :  { %8262 = vmatpush3.bf16.msra.mxu0 %v10148_v40  ;;  %8265 = vmatprep.mubr.msk.bf16.mxu0 %vm9058_vm1, %v9057_v1 }
0x38a8   :  { %v4874_v25 = vpack.c.bf16 %v4870_v49, %v4870_v49  ;;  %8263 = vmatprep.subr.bf16.mxu0 %v9057_v1 }
0x38aa   :  { %8258 = vmatmul.mubr.msk.bf16.vlgmr.msra.gmra.mxu1 %vm2013_vm5, %v4874_v25 }
0x38ab   :  { %8264 = vmatpush3.bf16.msra.mxu0 %v10155_v61  ;;  %8270 = vmatpush3.bf16.msra.mxu1 %v10158_v53 }
0x38ac   :  { %8271 = vmatprep.subr.bf16.mxu1 %v9057_v1  ;;  %8273 = vmatprep.mubr.msk.bf16.mxu1 %vm9058_vm1, %v9057_v1 }
0x38ad   :  { %8277 = vmatprep.subr.bf16.mxu0 %v9057_v1 }
0x38ae   :  { %8266 = vmatmul.mubr.msk.bf16.vlgmr.msra.gmra.mxu0 %vm293_vm7, %v10210_v8 }
0x38af   :  { %8272 = vmatpush3.bf16.msra.mxu1 %v10167_v3  ;;  %8278 = vmatpush3.bf16.msra.mxu0 %v10278_v34 }
0x38b0   :  { %8285 = vmatprep.subr.bf16.mxu1 %v9057_v1  ;;  %8279 = vmatprep.subr.bf16.mxu0 %v9057_v1 }
0x38b1   :  { %8281 = vmatprep.mubr.msk.bf16.mxu0 %vm9058_vm1, %v9057_v1 }
0x38b3   :  { %8280 = vmatpush3.bf16.msra.mxu0 %v10285_v17 }
0x38b4   :  { %8293 = vmatprep.subr.bf16.mxu0 %v9057_v1 }
0x395e   :  { %v4912_v44 = vpop.f32.mrf.mxu0 }
0x395f   :  { %v5047_v43 = vpack.c.bf16 %v4912_v44, %v4912_v44 }
0x3960   :  { %v8241_v50 = vpop.f32.mrf.mxu0  ;;  %v4955_v55 = vpop.f32.mrf.mxu1 }
0x3961   :  { %v5048_v22 = vpack.c.bf16 %v4955_v55, %v4955_v55  ;;  %v5095_v16 = vunpack.c.l.b16 %v5047_v43 }
0x3962   :  { %v4915_v15 = vpop.f32.mrf.mxu0  ;;  %v8247_v11 = vpop.f32.mrf.mxu1 }
0x3963   :  { %v5096_v56 = vunpack.c.l.b16 %v5048_v22 }
0x3964   :  { %v8242_v41 = vpop.f32.mrf.mxu0  ;;  %v4958_v57 = vpop.f32.mrf.mxu1 }
0x3965   :  { %v5099_v21 = vrot.slane %v5096_v56, 7 }
0x3966   :  { %v8248_v51 = vpop.f32.mrf.mxu1  ;;  %v4998_v37 = vpop.f32.mrf.mxu0 }
0x3967   :  { %v5049_v62 = vpack.c.bf16 %v4998_v37, %v4998_v37  ;;  %v5100_v60 = vsel %vm2259_vm6, %v5099_v21, %v5095_v16 }
0x3968   :  { %v8253_v18 = vpop.f32.mrf.mxu0 }
0x3969   :  { %v5097_v58 = vunpack.c.l.b16 %v5049_v62 }
0x396a   :  { %v5001_v24 = vpop.f32.mrf.mxu0  ;;  %v5041_v47 = vpop.f32.mrf.mxu1 }
0x396b   :  { %v5050_v54 = vpack.c.bf16 %v5041_v47, %v5041_v47  ;;  %v5101_v52 = vrot.slane %v5097_v58, 6 }
0x396c   :  { %v8254_v63 = vpop.f32.mrf.mxu0  ;;  %v8259_v6 = vpop.f32.mrf.mxu1 }
0x396d   :  { %v5098_v30 = vunpack.c.l.b16 %v5050_v54  ;;  %v5102_v4 = vsel %vm2262_vm8, %v5101_v52, %v5100_v60  ;;  %v5250_v52 = vrot.slane %v10205_v7, 4 }
0x396e   :  { %v5044_v39 = vpop.f32.mrf.mxu1  ;;  %v5085_v2 = vpop.f32.mrf.mxu0 }
0x396f   :  { %v5103_v9 = vrot.slane %v5098_v30, 5 }
0x3970   :  { %v8260_v48 = vpop.f32.mrf.mxu1  ;;  %v8267_v12 = vpop.f32.mrf.mxu0 }
0x3971   :  { %v5104_v20 = vsel %vm2265_vm9, %v5103_v9, %v5102_v4 }
0x3972   :  { %v5105_v0 = vpack.c.b16 %v5104_v20, %v5104_v20  ;;  %v5088_v14 = vpop.f32.mrf.mxu0 }
0x3974   :  { %v8268_v26 = vpop.f32.mrf.mxu0  ;;  %8274 = vmatmul.mubr.msk.bf16.vlgmr.msra.gmra.mxu1 %vm293_vm7, %v5105_v0 }
0x3975   :  { %8286 = vmatpush3.bf16.msra.mxu1 %v10293_v35  ;;  %8289 = vmatprep.mubr.msk.bf16.mxu1 %vm9058_vm1, %v9057_v1 }
0x3976   :  { %8287 = vmatprep.subr.bf16.mxu1 %v9057_v1 }
0x3979   :  { %8288 = vmatpush3.bf16.msra.mxu1 %v10299_v27 }
0x397a   :  { %8301 = vmatprep.subr.bf16.mxu1 %v9057_v1 }
0x397c   :  { %8290 = vmatmul.mubr.msk.bf16.vlgmr.msra.gmra.mxu1 %vm293_vm7, %v10210_v8 }
0x397d   :  { %8302 = vmatpush3.bf16.xpose.msra.mxu1 %v9702_v13  ;;  %8303 = vmatprep.mubr.msk.bf16.mxu1 %vm9058_vm1, %v9057_v1 }
0x397e   :  { %8313 = vmatprep.subr.bf16.mxu1 %v9057_v1 }
0x3a34   :  { %v5143_v29 = vpop.f32.mrf.mxu1 }
0x3a35   :  { %v5144_v23 = vadd.f32 %v5143_v29, %v5085_v2 }
0x3a36   :  { %v8275_v49 = vpop.f32.mrf.mxu1 }
0x3a37   :  { %8797 = vtanh.f32 %v5144_v23 }
0x3a38   :  { %v5146_v25 = vpop.f32.mrf.mxu1 }
0x3a3a   :  { %v8276_v44 = vpop.f32.mrf.mxu1 }
0x3a3c   :  { %v5232_v50 = vpop.f32.mrf.mxu1 }
0x3a3d   :  { %v5239_v37 = vrot.slane %v5232_v50, 4 }
0x3a3e   :  { %v8291_v55 = vpop.f32.mrf.mxu1 }
0x3a40   :  { %v5235_v15 = vpop.f32.mrf.mxu1 }
0x3a42   :  { %v8292_v11 = vpop.f32.mrf.mxu1 }
0x3a44   :  { %v8798_v22 = vpop.eup %8797 }
0x3a45   :  { %v5150_v41 = vpack.c.bf16 %v8798_v22, %v8798_v22  ;;  %7278 = vst.msk [vmem:[#allocation13 + $0x10] sm:$0xf] %vm7273_vm10, %v8798_v22 }
0x3a47   :  { %8282 = vmatmul.mubr.msk.bf16.vlgmr.msra.gmra.mxu0 %vm293_vm7, %v5150_v41 }
0x3a48   :  { %8294 = vmatpush3.bf16.msra.mxu0 %v10072_v36  ;;  %8297 = vmatprep.mubr.msk.bf16.mxu0 %vm9058_vm1, %v9057_v1 }
0x3a49   :  { %8295 = vmatprep.subr.bf16.mxu0 %v9057_v1 }
0x3a4c   :  { %8296 = vmatpush3.bf16.msra.mxu0 %v10081_v32 }
0x3a4d   :  { %8307 = vmatprep.subr.bf16.mxu0 %v9057_v1 }
0x3b07   :  { %v5188_v8 = vpop.f32.mrf.mxu0 }
0x3b08   :  { %v5195_v57 = vrot.slane %v5188_v8, 4 }
0x3b09   :  { %v8283_v51 = vpop.f32.mrf.mxu0 }
0x3b0a   :  { %v5197_v56 = vadd.f32 %v5195_v57, %v9659_v5 }
0x3b0b   :  { %v5191_v62 = vpop.f32.mrf.mxu0 }
0x3b0c   :  { %v5241_v18 = vadd.f32 %v5239_v37, %v5197_v56 }
0x3b0d   :  { %v8284_v43 = vpop.f32.mrf.mxu0 }
0x3b0e   :  { %8799 = vtanh.f32 %v5241_v18  ;;  %v7437_v58 = vmul.f32 -1.442695, %v5241_v18 }
0x3b10   :  { %8801 = vpow2.f32 %v7437_v58 }
0x3b1b   :  { %v8800_v36 = vpop.eup %8799 }
0x3b1c   :  { %5254 = vrot.lane.b32.xlu1 %v8800_v36, %s9059_s2 }
0x3b1d   :  { %v8802_v24 = vpop.eup %8801 }
0x3b1e   :  { %v5245_v47 = vadd.f32 1.0, %v8802_v24 }
0x3b20   :  { %8803 = vrcp.f32 %v5245_v47 }
0x3b2d   :  { %v8804_v32 = vpop.eup %8803 }
0x3b2e   :  { %v5252_v5 = vmul.f32 %v8804_v32, %v5250_v52 }
0x3b8e   :  { %v5255_v21 = vpop.permute.xlu1 %5254 }
0x3b8f   :  { %v5257_v54 = vmul.f32 %v8804_v32, %v5255_v21 }
0x3b91   :  { %5259 = vrot.lane.b32.xlu0 %v5257_v54, %s9059_s2 }
0x3c03   :  { %v5260_v63 = vpop.permute.xlu0 %5259 }
0x3c04   :  { %v10321_v6 = vadd.f32 %v5260_v63, %v5252_v5 }
0x3c06   :  { %8805 = vtanh.f32 %v10321_v6 }
0x3c13   :  { %v8806_v16 = vpop.eup %8805 }
0x3c14   :  { %5265 = vrot.lane.b32.xlu1 %v8806_v16, %s9059_s2 }
0x3c86   :  { %v5266_v30 = vpop.permute.xlu1 %5265 }
0x3c87   :  { %v5268_v39 = vmul.f32 %v8804_v32, %v5266_v30 }
0x3c89   :  { %v5269_v2 = vpack.c.bf16 %v5268_v39, %v5268_v39 }
0x3c8b   :  { %v5271_v60 = vrot.slane %v5269_v2, 2 }
0x3c8d   :  { %5272 = vrot.lane.b32.xlu1 %v5271_v60, %s9051_s14 }
0x3cff   :  { %v10326_v9 = vpop.permute.xlu1 %5272 }
0x3d00   :  { %8298 = vmatmul.mubr.msk.bf16.vlgmr.msra.gmra.mxu0 %vm293_vm7, %v10326_v9 }
0x3d01   :  { %8308 = vmatpush3.bf16.xpose.msra.mxu0 %v9715_v19  ;;  %8309 = vmatprep.mubr.msk.bf16.mxu0 %vm9058_vm1, %v9057_v1 }
0x3d02   :  { %8319 = vmatprep.subr.bf16.mxu0 %v9057_v1 }
0x3dc0   :  { %v5311_v7 = vpop.f32.mrf.mxu0 }
0x3dc1   :  { %v5317_v4 = vpack.c.bf16 %v5311_v7, %v5311_v7 }
0x3dc2   :  { %v8299_v48 = vpop.f32.mrf.mxu0 }
0x3dc3   :  { %v5325_v12 = vrot.slane %v5317_v4, %v9263_v33 }
0x3dc4   :  { %v5314_v20 = vpop.f32.mrf.mxu0 }
0x3dc5   :  { %v5326_v0 = vcombine.high %v5325_v12, %v5325_v12  ;;  %v5333_v14 = vrot.slane %v5325_v12, %v9263_v33 }
0x3dc6   :  { %v8300_v26 = vpop.f32.mrf.mxu0 }
0x3dc7   :  { %v5340_v29 = vrot.slane %v5326_v0, %v9263_v33  ;;  %v5342_v23 = vunpack.i.h.s16 %v5333_v14  ;;  %v7439_v49 = vpack.i.b16 %v5333_v14, %v5333_v14 }
0x3dc9   :  { %v5349_v25 = vrot.slane %v7439_v49, %v9270_v45  ;;  %v5393_v44 = vpack.i.b16 %v5342_v23, %v5342_v23  ;;  %v5344_v50 = vunpack.i.h.s16 %v5340_v29  ;;  %v7442_v15 = vpack.i.b16 %v5340_v29, %v5340_v29 }
0x3dcb   :  { %v5397_v55 = vrot.slane %v5393_v44, %v9270_v45  ;;  %8304 = vmatmul.mubr.msk.bf16.vlgmr.msra.gmra.mxu1 %vm293_vm7, %v5349_v25  ;;  %v5489_v11 = vpack.i.b16 %v5344_v50, %v5344_v50  ;;  %v5445_v22 = vrot.slane %v7442_v15, %v9270_v45 }
0x3dcc   :  { %8314 = vmatpush3.bf16.xpose.msra.mxu1 %v9733_v10  ;;  %8315 = vmatprep.mubr.msk.bf16.mxu1 %vm9058_vm1, %v9057_v1 }
0x3dcd   :  { %8310 = vmatmul.mubr.msk.bf16.vlgmr.msra.gmra.mxu0 %vm293_vm7, %v5397_v55  ;;  %8325 = vmatprep.subr.bf16.mxu1 %v9057_v1  ;;  %v5493_v41 = vrot.slane %v5489_v11, %v9270_v45 }
0x3dce   :  { %8320 = vmatpush3.bf16.xpose.msra.mxu0 %v9742_v38  ;;  %8321 = vmatprep.mubr.msk.bf16.mxu0 %vm9058_vm1, %v9057_v1 }
0x3dcf   :  { %8331 = vmatprep.subr.bf16.mxu0 %v9057_v1 }
0x3dd3   :  { %8316 = vmatmul.mubr.msk.bf16.vlgmr.msra.gmra.mxu1 %vm293_vm7, %v5445_v22 }
0x3dd4   :  { %8326 = vmatpush3.bf16.msra.mxu1 %v9752_v42  ;;  %8327 = vmatprep.mubr.msk.bf16.mxu1 %vm9058_vm1, %v9057_v1 }
0x3dd5   :  { %8322 = vmatmul.mubr.msk.bf16.vlgmr.msra.gmra.mxu0 %vm293_vm7, %v5493_v41  ;;  %8337 = vmatprep.subr.bf16.mxu1 %v9057_v1 }
0x3dd6   :  { %8332 = vmatpush3.bf16.msra.mxu0 %v9760_v46  ;;  %8333 = vmatprep.mubr.msk.bf16.mxu0 %vm9058_vm1, %v9057_v1 }
0x3dd7   :  { %8343 = vmatprep.subr.bf16.mxu0 %v9057_v1 }
0x3e8b   :  { %v5387_v8 = vpop.f32.mrf.mxu1 }
0x3e8c   :  { %v5537_v57 = vsel %vm1964_vm4, %v5387_v8, -inf }
0x3e8d   :  { %5538 = vmax.xlane.f32.xlu0 %v5537_v57  ;;  %v8305_v51 = vpop.f32.mrf.mxu1  ;;  %v5435_v37 = vpop.f32.mrf.mxu0 }
0x3e8e   :  { %v5540_v56 = vsel %vm1964_vm4, %v5435_v37, -inf }
0x3e8f   :  { %v5390_v62 = vpop.f32.mrf.mxu1  ;;  %5541 = vmax.xlane.f32.xlu1 %v5540_v56  ;;  %v8311_v18 = vpop.f32.mrf.mxu0 }
0x3e91   :  { %v8306_v43 = vpop.f32.mrf.mxu1  ;;  %v5438_v36 = vpop.f32.mrf.mxu0 }
0x3e93   :  { %v8312_v58 = vpop.f32.mrf.mxu0  ;;  %v5483_v24 = vpop.f32.mrf.mxu1 }
0x3e94   :  { %v5543_v47 = vsel %vm1964_vm4, %v5483_v24, -inf }
0x3e95   :  { %5544 = vmax.xlane.f32.xlu0 %v5543_v47  ;;  %v8317_v32 = vpop.f32.mrf.mxu1  ;;  %v5531_v21 = vpop.f32.mrf.mxu0 }
0x3e96   :  { %v5546_v5 = vsel %vm1964_vm4, %v5531_v21, -inf }
0x3e97   :  { %v5486_v54 = vpop.f32.mrf.mxu1  ;;  %v8323_v52 = vpop.f32.mrf.mxu0 }
0x3e99   :  { %v8318_v63 = vpop.f32.mrf.mxu1  ;;  %5547 = vmax.xlane.f32.xlu0 %v5546_v5  ;;  %v5534_v16 = vpop.f32.mrf.mxu0 }
0x3e9b   :  { %v8324_v30 = vpop.f32.mrf.mxu0 }
0x3f16   :  { %v5539_v39 = vpop.xlane.xlu0 %5538 }
0x3f17   :  { %v5549_v2 = vsub.f32 %v5387_v8, %v5539_v39 }
0x3f18   :  { %v5542_v60 = vpop.xlane.xlu1 %5541 }
0x3f19   :  { %v5553_v7 = vmul.f32 1.442695, %v5549_v2  ;;  %v5550_v4 = vsub.f32 %v5435_v37, %v5542_v60 }
0x3f1b   :  { %8807 = vpow2.f32 %v5553_v7  ;;  %v5555_v48 = vmul.f32 1.442695, %v5550_v4 }
0x3f1d   :  { %8809 = vpow2.f32 %v5555_v48 }
0x3f1e   :  { %v5545_v12 = vpop.xlane.xlu0 %5544 }
0x3f1f   :  { %v5551_v20 = vsub.f32 %v5483_v24, %v5545_v12 }
0x3f21   :  { %v5557_v0 = vmul.f32 1.442695, %v5551_v20 }
0x3f22   :  { %v5548_v14 = vpop.xlane.xlu0 %5547 }
0x3f23   :  { %8811 = vpow2.f32 %v5557_v0  ;;  %v5552_v26 = vsub.f32 %v5531_v21, %v5548_v14 }
0x3f25   :  { %v5559_v29 = vmul.f32 1.442695, %v5552_v26 }
0x3f27   :  { %8813 = vpow2.f32 %v5559_v29 }
0x3f28   :  { %v8808_v23 = vpop.eup %8807 }
0x3f29   :  { %v5561_v49 = vsel %vm1964_vm4, %v8808_v23, 0.0 }
0x3f2a   :  { %v8810_v25 = vpop.eup %8809  ;;  %5562 = vadd.xlane.f32.xlu1 %v5561_v49 }
0x3f2b   :  { %v5564_v44 = vsel %vm1964_vm4, %v8810_v25, 0.0 }
0x3f2c   :  { %5565 = vadd.xlane.f32.xlu0 %v5564_v44 }
0x3f30   :  { %v8812_v50 = vpop.eup %8811 }
0x3f31   :  { %v5567_v55 = vsel %vm1964_vm4, %v8812_v50, 0.0 }
0x3f32   :  { %5568 = vadd.xlane.f32.xlu1 %v5567_v55 }
0x3f34   :  { %v8814_v15 = vpop.eup %8813 }
0x3f35   :  { %v5570_v11 = vsel %vm1964_vm4, %v8814_v15, 0.0 }
0x3f36   :  { %5571 = vadd.xlane.f32.xlu0 %v5570_v11 }
0x3fb3   :  { %v5563_v22 = vpop.xlane.xlu1 %5562 }
0x3fb4   :  { %8815 = vrcp.f32 %v5563_v22 }
0x3fb5   :  { %v5566_v41 = vpop.xlane.xlu0 %5565 }
0x3fb6   :  { %8817 = vrcp.f32 %v5566_v41 }
0x3fbb   :  { %v5569_v8 = vpop.xlane.xlu1 %5568 }
0x3fbc   :  { %8819 = vrcp.f32 %v5569_v8 }
0x3fbf   :  { %v5572_v57 = vpop.xlane.xlu0 %5571 }
0x3fc0   :  { %8821 = vrcp.f32 %v5572_v57 }
0x3fc1   :  { %v8816_v51 = vpop.eup %8815 }
0x3fc2   :  { %v5577_v37 = vmul.f32 %v8816_v51, %v8808_v23 }
0x3fc3   :  { %v8818_v56 = vpop.eup %8817 }
0x3fc4   :  { %v5581_v62 = vpack.c.bf16 %v5577_v37, %v5577_v37  ;;  %v5578_v18 = vmul.f32 %v8818_v56, %v8810_v25 }
0x3fc6   :  { %v5582_v43 = vpack.c.bf16 %v5578_v18, %v5578_v18  ;;  %8328 = vmatmul.mubr.msk.bf16.vlgmr.msra.gmra.mxu1 %vm2013_vm5, %v5581_v62 }
0x3fc7   :  { %8338 = vmatpush3.bf16.msra.mxu1 %v9778_v28  ;;  %8339 = vmatprep.mubr.msk.bf16.mxu1 %vm9058_vm1, %v9057_v1 }
0x3fc8   :  { %8334 = vmatmul.mubr.msk.bf16.vlgmr.msra.gmra.mxu0 %vm2013_vm5, %v5582_v43  ;;  %8349 = vmatprep.subr.bf16.mxu1 %v9057_v1 }
0x3fc9   :  { %v8820_v36 = vpop.eup %8819  ;;  %8344 = vmatpush3.bf16.msra.mxu0 %v9786_v31  ;;  %8345 = vmatprep.mubr.msk.bf16.mxu0 %vm9058_vm1, %v9057_v1 }
0x3fca   :  { %v5579_v58 = vmul.f32 %v8820_v36, %v8812_v50  ;;  %8357 = vmatprep.subr.bf16.mxu0 %v9057_v1 }
0x3fcc   :  { %v5583_v24 = vpack.c.bf16 %v5579_v58, %v5579_v58 }
0x3fcd   :  { %v8822_v47 = vpop.eup %8821 }
0x3fce   :  { %v5580_v32 = vmul.f32 %v8822_v47, %v8814_v15  ;;  %8340 = vmatmul.mubr.msk.bf16.vlgmr.msra.gmra.mxu1 %vm2013_vm5, %v5583_v24 }
0x3fcf   :  { %8350 = vmatpush3.bf16.msra.mxu1 %v10148_v40  ;;  %8353 = vmatprep.mubr.msk.bf16.mxu1 %vm9058_vm1, %v9057_v1 }
0x3fd0   :  { %v5584_v21 = vpack.c.bf16 %v5580_v32, %v5580_v32  ;;  %8351 = vmatprep.subr.bf16.mxu1 %v9057_v1 }
0x3fd2   :  { %8346 = vmatmul.mubr.msk.bf16.vlgmr.msra.gmra.mxu0 %vm2013_vm5, %v5584_v21 }
0x3fd3   :  { %8352 = vmatpush3.bf16.msra.mxu1 %v10155_v61  ;;  %8358 = vmatpush3.bf16.msra.mxu0 %v10158_v53 }
0x3fd4   :  { %8359 = vmatprep.subr.bf16.mxu0 %v9057_v1  ;;  %8361 = vmatprep.mubr.msk.bf16.mxu0 %vm9058_vm1, %v9057_v1 }
0x3fd5   :  { %8365 = vmatprep.subr.bf16.mxu1 %v9057_v1 }
0x3fd6   :  { %8354 = vmatmul.mubr.msk.bf16.vlgmr.msra.gmra.mxu1 %vm293_vm7, %v10326_v9 }
0x3fd7   :  { %8360 = vmatpush3.bf16.msra.mxu0 %v10167_v3  ;;  %8366 = vmatpush3.bf16.msra.mxu1 %v10278_v34 }
0x3fd8   :  { %8373 = vmatprep.subr.bf16.mxu0 %v9057_v1  ;;  %8367 = vmatprep.subr.bf16.mxu1 %v9057_v1 }
0x3fd9   :  { %8369 = vmatprep.mubr.msk.bf16.mxu1 %vm9058_vm1, %v9057_v1 }
0x3fdb   :  { %8368 = vmatpush3.bf16.msra.mxu1 %v10285_v17 }
0x3fdc   :  { %8381 = vmatprep.subr.bf16.mxu1 %v9057_v1 }
0x4086   :  { %v5622_v40 = vpop.f32.mrf.mxu1 }
0x4087   :  { %v5757_v7 = vpack.c.bf16 %v5622_v40, %v5622_v40  ;;  %v10431_v40 = vld [vmem:[%s10644_s9] sm:$0xff]  }
0x4088   :  { %v8329_v61 = vpop.f32.mrf.mxu1  ;;  %v5665_v53 = vpop.f32.mrf.mxu0 }
0x4089   :  { %v5758_v5 = vpack.c.bf16 %v5665_v53, %v5665_v53  ;;  %v5805_v23 = vunpack.c.l.b16 %v5757_v7 }
0x408a   :  { %v5625_v54 = vpop.f32.mrf.mxu1  ;;  %v8335_v52 = vpop.f32.mrf.mxu0 }
0x408b   :  { %v5806_v39 = vunpack.c.l.b16 %v5758_v5 }
0x408c   :  { %v8330_v3 = vpop.f32.mrf.mxu1  ;;  %v5668_v63 = vpop.f32.mrf.mxu0 }
0x408d   :  { %v5809_v20 = vrot.slane %v5806_v39, 7 }
0x408e   :  { %v8336_v16 = vpop.f32.mrf.mxu0  ;;  %v5708_v30 = vpop.f32.mrf.mxu1 }
0x408f   :  { %v5759_v2 = vpack.c.bf16 %v5708_v30, %v5708_v30  ;;  %v5810_v50 = vsel %vm2259_vm6, %v5809_v20, %v5805_v23 }
0x4090   :  { %v8341_v60 = vpop.f32.mrf.mxu1 }
0x4091   :  { %v5807_v4 = vunpack.c.l.b16 %v5759_v2 }
0x4092   :  { %v5711_v48 = vpop.f32.mrf.mxu1  ;;  %v5751_v12 = vpop.f32.mrf.mxu0 }
0x4093   :  { %v5760_v0 = vpack.c.bf16 %v5751_v12, %v5751_v12  ;;  %v5811_v14 = vrot.slane %v5807_v4, 6  ;;  %v5954_v4 = vrot.slane %v10321_v6, 4 }
0x4094   :  { %v8342_v26 = vpop.f32.mrf.mxu1  ;;  %v8347_v29 = vpop.f32.mrf.mxu0 }
0x4095   :  { %v5808_v49 = vunpack.c.l.b16 %v5760_v0  ;;  %v5812_v15 = vsel %vm2262_vm8, %v5811_v14, %v5810_v50 }
0x4096   :  { %v5754_v25 = vpop.f32.mrf.mxu0  ;;  %v5795_v44 = vpop.f32.mrf.mxu1 }
0x4097   :  { %v5813_v55 = vrot.slane %v5808_v49, 5 }
0x4098   :  { %v8348_v11 = vpop.f32.mrf.mxu0  ;;  %v8355_v22 = vpop.f32.mrf.mxu1 }
0x4099   :  { %v5814_v41 = vsel %vm2265_vm9, %v5813_v55, %v5812_v15 }
0x409a   :  { %v5815_v8 = vpack.c.b16 %v5814_v41, %v5814_v41  ;;  %v5798_v57 = vpop.f32.mrf.mxu1 }
0x409c   :  { %v8356_v51 = vpop.f32.mrf.mxu1  ;;  %8362 = vmatmul.mubr.msk.bf16.vlgmr.msra.gmra.mxu0 %vm293_vm7, %v5815_v8 }
0x409d   :  { %8374 = vmatpush3.bf16.msra.mxu0 %v10293_v35  ;;  %8377 = vmatprep.mubr.msk.bf16.mxu0 %vm9058_vm1, %v9057_v1 }
0x409e   :  { %8375 = vmatprep.subr.bf16.mxu0 %v9057_v1 }
0x40a1   :  { %8376 = vmatpush3.bf16.msra.mxu0 %v10299_v27 }
0x40a2   :  { %8389 = vmatprep.subr.bf16.mxu0 %v9057_v1 }
0x40a4   :  { %8378 = vmatmul.mubr.msk.bf16.vlgmr.msra.gmra.mxu0 %vm293_vm7, %v10326_v9  ;;  %v10422_v9 = vld [vmem:[%s10644_s9 + $0x8] sm:$0xff]   ;;  %s9061_s9 = smov [#allocation13]  }
0x40a5   :  { %8390 = vmatpush3.bf16.xpose.msra.mxu0 %v9702_v13  ;;  %8391 = vmatprep.mubr.msk.bf16.mxu0 %vm9058_vm1, %v9057_v1 }
0x40a6   :  { %8401 = vmatprep.subr.bf16.mxu0 %v9057_v1 }
0x415c   :  { %v5853_v37 = vpop.f32.mrf.mxu0 }
0x415d   :  { %v5854_v56 = vadd.f32 %v5853_v37, %v5795_v44 }
0x415e   :  { %v8363_v62 = vpop.f32.mrf.mxu0 }
0x415f   :  { %8823 = vtanh.f32 %v5854_v56 }
0x4160   :  { %v5856_v18 = vpop.f32.mrf.mxu0 }
0x4162   :  { %v8364_v43 = vpop.f32.mrf.mxu0 }
0x4164   :  { %v5939_v36 = vpop.f32.mrf.mxu0 }
0x4166   :  { %v8379_v58 = vpop.f32.mrf.mxu0 }
0x4168   :  { %v5942_v24 = vpop.f32.mrf.mxu0 }
0x416a   :  { %v8380_v47 = vpop.f32.mrf.mxu0 }
0x416c   :  { %v8824_v32 = vpop.eup %8823 }
0x416d   :  { %v5860_v21 = vpack.c.bf16 %v8824_v32, %v8824_v32  ;;  %7279 = vst.msk [vmem:[#allocation13 + $0x14] sm:$0xf] %vm7273_vm10, %v8824_v32 }
0x416f   :  { %8370 = vmatmul.mubr.msk.bf16.vlgmr.msra.gmra.mxu1 %vm293_vm7, %v5860_v21 }
0x4170   :  { %8382 = vmatpush3.bf16.msra.mxu1 %v10422_v9  ;;  %8385 = vmatprep.mubr.msk.bf16.mxu1 %vm9058_vm1, %v9057_v1 }
0x4171   :  { %8383 = vmatprep.subr.bf16.mxu1 %v9057_v1 }
0x4174   :  { %8384 = vmatpush3.bf16.msra.mxu1 %v10431_v40 }
0x4175   :  { %8395 = vmatprep.subr.bf16.mxu1 %v9057_v1 }
0x422f   :  { %v5898_v61 = vpop.f32.mrf.mxu1 }
0x4230   :  { %v5904_v53 = vadd.f32 %v5898_v61, %v9661_v59 }
0x4231   :  { %v8371_v54 = vpop.f32.mrf.mxu1 }
0x4232   :  { %v5945_v52 = vadd.f32 %v5939_v36, %v5904_v53 }
0x4233   :  { %v5901_v5 = vpop.f32.mrf.mxu1 }
0x4234   :  { %8825 = vtanh.f32 %v5945_v52  ;;  %v7453_v16 = vmul.f32 -1.442695, %v5945_v52 }
0x4235   :  { %v8372_v3 = vpop.f32.mrf.mxu1 }
0x4236   :  { %8827 = vpow2.f32 %v7453_v16 }
0x4241   :  { %v8826_v63 = vpop.eup %8825 }
0x4242   :  { %5958 = vrot.lane.b32.xlu1 %v8826_v63, %s9059_s2 }
0x4243   :  { %v8828_v30 = vpop.eup %8827 }
0x4244   :  { %v5949_v39 = vadd.f32 1.0, %v8828_v30 }
0x4246   :  { %8829 = vrcp.f32 %v5949_v39 }
0x4253   :  { %v8830_v2 = vpop.eup %8829 }
0x4254   :  { %v5956_v48 = vmul.f32 %v8830_v2, %v5954_v4 }
0x42b4   :  { %v5959_v60 = vpop.permute.xlu1 %5958 }
0x42b5   :  { %v5961_v7 = vmul.f32 %v8830_v2, %v5959_v60 }
0x42b7   :  { %5963 = vrot.lane.b32.xlu0 %v5961_v7, %s9059_s2 }
0x4329   :  { %v5964_v12 = vpop.permute.xlu0 %5963 }
0x432a   :  { %v10439_v20 = vadd.f32 %v5964_v12, %v5956_v48 }
0x432c   :  { %8831 = vtanh.f32 %v10439_v20 }
0x4339   :  { %v8832_v0 = vpop.eup %8831 }
0x433a   :  { %5969 = vrot.lane.b32.xlu1 %v8832_v0, %s9059_s2 }
0x43ac   :  { %v5970_v14 = vpop.permute.xlu1 %5969 }
0x43ad   :  { %v5972_v26 = vmul.f32 %v8830_v2, %v5970_v14 }
0x43af   :  { %v5973_v29 = vpack.c.bf16 %v5972_v26, %v5972_v26 }
0x43b1   :  { %5975 = vrot.lane.b32.xlu1 %v5973_v29, %s9051_s14 }
0x4423   :  { %v10444_v23 = vpop.permute.xlu1 %5975 }
0x4424   :  { %8386 = vmatmul.mubr.msk.bf16.vlgmr.msra.gmra.mxu1 %vm293_vm7, %v10444_v23 }
0x4425   :  { %8396 = vmatpush3.bf16.xpose.msra.mxu1 %v9715_v19  ;;  %8397 = vmatprep.mubr.msk.bf16.mxu1 %vm9058_vm1, %v9057_v1 }
0x4426   :  { %8407 = vmatprep.subr.bf16.mxu1 %v9057_v1 }
0x44e4   :  { %v6014_v6 = vpop.f32.mrf.mxu1 }
0x44e5   :  { %v6020_v49 = vpack.c.bf16 %v6014_v6, %v6014_v6 }
0x44e6   :  { %v8387_v25 = vpop.f32.mrf.mxu1 }
0x44e7   :  { %v6028_v44 = vrot.slane %v6020_v49, %v9263_v33 }
0x44e8   :  { %v6017_v50 = vpop.f32.mrf.mxu1 }
0x44e9   :  { %v6029_v55 = vcombine.high %v6028_v44, %v6028_v44  ;;  %v6036_v15 = vrot.slane %v6028_v44, %v9263_v33 }
0x44ea   :  { %v8388_v11 = vpop.f32.mrf.mxu1 }
0x44eb   :  { %v6043_v22 = vrot.slane %v6029_v55, %v9263_v33  ;;  %v6045_v41 = vunpack.i.h.s16 %v6036_v15  ;;  %v7455_v8 = vpack.i.b16 %v6036_v15, %v6036_v15 }
0x44ed   :  { %v6052_v57 = vrot.slane %v7455_v8, %v9270_v45  ;;  %v6096_v51 = vpack.i.b16 %v6045_v41, %v6045_v41  ;;  %v6047_v37 = vunpack.i.h.s16 %v6043_v22  ;;  %v7458_v62 = vpack.i.b16 %v6043_v22, %v6043_v22 }
0x44ef   :  { %v6100_v56 = vrot.slane %v6096_v51, %v9270_v45  ;;  %8392 = vmatmul.mubr.msk.bf16.vlgmr.msra.gmra.mxu0 %vm293_vm7, %v6052_v57  ;;  %v6192_v18 = vpack.i.b16 %v6047_v37, %v6047_v37  ;;  %v6148_v43 = vrot.slane %v7458_v62, %v9270_v45 }
0x44f0   :  { %8402 = vmatpush3.bf16.xpose.msra.mxu0 %v9733_v10  ;;  %8403 = vmatprep.mubr.msk.bf16.mxu0 %vm9058_vm1, %v9057_v1 }
0x44f1   :  { %8398 = vmatmul.mubr.msk.bf16.vlgmr.msra.gmra.mxu1 %vm293_vm7, %v6100_v56  ;;  %8413 = vmatprep.subr.bf16.mxu0 %v9057_v1  ;;  %v6196_v36 = vrot.slane %v6192_v18, %v9270_v45 }
0x44f2   :  { %8408 = vmatpush3.bf16.xpose.msra.mxu1 %v9742_v38  ;;  %8409 = vmatprep.mubr.msk.bf16.mxu1 %vm9058_vm1, %v9057_v1 }
0x44f3   :  { %8419 = vmatprep.subr.bf16.mxu1 %v9057_v1 }
0x44f7   :  { %8404 = vmatmul.mubr.msk.bf16.vlgmr.msra.gmra.mxu0 %vm293_vm7, %v6148_v43 }
0x44f8   :  { %8414 = vmatpush3.bf16.msra.mxu0 %v9752_v42  ;;  %8415 = vmatprep.mubr.msk.bf16.mxu0 %vm9058_vm1, %v9057_v1 }
0x44f9   :  { %8410 = vmatmul.mubr.msk.bf16.vlgmr.msra.gmra.mxu1 %vm293_vm7, %v6196_v36  ;;  %8425 = vmatprep.subr.bf16.mxu0 %v9057_v1 }
0x44fa   :  { %8420 = vmatpush3.bf16.msra.mxu1 %v9760_v46  ;;  %8421 = vmatprep.mubr.msk.bf16.mxu1 %vm9058_vm1, %v9057_v1 }
0x44fb   :  { %8431 = vmatprep.subr.bf16.mxu1 %v9057_v1 }
0x45af   :  { %v6090_v58 = vpop.f32.mrf.mxu0 }
0x45b0   :  { %v6240_v24 = vsel %vm1964_vm4, %v6090_v58, -inf }
0x45b1   :  { %v6138_v47 = vpop.f32.mrf.mxu1  ;;  %6241 = vmax.xlane.f32.xlu0 %v6240_v24  ;;  %v8393_v32 = vpop.f32.mrf.mxu0 }
0x45b2   :  { %v6243_v21 = vsel %vm1964_vm4, %v6138_v47, -inf }
0x45b3   :  { %6244 = vmax.xlane.f32.xlu1 %v6243_v21  ;;  %v6093_v61 = vpop.f32.mrf.mxu0  ;;  %v8399_v53 = vpop.f32.mrf.mxu1 }
0x45b5   :  { %v8394_v54 = vpop.f32.mrf.mxu0  ;;  %v6141_v52 = vpop.f32.mrf.mxu1 }
0x45b7   :  { %v8400_v5 = vpop.f32.mrf.mxu1  ;;  %v6186_v3 = vpop.f32.mrf.mxu0 }
0x45b8   :  { %v6246_v63 = vsel %vm1964_vm4, %v6186_v3, -inf }
0x45b9   :  { %v6234_v16 = vpop.f32.mrf.mxu1  ;;  %6247 = vmax.xlane.f32.xlu0 %v6246_v63  ;;  %v8405_v30 = vpop.f32.mrf.mxu0  ;;  %v10498_v63 = vld [vmem:[#allocation11 + $0x8] sm:$0xff]  }
0x45ba   :  { %v6249_v60 = vsel %vm1964_vm4, %v6234_v16, -inf  ;;  %v10505_v30 = vld [vmem:[#allocation11] sm:$0xff]  }
0x45bb   :  { %v6189_v39 = vpop.f32.mrf.mxu0  ;;  %v8411_v2 = vpop.f32.mrf.mxu1 }
0x45bc   :  { %v10508_v39 = vld [vmem:[#allocation10 + $0x8] sm:$0xff]   ;;  %v10517_v2 = vld [vmem:[#allocation10] sm:$0xff]  }
0x45bd   :  { %v6237_v7 = vpop.f32.mrf.mxu1  ;;  %6250 = vmax.xlane.f32.xlu0 %v6249_v60  ;;  %v8406_v4 = vpop.f32.mrf.mxu0 }
0x45bf   :  { %v8412_v48 = vpop.f32.mrf.mxu1 }
0x463a   :  { %v6242_v12 = vpop.xlane.xlu0 %6241 }
0x463b   :  { %v6252_v0 = vsub.f32 %v6090_v58, %v6242_v12 }
0x463c   :  { %v6245_v14 = vpop.xlane.xlu1 %6244 }
0x463d   :  { %v6256_v26 = vmul.f32 1.442695, %v6252_v0  ;;  %v6253_v29 = vsub.f32 %v6138_v47, %v6245_v14 }
0x463f   :  { %8833 = vpow2.f32 %v6256_v26  ;;  %v6258_v6 = vmul.f32 1.442695, %v6253_v29 }
0x4641   :  { %8835 = vpow2.f32 %v6258_v6 }
0x4642   :  { %v6248_v49 = vpop.xlane.xlu0 %6247 }
0x4643   :  { %v6254_v25 = vsub.f32 %v6186_v3, %v6248_v49 }
0x4645   :  { %v6260_v44 = vmul.f32 1.442695, %v6254_v25 }
0x4646   :  { %v6251_v50 = vpop.xlane.xlu0 %6250 }
0x4647   :  { %8837 = vpow2.f32 %v6260_v44  ;;  %v6255_v55 = vsub.f32 %v6234_v16, %v6251_v50 }
0x4649   :  { %v6262_v15 = vmul.f32 1.442695, %v6255_v55 }
0x464b   :  { %8839 = vpow2.f32 %v6262_v15 }
0x464c   :  { %v8834_v11 = vpop.eup %8833 }
0x464d   :  { %v6264_v22 = vsel %vm1964_vm4, %v8834_v11, 0.0 }
0x464e   :  { %v8836_v41 = vpop.eup %8835  ;;  %6265 = vadd.xlane.f32.xlu1 %v6264_v22 }
0x464f   :  { %v6267_v8 = vsel %vm1964_vm4, %v8836_v41, 0.0 }
0x4650   :  { %6268 = vadd.xlane.f32.xlu0 %v6267_v8 }
0x4654   :  { %v8838_v57 = vpop.eup %8837 }
0x4655   :  { %v6270_v51 = vsel %vm1964_vm4, %v8838_v57, 0.0 }
0x4656   :  { %6271 = vadd.xlane.f32.xlu1 %v6270_v51 }
0x4658   :  { %v8840_v37 = vpop.eup %8839 }
0x4659   :  { %v6273_v56 = vsel %vm1964_vm4, %v8840_v37, 0.0 }
0x465a   :  { %6274 = vadd.xlane.f32.xlu0 %v6273_v56 }
0x46d7   :  { %v6266_v62 = vpop.xlane.xlu1 %6265 }
0x46d8   :  { %8841 = vrcp.f32 %v6266_v62 }
0x46d9   :  { %v6269_v18 = vpop.xlane.xlu0 %6268 }
0x46da   :  { %8843 = vrcp.f32 %v6269_v18 }
0x46df   :  { %v6272_v43 = vpop.xlane.xlu1 %6271 }
0x46e0   :  { %8845 = vrcp.f32 %v6272_v43 }
0x46e3   :  { %v6275_v36 = vpop.xlane.xlu0 %6274 }
0x46e4   :  { %8847 = vrcp.f32 %v6275_v36 }
0x46e5   :  { %v8842_v58 = vpop.eup %8841 }
0x46e6   :  { %v6280_v24 = vmul.f32 %v8842_v58, %v8834_v11 }
0x46e7   :  { %v8844_v47 = vpop.eup %8843 }
0x46e8   :  { %v6284_v32 = vpack.c.bf16 %v6280_v24, %v6280_v24  ;;  %v6281_v21 = vmul.f32 %v8844_v47, %v8836_v41 }
0x46ea   :  { %v6285_v61 = vpack.c.bf16 %v6281_v21, %v6281_v21  ;;  %8416 = vmatmul.mubr.msk.bf16.vlgmr.msra.gmra.mxu0 %vm2013_vm5, %v6284_v32 }
0x46eb   :  { %8426 = vmatpush3.bf16.msra.mxu0 %v9778_v28  ;;  %8427 = vmatprep.mubr.msk.bf16.mxu0 %vm9058_vm1, %v9057_v1 }
0x46ec   :  { %8422 = vmatmul.mubr.msk.bf16.vlgmr.msra.gmra.mxu1 %vm2013_vm5, %v6285_v61  ;;  %8437 = vmatprep.subr.bf16.mxu0 %v9057_v1 }
0x46ed   :  { %v8846_v53 = vpop.eup %8845  ;;  %8432 = vmatpush3.bf16.msra.mxu1 %v9786_v31  ;;  %8433 = vmatprep.mubr.msk.bf16.mxu1 %vm9058_vm1, %v9057_v1 }
0x46ee   :  { %v6282_v54 = vmul.f32 %v8846_v53, %v8838_v57  ;;  %8445 = vmatprep.subr.bf16.mxu1 %v9057_v1 }
0x46f0   :  { %v6286_v52 = vpack.c.bf16 %v6282_v54, %v6282_v54 }
0x46f1   :  { %v8848_v5 = vpop.eup %8847 }
0x46f2   :  { %v6283_v3 = vmul.f32 %v8848_v5, %v8840_v37  ;;  %8428 = vmatmul.mubr.msk.bf16.vlgmr.msra.gmra.mxu0 %vm2013_vm5, %v6286_v52 }
0x46f3   :  { %8438 = vmatpush3.bf16.msra.mxu0 %v10498_v63  ;;  %8441 = vmatprep.mubr.msk.bf16.mxu0 %vm9058_vm1, %v9057_v1 }
0x46f4   :  { %v6287_v16 = vpack.c.bf16 %v6283_v3, %v6283_v3  ;;  %8439 = vmatprep.subr.bf16.mxu0 %v9057_v1 }
0x46f6   :  { %8434 = vmatmul.mubr.msk.bf16.vlgmr.msra.gmra.mxu1 %vm2013_vm5, %v6287_v16 }
0x46f7   :  { %8440 = vmatpush3.bf16.msra.mxu0 %v10505_v30  ;;  %8446 = vmatpush3.bf16.msra.mxu1 %v10508_v39 }
0x46f8   :  { %8447 = vmatprep.subr.bf16.mxu1 %v9057_v1  ;;  %8449 = vmatprep.mubr.msk.bf16.mxu1 %vm9058_vm1, %v9057_v1 }
0x46f9   :  { %8453 = vmatprep.subr.bf16.mxu0 %v9057_v1 }
0x46fa   :  { %8442 = vmatmul.mubr.msk.bf16.vlgmr.msra.gmra.mxu0 %vm293_vm7, %v10444_v23 }
0x46fb   :  { %8448 = vmatpush3.bf16.msra.mxu1 %v10517_v2  ;;  %8454 = vmatpush3.bf16.msra.mxu0 %v10278_v34 }
0x46fc   :  { %8461 = vmatprep.subr.bf16.mxu1 %v9057_v1  ;;  %8455 = vmatprep.subr.bf16.mxu0 %v9057_v1 }
0x46fd   :  { %8457 = vmatprep.mubr.msk.bf16.mxu0 %vm9058_vm1, %v9057_v1 }
0x46ff   :  { %8456 = vmatpush3.bf16.msra.mxu0 %v10285_v17 }
0x4700   :  { %8469 = vmatprep.subr.bf16.mxu0 %v9057_v1 }
0x47aa   :  { %v6325_v60 = vpop.f32.mrf.mxu0 }
0x47ab   :  { %v6460_v44 = vpack.c.bf16 %v6325_v60, %v6325_v60 }
0x47ac   :  { %v8417_v7 = vpop.f32.mrf.mxu0  ;;  %v6368_v4 = vpop.f32.mrf.mxu1 }
0x47ad   :  { %v6461_v0 = vpack.c.bf16 %v6368_v4, %v6368_v4  ;;  %v6508_v57 = vunpack.c.l.b16 %v6460_v44  ;;  %v6663_v44 = vrot.slane %v10439_v20, 4 }
0x47ae   :  { %v6328_v48 = vpop.f32.mrf.mxu0  ;;  %v8423_v12 = vpop.f32.mrf.mxu1 }
0x47af   :  { %v6509_v6 = vunpack.c.l.b16 %v6461_v0 }
0x47b0   :  { %v8418_v14 = vpop.f32.mrf.mxu0  ;;  %v6371_v26 = vpop.f32.mrf.mxu1 }
0x47b1   :  { %v6512_v17 = vrot.slane %v6509_v6, 7 }
0x47b2   :  { %v8424_v34 = vpop.f32.mrf.mxu1  ;;  %v6411_v29 = vpop.f32.mrf.mxu0 }
0x47b3   :  { %v6462_v49 = vpack.c.bf16 %v6411_v29, %v6411_v29  ;;  %v6513_v62 = vsel %vm2259_vm6, %v6512_v17, %v6508_v57 }
0x47b4   :  { %v8429_v25 = vpop.f32.mrf.mxu0 }
0x47b5   :  { %v6510_v50 = vunpack.c.l.b16 %v6462_v49 }
0x47b6   :  { %v6414_v55 = vpop.f32.mrf.mxu0  ;;  %v6454_v15 = vpop.f32.mrf.mxu1 }
0x47b7   :  { %v6463_v11 = vpack.c.bf16 %v6454_v15, %v6454_v15  ;;  %v6514_v22 = vrot.slane %v6510_v50, 6 }
0x47b8   :  { %v8430_v41 = vpop.f32.mrf.mxu0  ;;  %v8435_v8 = vpop.f32.mrf.mxu1 }
0x47b9   :  { %v6511_v51 = vunpack.c.l.b16 %v6463_v11  ;;  %v6515_v43 = vsel %vm2262_vm8, %v6514_v22, %v6513_v62 }
0x47ba   :  { %v6457_v37 = vpop.f32.mrf.mxu1  ;;  %v6498_v56 = vpop.f32.mrf.mxu0 }
0x47bb   :  { %v6516_v18 = vrot.slane %v6511_v51, 5 }
0x47bc   :  { %v8436_v36 = vpop.f32.mrf.mxu1  ;;  %v8443_v58 = vpop.f32.mrf.mxu0 }
0x47bd   :  { %v6517_v24 = vsel %vm2265_vm9, %v6516_v18, %v6515_v43 }
0x47be   :  { %v6518_v47 = vpack.c.b16 %v6517_v24, %v6517_v24  ;;  %v6501_v32 = vpop.f32.mrf.mxu0 }
0x47c0   :  { %v8444_v21 = vpop.f32.mrf.mxu0  ;;  %8450 = vmatmul.mubr.msk.bf16.vlgmr.msra.gmra.mxu1 %vm293_vm7, %v6518_v47 }
0x47c1   :  { %8462 = vmatpush3.bf16.msra.mxu1 %v10293_v35  ;;  %8465 = vmatprep.mubr.msk.bf16.mxu1 %vm9058_vm1, %v9057_v1 }
0x47c2   :  { %8463 = vmatprep.subr.bf16.mxu1 %v9057_v1 }
0x47c5   :  { %8464 = vmatpush3.bf16.msra.mxu1 %v10299_v27 }
0x47c6   :  { %8477 = vmatprep.subr.bf16.mxu1 %v9057_v1 }
0x47c8   :  { %8466 = vmatmul.mubr.msk.bf16.vlgmr.msra.gmra.mxu1 %vm293_vm7, %v10444_v23 }
0x47c9   :  { %8478 = vmatpush3.bf16.xpose.msra.mxu1 %v9702_v13  ;;  %8479 = vmatprep.mubr.msk.bf16.mxu1 %vm9058_vm1, %v9057_v1 }
0x47ca   :  { %8489 = vmatprep.subr.bf16.mxu1 %v9057_v1 }
0x4880   :  { %v6556_v35 = vpop.f32.mrf.mxu1 }
0x4881   :  { %v6557_v61 = vadd.f32 %v6556_v35, %v6498_v56 }
0x4882   :  { %v8451_v53 = vpop.f32.mrf.mxu1 }
0x4883   :  { %8849 = vtanh.f32 %v6557_v61 }
0x4884   :  { %v6559_v54 = vpop.f32.mrf.mxu1 }
0x4886   :  { %v8452_v52 = vpop.f32.mrf.mxu1 }
0x4888   :  { %v6645_v5 = vpop.f32.mrf.mxu1 }
0x4889   :  { %v6652_v48 = vrot.slane %v6645_v5, 4 }
0x488a   :  { %v8467_v27 = vpop.f32.mrf.mxu1 }
0x488c   :  { %v6648_v3 = vpop.f32.mrf.mxu1 }
0x488e   :  { %v8468_v16 = vpop.f32.mrf.mxu1 }
0x4890   :  { %v8850_v60 = vpop.eup %8849 }
0x4891   :  { %v6563_v7 = vpack.c.bf16 %v8850_v60, %v8850_v60  ;;  %7280 = vst.msk [vmem:[#allocation13 + $0x18] sm:$0xf] %vm7273_vm10, %v8850_v60 }
0x4893   :  { %8458 = vmatmul.mubr.msk.bf16.vlgmr.msra.gmra.mxu0 %vm293_vm7, %v6563_v7 }
0x4894   :  { %8470 = vmatpush3.bf16.msra.mxu0 %v10422_v9  ;;  %8473 = vmatprep.mubr.msk.bf16.mxu0 %vm9058_vm1, %v9057_v1 }
0x4895   :  { %8471 = vmatprep.subr.bf16.mxu0 %v9057_v1 }
0x4898   :  { %8472 = vmatpush3.bf16.msra.mxu0 %v10431_v40 }
0x4899   :  { %8483 = vmatprep.subr.bf16.mxu0 %v9057_v1 }
0x4953   :  { %v6601_v13 = vpop.f32.mrf.mxu0 }
0x4954   :  { %v6608_v23 = vrot.slane %v6601_v13, 4 }
0x4955   :  { %v8459_v4 = vpop.f32.mrf.mxu0 }
0x4956   :  { %v6610_v12 = vadd.f32 %v6608_v23, %v9661_v59 }
0x4957   :  { %v6604_v0 = vpop.f32.mrf.mxu0 }
0x4958   :  { %v6654_v14 = vadd.f32 %v6652_v48, %v6610_v12 }
0x4959   :  { %v8460_v26 = vpop.f32.mrf.mxu0 }
0x495a   :  { %8851 = vtanh.f32 %v6654_v14  ;;  %v7469_v34 = vmul.f32 -1.442695, %v6654_v14 }
0x495c   :  { %8853 = vpow2.f32 %v7469_v34 }
0x4967   :  { %v8852_v9 = vpop.eup %8851 }
0x4968   :  { %6667 = vrot.lane.b32.xlu1 %v8852_v9, %s9059_s2 }
0x4969   :  { %v8854_v29 = vpop.eup %8853 }
0x496a   :  { %v6658_v6 = vadd.f32 1.0, %v8854_v29 }
0x496c   :  { %8855 = vrcp.f32 %v6658_v6 }
0x4979   :  { %v8856_v40 = vpop.eup %8855 }
0x497a   :  { %v6665_v59 = vmul.f32 %v8856_v40, %v6663_v44 }
0x49da   :  { %v6668_v49 = vpop.permute.xlu1 %6667 }
0x49db   :  { %v6670_v25 = vmul.f32 %v8856_v40, %v6668_v49 }
0x49dd   :  { %6672 = vrot.lane.b32.xlu0 %v6670_v25, %s9059_s2 }
0x4a4f   :  { %v6673_v50 = vpop.permute.xlu0 %6672 }
0x4a50   :  { %v6675_v55 = vadd.f32 %v6673_v50, %v6665_v59 }
0x4a52   :  { %8857 = vtanh.f32 %v6675_v55 }
0x4a5f   :  { %v8858_v15 = vpop.eup %8857 }
0x4a60   :  { %6678 = vrot.lane.b32.xlu1 %v8858_v15, %s9059_s2  ;;  %s7287_s2 = sshll.u32 %s9061_s9, 4  ;;  %s7288_s2 = int_to_ptr.vmem [resolvable:$true] %s7287_s2 }
0x4a61   :  { %s9018_s18 = scalar_lea.vmem %s7288_s2, 512  ;;  %p9023_p3 = scmp.lt.s32.totalorder %s7288_s2, %s7288_s2 }
0x4a62   :  { %p9019_p2 = scmp.ne.s32.totalorder %s7288_s2, %s9018_s18  ;;  %p9024_p4 = scmp.lt.s32.totalorder %s9018_s18, %s9018_s18 }
0x4a64   :  { %p9025_p5 = por %p9024_p4, %p9023_p3 }
0x4a66   :  { %p9026_p6 = pnand %p9025_p5, %p9019_p2 }
0x4ad2   :  { %v6679_v17 = vpop.permute.xlu1 %6678 }
0x4ad3   :  { %v6681_v11 = vmul.f32 %v8856_v40, %v6679_v17 }
0x4ad5   :  { %v6682_v22 = vpack.c.bf16 %v6681_v11, %v6681_v11 }
0x4ad7   :  { %v6684_v41 = vrot.slane %v6682_v22, 2 }
0x4ad9   :  { %6685 = vrot.lane.b32.xlu1 %v6684_v41, %s9051_s14 }
0x4b4b   :  { %v10557_v8 = vpop.permute.xlu1 %6685 }
0x4b4c   :  { %8474 = vmatmul.mubr.msk.bf16.vlgmr.msra.gmra.mxu0 %vm293_vm7, %v10557_v8 }
0x4b4d   :  { %8484 = vmatpush3.bf16.xpose.msra.mxu0 %v9715_v19  ;;  %8485 = vmatprep.mubr.msk.bf16.mxu0 %vm9058_vm1, %v9057_v1 }
0x4b4e   :  { %8495 = vmatprep.subr.bf16.mxu0 %v9057_v1 }
0x4c0c   :  { %v6724_v20 = vpop.f32.mrf.mxu0 }
0x4c0d   :  { %v6730_v57 = vpack.c.bf16 %v6724_v20, %v6724_v20 }
0x4c0e   :  { %v8475_v51 = vpop.f32.mrf.mxu0 }
0x4c0f   :  { %v6738_v37 = vrot.slane %v6730_v57, %v9263_v33 }
0x4c10   :  { %v6727_v56 = vpop.f32.mrf.mxu0 }
0x4c11   :  { %v6739_v62 = vcombine.high %v6738_v37, %v6738_v37  ;;  %v6746_v18 = vrot.slane %v6738_v37, %v9263_v33 }
0x4c12   :  { %v8476_v43 = vpop.f32.mrf.mxu0 }
0x4c13   :  { %v6753_v36 = vrot.slane %v6739_v62, %v9263_v33  ;;  %v6755_v58 = vunpack.i.h.s16 %v6746_v18  ;;  %v7471_v24 = vpack.i.b16 %v6746_v18, %v6746_v18 }
0x4c15   :  { %v6762_v19 = vrot.slane %v7471_v24, %v9270_v45  ;;  %v6806_v47 = vpack.i.b16 %v6755_v58, %v6755_v58  ;;  %v6757_v32 = vunpack.i.h.s16 %v6753_v36  ;;  %v7474_v35 = vpack.i.b16 %v6753_v36, %v6753_v36 }
0x4c17   :  { %v6810_v21 = vrot.slane %v6806_v47, %v9270_v45  ;;  %8480 = vmatmul.mubr.msk.bf16.vlgmr.msra.gmra.mxu1 %vm293_vm7, %v6762_v19  ;;  %v6902_v33 = vpack.i.b16 %v6757_v32, %v6757_v32  ;;  %v6858_v61 = vrot.slane %v7474_v35, %v9270_v45 }
0x4c18   :  { %8490 = vmatpush3.bf16.xpose.msra.mxu1 %v9733_v10  ;;  %8491 = vmatprep.mubr.msk.bf16.mxu1 %vm9058_vm1, %v9057_v1 }
0x4c19   :  { %8486 = vmatmul.mubr.msk.bf16.vlgmr.msra.gmra.mxu0 %vm293_vm7, %v6810_v21  ;;  %8501 = vmatprep.subr.bf16.mxu1 %v9057_v1  ;;  %v6906_v10 = vrot.slane %v6902_v33, %v9270_v45 }
0x4c1a   :  { %8496 = vmatpush3.bf16.xpose.msra.mxu0 %v9742_v38  ;;  %8497 = vmatprep.mubr.msk.bf16.mxu0 %vm9058_vm1, %v9057_v1 }
0x4c1b   :  { %8507 = vmatprep.subr.bf16.mxu0 %v9057_v1 }
0x4c1f   :  { %8492 = vmatmul.mubr.msk.bf16.vlgmr.msra.gmra.mxu1 %vm293_vm7, %v6858_v61 }
0x4c20   :  { %8502 = vmatpush3.bf16.msra.mxu1 %v9752_v42  ;;  %8503 = vmatprep.mubr.msk.bf16.mxu1 %vm9058_vm1, %v9057_v1 }
0x4c21   :  { %8498 = vmatmul.mubr.msk.bf16.vlgmr.msra.gmra.mxu0 %vm293_vm7, %v6906_v10  ;;  %8513 = vmatprep.subr.bf16.mxu1 %v9057_v1 }
0x4c22   :  { %8508 = vmatpush3.bf16.msra.mxu0 %v9760_v46  ;;  %8509 = vmatprep.mubr.msk.bf16.mxu0 %vm9058_vm1, %v9057_v1 }
0x4c23   :  { %8519 = vmatprep.subr.bf16.mxu0 %v9057_v1 }
0x4cd7   :  { %v6800_v38 = vpop.f32.mrf.mxu1 }
0x4cd8   :  { %v6950_v45 = vsel %vm1964_vm4, %v6800_v38, -inf }
0x4cd9   :  { %6951 = vmax.xlane.f32.xlu0 %v6950_v45  ;;  %v8481_v53 = vpop.f32.mrf.mxu1  ;;  %v6848_v42 = vpop.f32.mrf.mxu0 }
0x4cda   :  { %v6953_v54 = vsel %vm1964_vm4, %v6848_v42, -inf }
0x4cdb   :  { %v6803_v52 = vpop.f32.mrf.mxu1  ;;  %6954 = vmax.xlane.f32.xlu1 %v6953_v54  ;;  %v8487_v5 = vpop.f32.mrf.mxu0 }
0x4cdd   :  { %v8482_v27 = vpop.f32.mrf.mxu1  ;;  %v6851_v3 = vpop.f32.mrf.mxu0 }
0x4cdf   :  { %v8488_v16 = vpop.f32.mrf.mxu0  ;;  %v6896_v46 = vpop.f32.mrf.mxu1 }
0x4ce0   :  { %v6956_v60 = vsel %vm1964_vm4, %v6896_v46, -inf }
0x4ce1   :  { %6957 = vmax.xlane.f32.xlu0 %v6956_v60  ;;  %v8493_v7 = vpop.f32.mrf.mxu1  ;;  %v6944_v13 = vpop.f32.mrf.mxu0 }
0x4ce2   :  { %v6959_v48 = vsel %vm1964_vm4, %v6944_v13, -inf }
0x4ce3   :  { %v6899_v23 = vpop.f32.mrf.mxu1  ;;  %v8499_v4 = vpop.f32.mrf.mxu0 }
0x4ce5   :  { %v8494_v12 = vpop.f32.mrf.mxu1  ;;  %6960 = vmax.xlane.f32.xlu0 %v6959_v48  ;;  %v6947_v0 = vpop.f32.mrf.mxu0 }
0x4ce7   :  { %v8500_v14 = vpop.f32.mrf.mxu0 }
0x4d62   :  { %v6952_v26 = vpop.xlane.xlu0 %6951 }
0x4d63   :  { %v6962_v9 = vsub.f32 %v6800_v38, %v6952_v26 }
0x4d64   :  { %v6955_v34 = vpop.xlane.xlu1 %6954 }
0x4d65   :  { %v6966_v29 = vmul.f32 1.442695, %v6962_v9  ;;  %v6963_v6 = vsub.f32 %v6848_v42, %v6955_v34 }
0x4d67   :  { %8859 = vpow2.f32 %v6966_v29  ;;  %v6968_v40 = vmul.f32 1.442695, %v6963_v6 }
0x4d69   :  { %8861 = vpow2.f32 %v6968_v40 }
0x4d6a   :  { %v6958_v49 = vpop.xlane.xlu0 %6957 }
0x4d6b   :  { %v6964_v25 = vsub.f32 %v6896_v46, %v6958_v49 }
0x4d6d   :  { %v6970_v44 = vmul.f32 1.442695, %v6964_v25 }
0x4d6e   :  { %v6961_v59 = vpop.xlane.xlu0 %6960 }
0x4d6f   :  { %8863 = vpow2.f32 %v6970_v44  ;;  %v6965_v50 = vsub.f32 %v6944_v13, %v6961_v59 }
0x4d71   :  { %v6972_v55 = vmul.f32 1.442695, %v6965_v50 }
0x4d73   :  { %8865 = vpow2.f32 %v6972_v55 }
0x4d74   :  { %v8860_v15 = vpop.eup %8859 }
0x4d75   :  { %v6974_v17 = vsel %vm1964_vm4, %v8860_v15, 0.0 }
0x4d76   :  { %v8862_v11 = vpop.eup %8861  ;;  %6975 = vadd.xlane.f32.xlu1 %v6974_v17 }
0x4d77   :  { %v6977_v22 = vsel %vm1964_vm4, %v8862_v11, 0.0 }
0x4d78   :  { %6978 = vadd.xlane.f32.xlu0 %v6977_v22 }
0x4d7c   :  { %v8864_v41 = vpop.eup %8863 }
0x4d7d   :  { %v6980_v20 = vsel %vm1964_vm4, %v8864_v41, 0.0 }
0x4d7e   :  { %6981 = vadd.xlane.f32.xlu1 %v6980_v20 }
0x4d80   :  { %v8866_v57 = vpop.eup %8865 }
0x4d81   :  { %v6983_v51 = vsel %vm1964_vm4, %v8866_v57, 0.0 }
0x4d82   :  { %6984 = vadd.xlane.f32.xlu0 %v6983_v51 }
0x4dff   :  { %v6976_v37 = vpop.xlane.xlu1 %6975 }
0x4e00   :  { %8867 = vrcp.f32 %v6976_v37 }
0x4e01   :  { %v6979_v56 = vpop.xlane.xlu0 %6978 }
0x4e02   :  { %8869 = vrcp.f32 %v6979_v56 }
0x4e07   :  { %v6982_v62 = vpop.xlane.xlu1 %6981 }
0x4e08   :  { %8871 = vrcp.f32 %v6982_v62 }
0x4e0b   :  { %v6985_v18 = vpop.xlane.xlu0 %6984 }
0x4e0c   :  { %8873 = vrcp.f32 %v6985_v18 }
0x4e0d   :  { %v8868_v43 = vpop.eup %8867 }
0x4e0e   :  { %v6990_v36 = vmul.f32 %v8868_v43, %v8860_v15 }
0x4e0f   :  { %v8870_v58 = vpop.eup %8869 }
0x4e10   :  { %v6994_v24 = vpack.c.bf16 %v6990_v36, %v6990_v36  ;;  %v6991_v19 = vmul.f32 %v8870_v58, %v8862_v11 }
0x4e12   :  { %v6995_v47 = vpack.c.bf16 %v6991_v19, %v6991_v19  ;;  %8504 = vmatmul.mubr.msk.bf16.vlgmr.msra.gmra.mxu1 %vm2013_vm5, %v6994_v24 }
0x4e13   :  { %8514 = vmatpush3.bf16.msra.mxu1 %v9778_v28  ;;  %8515 = vmatprep.mubr.msk.bf16.mxu1 %vm9058_vm1, %v9057_v1 }
0x4e14   :  { %8510 = vmatmul.mubr.msk.bf16.vlgmr.msra.gmra.mxu0 %vm2013_vm5, %v6995_v47  ;;  %8525 = vmatprep.subr.bf16.mxu1 %v9057_v1 }
0x4e15   :  { %v8872_v32 = vpop.eup %8871  ;;  %8520 = vmatpush3.bf16.msra.mxu0 %v9786_v31  ;;  %8521 = vmatprep.mubr.msk.bf16.mxu0 %vm9058_vm1, %v9057_v1 }
0x4e16   :  { %v6992_v21 = vmul.f32 %v8872_v32, %v8864_v41  ;;  %8533 = vmatprep.subr.bf16.mxu0 %v9057_v1 }
0x4e18   :  { %v6996_v35 = vpack.c.bf16 %v6992_v21, %v6992_v21 }
0x4e19   :  { %v8874_v33 = vpop.eup %8873 }
0x4e1a   :  { %v6993_v61 = vmul.f32 %v8874_v33, %v8866_v57  ;;  %8516 = vmatmul.mubr.msk.bf16.vlgmr.msra.gmra.mxu1 %vm2013_vm5, %v6996_v35 }
0x4e1b   :  { %8526 = vmatpush3.bf16.msra.mxu1 %v10498_v63  ;;  %8529 = vmatprep.mubr.msk.bf16.mxu1 %vm9058_vm1, %v9057_v1 }
0x4e1c   :  { %v6997_v28 = vpack.c.bf16 %v6993_v61, %v6993_v61  ;;  %8527 = vmatprep.subr.bf16.mxu1 %v9057_v1 }
0x4e1e   :  { %8522 = vmatmul.mubr.msk.bf16.vlgmr.msra.gmra.mxu0 %vm2013_vm5, %v6997_v28 }
0x4e1f   :  { %8528 = vmatpush3.bf16.msra.mxu1 %v10505_v30  ;;  %8534 = vmatpush3.bf16.msra.mxu0 %v10508_v39 }
0x4e20   :  { %8535 = vmatprep.subr.bf16.mxu0 %v9057_v1  ;;  %8537 = vmatprep.mubr.msk.bf16.mxu0 %vm9058_vm1, %v9057_v1 }
0x4e22   :  { %8530 = vmatmul.mubr.msk.bf16.vlgmr.msra.gmra.mxu1 %vm293_vm7, %v10557_v8 }
0x4e23   :  { %8536 = vmatpush3.bf16.msra.mxu0 %v10517_v2 }
0x4ed2   :  { %v7035_v31 = vpop.f32.mrf.mxu1 }
0x4ed3   :  { %v7170_v3 = vpack.c.bf16 %v7035_v31, %v7035_v31 }
0x4ed4   :  { %v8505_v63 = vpop.f32.mrf.mxu1  ;;  %v7078_v10 = vpop.f32.mrf.mxu0 }
0x4ed5   :  { %v7171_v53 = vpack.c.bf16 %v7078_v10, %v7078_v10  ;;  %v7218_v23 = vunpack.c.l.b16 %v7170_v3 }
0x4ed6   :  { %v7038_v38 = vpop.f32.mrf.mxu1  ;;  %v8511_v45 = vpop.f32.mrf.mxu0 }
0x4ed7   :  { %v7219_v52 = vunpack.c.l.b16 %v7171_v53 }
0x4ed8   :  { %v8506_v42 = vpop.f32.mrf.mxu1  ;;  %v7081_v30 = vpop.f32.mrf.mxu0 }
0x4ed9   :  { %v7222_v8 = vrot.slane %v7219_v52, 7 }
0x4eda   :  { %v8512_v54 = vpop.f32.mrf.mxu0  ;;  %v7121_v39 = vpop.f32.mrf.mxu1 }
0x4edb   :  { %v7172_v5 = vpack.c.bf16 %v7121_v39, %v7121_v39  ;;  %v7223_v0 = vsel %vm2259_vm6, %v7222_v8, %v7218_v23 }
0x4edc   :  { %v8517_v27 = vpop.f32.mrf.mxu1 }
0x4edd   :  { %v7220_v1 = vunpack.c.l.b16 %v7172_v5 }
0x4ede   :  { %v7124_v16 = vpop.f32.mrf.mxu1  ;;  %v7164_v46 = vpop.f32.mrf.mxu0 }
0x4edf   :  { %v7173_v60 = vpack.c.bf16 %v7164_v46, %v7164_v46  ;;  %v7224_v2 = vrot.slane %v7220_v1, 6 }
0x4ee0   :  { %v8518_v7 = vpop.f32.mrf.mxu1  ;;  %v8523_v13 = vpop.f32.mrf.mxu0 }
0x4ee1   :  { %v7221_v4 = vunpack.c.l.b16 %v7173_v60  ;;  %v7225_v26 = vsel %vm2262_vm8, %v7224_v2, %v7223_v0 }
0x4ee2   :  { %v7167_v48 = vpop.f32.mrf.mxu0  ;;  %v7208_v12 = vpop.f32.mrf.mxu1 }
0x4ee3   :  { %v7226_v14 = vrot.slane %v7221_v4, 5 }
0x4ee4   :  { %v8524_v9 = vpop.f32.mrf.mxu0  ;;  %v8531_v34 = vpop.f32.mrf.mxu1 }
0x4ee5   :  { %v7227_v29 = vsel %vm2265_vm9, %v7226_v14, %v7225_v26 }
0x4ee6   :  { %v7228_v6 = vpack.c.b16 %v7227_v29, %v7227_v29  ;;  %v7211_v40 = vpop.f32.mrf.mxu1 }
0x4ee8   :  { %v8532_v49 = vpop.f32.mrf.mxu1  ;;  %8538 = vmatmul.mubr.msk.bf16.vlgmr.msra.gmra.mxu0 %vm293_vm7, %v7228_v6 }
0x4fa8   :  { %v7266_v25 = vpop.f32.mrf.mxu0 }
0x4fa9   :  { %v7267_v44 = vadd.f32 %v7266_v25, %v7208_v12 }
0x4faa   :  { %v8539_v59 = vpop.f32.mrf.mxu0 }
0x4fab   :  { %8875 = vtanh.f32 %v7267_v44 }
0x4fac   :  { %v7269_v50 = vpop.f32.mrf.mxu0 }
0x4fae   :  { %v8540_v55 = vpop.f32.mrf.mxu0 }
0x4fb8   :  { %v8876_v15 = vpop.eup %8875 }
0x4fb9   :  { %7281 = vst.msk [vmem:[#allocation13 + $0x1c] sm:$0xf] %vm7273_vm10, %v8876_v15 }
0x4fba   :  { %9029 = shalt.err (!%p9026_p6)
}
0x4fbb   :  { %7293 = dma.vmem_to_hbm [thread:$0]  %s7288_s2, 512, %s10647_s12, [#allocation4], %s9051_s14, %s9051_s14, %s9052_s15  }
0x4fbc   :  { %9046 = dma.done.wait [#allocation4], 512  }
0x4fbd   :  { %9047 = vsyncadd [#allocation4], 4294966784 }
0x4fbe   :  { %7297 = vsyncpa [#allocation3], 1 }
0x4fbf   :  { %7298 = vsyncpa [#allocation6], 1 }
0x4fc0   :  { %7299 = vsyncpa [#allocation9], 1 }
0x4fc1   :  { %7300 = vsyncpa [#allocation12], 1 }
0x4fc2   :  { %7301 = vsyncpa [#allocation4], 1 }

</bundles_post_ra>
